<compile_context>
chip_gen: v7x
topology: tpu7x:2x2x1
jax: 0.10.0
libtpu: 0.0.40
codegen_flags: <defaults>
</compile_context>

<pallas_src>
import functools

import jax
import jax.numpy as jnp
from jax import lax
from jax.experimental import pallas as pl
from jax.experimental.pallas import tpu as pltpu

# ---- demo dims (scaled-down versions of the module's implied input) ----------------------
WINDOW = 4       # depth D        (PyTorch: WINDOW_SIZE = 15)
HEIGHT = 16      # H              (PyTorch: 32  -> pooled 16 -> 8)
WIDTH = 32       # W              (PyTorch: 364 -> pooled 182 -> 91)
BATCH = 2
FC_IN = 32 * WINDOW * (HEIGHT // 4) * (WIDTH // 4)   # == 32*15*8*91 at the original dims

_VMEM_LIMIT = 48 * 1024 * 1024   # sized for v7x's 64 MiB physical VMEM (review: keep <=48MiB)
_FC_TK_MAX = 16 * 1024           # FC reduction tile: ~2 MB of w1 per grid step at FC_IN=349k


def _round_up(a, b):
    return (a + b - 1) // b * b


# -------------- fused Conv3d(3x3x3, pad=1) + bias + ReLU + MaxPool3d((1,2,2)) -------------
def _conv_relu_pool_kernel(x_ref, w_ref, b_ref, o_ref, *, H, W2, Cout, HT):
    """Computes one (n, d) pooled output slab.

    x_ref: (1, 1, (H+2)*W2, 12*Cin) bf16 -- rows are (padded_h, w_pair); the channel dim
           carries (kd, kwe, cin): the 3 depth taps and the 4-wide padded-w window that
           covers both output parities (kwe 0..2 -> even w, kwe 1..3 -> odd w).
    w_ref: (3, 12*Cin, 2*Cout) bf16 -- one matrix per kh tap; columns [0:Cout] produce the
           even-w conv output, [Cout:2*Cout] the odd-w output (unused kwe rows are zero).
    b_ref: (1, Cout) f32.
    o_ref: (1, 1, (H//2)*W2, Cout) bf16 -- pooled output, rows are (h_out, w_pair).
    """
    bias = b_ref[...]                                    # (1, Cout), hoisted out of the loop
    for h0 in range(0, H, HT):                           # static unroll: H // HT small tiles
        # 3 MXU matmuls per tile; the f32 accumulator lives in vregs (no VMEM RMW passes).
        acc = None
        for kh in range(3):
            r0 = (h0 + kh) * W2
            part = jnp.dot(x_ref[0, 0, r0:r0 + HT * W2, :], w_ref[kh],
                           preferred_element_type=jnp.float32)
            acc = part if acc is None else acc + part

        # Fused epilogue: MaxPool3d((1, 2, 2)) + bias + ReLU (bias/ReLU commute with max).
        for m in range(HT // 2):
            top = acc[(2 * m) * W2:(2 * m + 1) * W2, :]          # conv rows h = h0 + 2m
            bot = acc[(2 * m + 1) * W2:(2 * m + 2) * W2, :]      # conv rows h = h0 + 2m + 1
            p = jnp.maximum(top, bot)                            # max over the h pair
            p = jnp.maximum(p[:, :Cout], p[:, Cout:])            # max over the w pair
            p = jnp.maximum(p + bias, 0.0)                       # bias + ReLU
            r = (h0 // 2 + m) * W2
            o_ref[0, 0, r:r + W2, :] = p.astype(o_ref.dtype)


def conv3d_relu_maxpool(x, w, b):
    """Fused Conv3d(k=3, pad=1) + bias + ReLU + MaxPool3d((1, 2, 2)).

    x: (N, D, H, W, Cin); w: (3, 12*Cin, 2*Cout) bf16 (from prepare_params); b: (Cout,) f32.
    Returns (N, D, H//2, W//2, Cout) in bf16.
    """
    N, D, H, W, Cin = x.shape
    CK = w.shape[1]
    Cout = w.shape[2] // 2
    assert CK == 12 * Cin and H % 2 == 0 and W % 2 == 0
    W2 = W // 2
    HT = 4 if (H % 4 == 0 and W2 < 64) else 2            # keep the f32 accumulator ~<=12 vregs
    assert H % HT == 0

    # XLA-side relayout (cheap, bf16): fold the 3 depth taps and the 4-wide padded-w window
    # into the channel dim, so each (n, d) block carries its full receptive field and is
    # DMA'd exactly once, and the in-kernel contraction is 12*Cin wide (MXU-friendly).
    xp = jnp.pad(x.astype(jnp.bfloat16), ((0, 0), (1, 1), (1, 1), (1, 1), (0, 0)))
    xw = jnp.stack([xp[:, :, :, 0:W:2, :], xp[:, :, :, 1:W + 1:2, :],
                    xp[:, :, :, 2:W + 2:2, :], xp[:, :, :, 3:W + 3:2, :]], axis=4)
    xk = jnp.stack([xw[:, 0:D], xw[:, 1:D + 1], xw[:, 2:D + 2]], axis=4)
    xk = xk.reshape(N, D, (H + 2) * W2, CK)              # rows (padded_h, w_pair), ch (kd,kwe,c)
    b2d = b.reshape(1, Cout).astype(jnp.float32)

    kernel = functools.partial(_conv_relu_pool_kernel, H=H, W2=W2, Cout=Cout, HT=HT)
    out = pl.pallas_call(
        kernel,
        out_shape=jax.ShapeDtypeStruct((N, D, (H // 2) * W2, Cout), jnp.bfloat16),
        grid_spec=pltpu.PrefetchScalarGridSpec(
            num_scalar_prefetch=0,
            grid=(N, D),
            in_specs=[pl.BlockSpec((1, 1, (H + 2) * W2, CK), lambda n, d: (n, d, 0, 0)),
                      pl.BlockSpec((3, CK, 2 * Cout), lambda n, d: (0, 0, 0)),
                      pl.BlockSpec((1, Cout), lambda n, d: (0, 0))],
            out_specs=pl.BlockSpec((1, 1, (H // 2) * W2, Cout), lambda n, d: (n, d, 0, 0)),
        ),
        compiler_params=pltpu.CompilerParams(
            dimension_semantics=("parallel", "parallel"),
            vmem_limit_bytes=_VMEM_LIMIT),
    )(xk, w, b2d)
    # TODO(synk): conv1 (Cin=1, K=12) still underfills the MXU depth; a grouped/block-diagonal
    # weight over W2 columns would raise its fill further, at the cost of divisibility plumbing.
    return out.reshape(N, D, H // 2, W2, Cout)


# ------------------- fused Linear(FC_IN,128) + ReLU + Linear(128,2) head ------------------
def _fc_head_kernel(x_ref, w1_ref, b1_ref, w2_ref, o_ref, acc_ref):
    k = pl.program_id(1)

    @pl.when(k == 0)
    def _():
        acc_ref[...] = jnp.zeros_like(acc_ref)

    acc_ref[...] += jnp.dot(x_ref[...], w1_ref[0], preferred_element_type=jnp.float32)

    @pl.when(k == pl.num_programs(1) - 1)
    def _():
        h = jnp.maximum(acc_ref[...] + b1_ref[0], 0.0)            # FC1 + ReLU (f32)
        o_ref[0] = jnp.dot(h.astype(jnp.bfloat16), w2_ref[0],     # FC2 folded into epilogue
                           preferred_element_type=jnp.float32)


def fc_head(x, w1, b1, w2, b2):
    """logits = relu(x @ W1 + b1) @ W2 + b2, one Pallas call.

    Grid = (hidden-half [parallel], K tiles [arbitrary]): the dominant W1 stream is split
    across both v7x TensorCores; the K dim was zero-padded at init to a multiple of the
    large K tile, and the two partial logits are summed outside (exact: ReLU is per-unit).
    """
    M, K = x.shape
    n_half, KP, half = w1.shape
    assert n_half == 2 and KP >= K
    C = w2.shape[-1]
    tk = min(_FC_TK_MAX, KP)
    assert KP % tk == 0 and tk % 128 == 0
    if KP > K:                                    # K was padded (with zero w1 rows) at init
        x = jnp.pad(x, ((0, 0), (0, KP - K)))
    x = x.astype(jnp.bfloat16)

    parts = pl.pallas_call(
        _fc_head_kernel,
        out_shape=jax.ShapeDtypeStruct((2, M, C), jnp.float32),
        grid_spec=pltpu.PrefetchScalarGridSpec(
            num_scalar_prefetch=0,
            grid=(2, KP // tk),
            in_specs=[pl.BlockSpec((M, tk), lambda j, k: (0, k)),
                      pl.BlockSpec((1, tk, half), lambda j, k: (j, k, 0)),
                      pl.BlockSpec((1, 1, half), lambda j, k: (j, 0, 0)),
                      pl.BlockSpec((1, half, C), lambda j, k: (j, 0, 0))],
            out_specs=pl.BlockSpec((1, M, C), lambda j, k: (j, 0, 0)),
            scratch_shapes=[pltpu.VMEM((M, half), jnp.float32)],
        ),
        compiler_params=pltpu.CompilerParams(
            dimension_semantics=("parallel", "arbitrary"),
            vmem_limit_bytes=_VMEM_LIMIT),
    )(x, w1, b1, w2)
    return parts.sum(axis=0) + b2[None, :].astype(jnp.float32)


# --------------------------------------- parameters ---------------------------------------
def init_params_torch_layout(key):
    """Synthetic parameters in PyTorch-native layouts (Conv3d: (Cout, Cin, kD, kH, kW);
    Linear: (out, in)), exactly as the reference module would hold them."""
    k = jax.random.split(key, 8)
    return {
        "conv1_w": 0.05 * jax.random.normal(k[0], (16, 1, 3, 3, 3), jnp.float32),
        "conv1_b": 0.05 * jax.random.normal(k[1], (16,), jnp.float32),
        "conv2_w": 0.05 * jax.random.normal(k[2], (32, 16, 3, 3, 3), jnp.float32),
        "conv2_b": 0.05 * jax.random.normal(k[3], (32,), jnp.float32),
        "fc1_w": 0.02 * jax.random.normal(k[4], (128, FC_IN), jnp.float32),
        "fc1_b": 0.02 * jax.random.normal(k[5], (128,), jnp.float32),
        "fc2_w": 0.02 * jax.random.normal(k[6], (2, 128), jnp.float32),
        "fc2_b": 0.02 * jax.random.normal(k[7], (2,), jnp.float32),
    }


def _conv_weight(w):
    """(Cout, Cin, 3, 3, 3) torch layout -> (3_kh, 12*Cin, 2*Cout) bf16 matmul weights.

    Rows follow the activation's (kd, kwe, cin) channel order; columns [0:Cout] hold the
    even-w taps (kwe = kw) and [Cout:2*Cout] the odd-w taps (kwe = kw + 1); the unused kwe
    row of each half is zero, so one matmul produces both pooled-w parities."""
    cout, cin = w.shape[0], w.shape[1]
    wt = jnp.transpose(w, (3, 2, 4, 1, 0))                # (kh, kd, kw, cin, cout)
    wk = jnp.zeros((3, 3, 4, cin, 2 * cout), w.dtype)
    wk = wk.at[:, :, 0:3, :, 0:cout].set(wt)              # even output columns
    wk = wk.at[:, :, 1:4, :, cout:].set(wt)               # odd output columns
    return wk.reshape(3, 12 * cin, 2 * cout).astype(jnp.bfloat16)


def prepare_params(p, *, depth, height, width):
    """One-time static weight relayout for the Pallas kernels (no runtime transposes)."""
    h4, w4 = height // 4, width // 4

    # Permute fc1's input features once so the natural channels-last flatten of the conv
    # output matches PyTorch's (N, C, D, H/4, W/4) flatten exactly.
    n_hidden = p["fc1_w"].shape[0]
    half = n_hidden // 2
    fc1 = p["fc1_w"].reshape(n_hidden, 32, depth, h4, w4)
    fc1 = jnp.transpose(fc1, (0, 2, 3, 4, 1)).reshape(n_hidden, -1)
    w1 = jnp.transpose(fc1)                                        # (FC_IN, 128)

    # Zero-pad K to a multiple of the large FC reduction tile at init (perf + robustness
    # fix for the real FC_IN = 349,440; zero rows contribute nothing to the matmul).
    k_in = w1.shape[0]
    tk = min(_FC_TK_MAX, _round_up(k_in, 512))
    kp = _round_up(k_in, tk)
    w1 = jnp.pad(w1, ((0, kp - k_in), (0, 0)))
    # Split the hidden dim into two halves on a leading axis for the parallel FC grid axis.
    w1 = jnp.transpose(w1.reshape(kp, 2, half), (1, 0, 2)).astype(jnp.bfloat16)

    return {
        "w1": _conv_weight(p["conv1_w"]),
        "b1": p["conv1_b"].astype(jnp.float32),
        "w2": _conv_weight(p["conv2_w"]),
        "b2": p["conv2_b"].astype(jnp.float32),
        "wf1": w1,                                                  # (2, KP, 64) bf16
        "bf1": p["fc1_b"].reshape(2, 1, half).astype(jnp.float32),  # (2, 1, 64)  f32
        "wf2": jnp.transpose(p["fc2_w"]).reshape(2, half, -1).astype(jnp.bfloat16),  # (2,64,2)
        "bf2": p["fc2_b"].astype(jnp.float32),
    }


# -------------------------------------- model forward --------------------------------------
def simple3dcnn_forward(params, x_ncdhw):
    """x_ncdhw: (N, 1, D, H, W) (PyTorch NCDHW) -> logits (N, 2)."""
    N, C, D, H, W = x_ncdhw.shape
    assert C == 1
    x = x_ncdhw.reshape(N, D, H, W, 1)           # NCDHW -> NDHWC is a pure reshape when C == 1
    x = conv3d_relu_maxpool(x, params["w1"], params["b1"])   # (N, D, H/2, W/2, 16) bf16
    x = conv3d_relu_maxpool(x, params["w2"], params["b2"])   # (N, D, H/4, W/4, 32) bf16
    x = x.reshape(N, -1)                         # channels-last flatten (wf1 pre-permuted)
    return fc_head(x, params["wf1"], params["bf1"], params["wf2"], params["bf2"])


# ------------------------- pure-JAX f32 reference (tolerance check) ------------------------
def _reference_forward(p, x_ncdhw):
    def conv3d(x, w, b):
        y = lax.conv_general_dilated(
            x, w, window_strides=(1, 1, 1), padding=((1, 1), (1, 1), (1, 1)),
            dimension_numbers=("NCDHW", "OIDHW", "NCDHW"))
        return y + b.reshape(1, -1, 1, 1, 1)

    def pool_122(x):
        return lax.reduce_window(x, -jnp.inf, lax.max,
                                 (1, 1, 1, 2, 2), (1, 1, 1, 2, 2), "VALID")

    x = pool_122(jnp.maximum(conv3d(x_ncdhw, p["conv1_w"], p["conv1_b"]), 0.0))
    x = pool_122(jnp.maximum(conv3d(x, p["conv2_w"], p["conv2_b"]), 0.0))
    x = x.reshape(x.shape[0], -1)
    x = jnp.maximum(x @ p["fc1_w"].T + p["fc1_b"], 0.0)
    return x @ p["fc2_w"].T + p["fc2_b"]


if __name__ == "__main__":
    key = jax.random.PRNGKey(0)
    pkey, xkey = jax.random.split(key)
    torch_params = init_params_torch_layout(pkey)
    params = prepare_params(torch_params, depth=WINDOW, height=HEIGHT, width=WIDTH)
    x = jax.random.normal(xkey, (BATCH, 1, WINDOW, HEIGHT, WIDTH), jnp.float32)

    fwd = jax.jit(simple3dcnn_forward)
    out = jax.block_until_ready(fwd(params, x))
    assert out.shape == (BATCH, 2), out.shape
    assert bool(jnp.all(jnp.isfinite(out)))

    # bf16-tolerance check against a pure-f32 XLA reference of the PyTorch module.
    ref = jax.block_until_ready(jax.jit(_reference_forward)(torch_params, x))
    err = float(jnp.max(jnp.abs(out - ref)))
    scale = float(jnp.max(jnp.abs(ref))) + 1e-6
    assert err <= 0.1 * scale + 0.02, (err, scale)

    print("KERNEL_OK")
</pallas_src>

<mosaic_0001>
module attributes {stable_mosaic.version = 11 : i64} {
  func.func @_conv_relu_pool_kernel(%arg0: i32, %arg1: i32, %arg2: memref<1x1x288x12xbf16, #tpu.memory_space<vmem>>, %arg3: memref<3x12x32xbf16, #tpu.memory_space<vmem>>, %arg4: memref<1x16xf32, #tpu.memory_space<vmem>>, %arg5: memref<1x1x128x16xbf16, #tpu.memory_space<vmem>>) attributes {dimension_semantics = [#tpu.dimension_semantics<parallel>, #tpu.dimension_semantics<parallel>], iteration_bounds = array<i64: 2, 4>, scalar_prefetch = 0 : i64, scratch_operands = 0 : i64, tpu.core_type = #tpu.core_type<tc>, window_params = [{transform_indices = @transform_0, window_bounds = array<i64: 1, 1, 288, 12>}, {pipeline_mode = #tpu.pipeline_mode<synchronous>, transform_indices = @transform_1, window_bounds = array<i64: 3, 12, 32>}, {pipeline_mode = #tpu.pipeline_mode<synchronous>, transform_indices = @transform_2, window_bounds = array<i64: 1, 16>}, {transform_indices = @transform_3, window_bounds = array<i64: 1, 1, 128, 16>}]} {
    %c0 = arith.constant 0 : index
    %c0_0 = arith.constant 0 : index
    %0 = vector.load %arg4[%c0, %c0_0] : memref<1x16xf32, #tpu.memory_space<vmem>>, vector<1x16xf32>
    %c0_1 = arith.constant 0 : index
    %c0_2 = arith.constant 0 : index
    %c0_3 = arith.constant 0 : index
    %c0_4 = arith.constant 0 : index
    %1 = vector.load %arg2[%c0_1, %c0_2, %c0_3, %c0_4] : memref<1x1x288x12xbf16, #tpu.memory_space<vmem>>, vector<1x1x64x12xbf16>
    %2 = vector.shape_cast %1 : vector<1x1x64x12xbf16> to vector<64x12xbf16>
    %c0_5 = arith.constant 0 : index
    %c0_6 = arith.constant 0 : index
    %c0_7 = arith.constant 0 : index
    %3 = vector.load %arg3[%c0_5, %c0_6, %c0_7] : memref<3x12x32xbf16, #tpu.memory_space<vmem>>, vector<1x12x32xbf16>
    %4 = vector.shape_cast %3 : vector<1x12x32xbf16> to vector<12x32xbf16>
    %cst = arith.constant dense<0.000000e+00> : vector<64x32xf32>
    %5 = tpu.matmul %2, %4, %cst {dimension_numbers = #tpu.dot_dimension_numbers<[1], [0], [0], [1], [0, 0, 1, 1], [], []>} : vector<64x12xbf16>, vector<12x32xbf16>, vector<64x32xf32> -> vector<64x32xf32>
    %c0_8 = arith.constant 0 : index
    %c0_9 = arith.constant 0 : index
    %c16 = arith.constant 16 : index
    %c0_10 = arith.constant 0 : index
    %6 = vector.load %arg2[%c0_8, %c0_9, %c16, %c0_10] : memref<1x1x288x12xbf16, #tpu.memory_space<vmem>>, vector<1x1x64x12xbf16>
    %7 = vector.shape_cast %6 : vector<1x1x64x12xbf16> to vector<64x12xbf16>
    %c1 = arith.constant 1 : index
    %c0_11 = arith.constant 0 : index
    %c0_12 = arith.constant 0 : index
    %8 = vector.load %arg3[%c1, %c0_11, %c0_12] : memref<3x12x32xbf16, #tpu.memory_space<vmem>>, vector<1x12x32xbf16>
    %9 = vector.shape_cast %8 : vector<1x12x32xbf16> to vector<12x32xbf16>
    %cst_13 = arith.constant dense<0.000000e+00> : vector<64x32xf32>
    %10 = tpu.matmul %7, %9, %cst_13 {dimension_numbers = #tpu.dot_dimension_numbers<[1], [0], [0], [1], [0, 0, 1, 1], [], []>} : vector<64x12xbf16>, vector<12x32xbf16>, vector<64x32xf32> -> vector<64x32xf32>
    %11 = arith.addf %5, %10 : vector<64x32xf32>
    %c0_14 = arith.constant 0 : index
    %c0_15 = arith.constant 0 : index
    %c32 = arith.constant 32 : index
    %c0_16 = arith.constant 0 : index
    %12 = vector.load %arg2[%c0_14, %c0_15, %c32, %c0_16] : memref<1x1x288x12xbf16, #tpu.memory_space<vmem>>, vector<1x1x64x12xbf16>
    %13 = vector.shape_cast %12 : vector<1x1x64x12xbf16> to vector<64x12xbf16>
    %c2 = arith.constant 2 : index
    %c0_17 = arith.constant 0 : index
    %c0_18 = arith.constant 0 : index
    %14 = vector.load %arg3[%c2, %c0_17, %c0_18] : memref<3x12x32xbf16, #tpu.memory_space<vmem>>, vector<1x12x32xbf16>
    %15 = vector.shape_cast %14 : vector<1x12x32xbf16> to vector<12x32xbf16>
    %cst_19 = arith.constant dense<0.000000e+00> : vector<64x32xf32>
    %16 = tpu.matmul %13, %15, %cst_19 {dimension_numbers = #tpu.dot_dimension_numbers<[1], [0], [0], [1], [0, 0, 1, 1], [], []>} : vector<64x12xbf16>, vector<12x32xbf16>, vector<64x32xf32> -> vector<64x32xf32>
    %17 = arith.addf %11, %16 : vector<64x32xf32>
    %18 = vector.extract_strided_slice %17 {offsets = [0, 0], sizes = [16, 32], strides = [1, 1]} : vector<64x32xf32> to vector<16x32xf32>
    %19 = vector.extract_strided_slice %17 {offsets = [16, 0], sizes = [16, 32], strides = [1, 1]} : vector<64x32xf32> to vector<16x32xf32>
    %20 = arith.maximumf %18, %19 : vector<16x32xf32>
    %21 = vector.extract_strided_slice %20 {offsets = [0, 0], sizes = [16, 16], strides = [1, 1]} : vector<16x32xf32> to vector<16x16xf32>
    %22 = vector.extract_strided_slice %20 {offsets = [0, 16], sizes = [16, 16], strides = [1, 1]} : vector<16x32xf32> to vector<16x16xf32>
    %23 = arith.maximumf %21, %22 : vector<16x16xf32>
    %24 = vector.broadcast %0 : vector<1x16xf32> to vector<16x16xf32>
    %25 = arith.addf %23, %24 : vector<16x16xf32>
    %cst_20 = arith.constant 0.000000e+00 : f32
    %26 = vector.broadcast %cst_20 : f32 to vector<16x16xf32>
    %27 = arith.maximumf %25, %26 : vector<16x16xf32>
    %28 = arith.truncf %27 : vector<16x16xf32> to vector<16x16xbf16>
    %c0_21 = arith.constant 0 : index
    %c0_22 = arith.constant 0 : index
    %c0_23 = arith.constant 0 : index
    %c0_24 = arith.constant 0 : index
    %29 = vector.load %arg5[%c0_21, %c0_22, %c0_23, %c0_24] : memref<1x1x128x16xbf16, #tpu.memory_space<vmem>>, vector<1x1x16x16xbf16>
    %30 = vector.shape_cast %29 : vector<1x1x16x16xbf16> to vector<16x16xbf16>
    %31 = vector.shape_cast %28 : vector<16x16xbf16> to vector<1x1x16x16xbf16>
    tpu.vector_store %arg5[%c0_21, %c0_22, %c0_23, %c0_24], %31 {strides = array<i32>} : memref<1x1x128x16xbf16, #tpu.memory_space<vmem>>, vector<1x1x16x16xbf16>,
    %32 = vector.extract_strided_slice %17 {offsets = [32, 0], sizes = [16, 32], strides = [1, 1]} : vector<64x32xf32> to vector<16x32xf32>
    %33 = vector.extract_strided_slice %17 {offsets = [48, 0], sizes = [16, 32], strides = [1, 1]} : vector<64x32xf32> to vector<16x32xf32>
    %34 = arith.maximumf %32, %33 : vector<16x32xf32>
    %35 = vector.extract_strided_slice %34 {offsets = [0, 0], sizes = [16, 16], strides = [1, 1]} : vector<16x32xf32> to vector<16x16xf32>
    %36 = vector.extract_strided_slice %34 {offsets = [0, 16], sizes = [16, 16], strides = [1, 1]} : vector<16x32xf32> to vector<16x16xf32>
    %37 = arith.maximumf %35, %36 : vector<16x16xf32>
    %38 = vector.broadcast %0 : vector<1x16xf32> to vector<16x16xf32>
    %39 = arith.addf %37, %38 : vector<16x16xf32>
    %cst_25 = arith.constant 0.000000e+00 : f32
    %40 = vector.broadcast %cst_25 : f32 to vector<16x16xf32>
    %41 = arith.maximumf %39, %40 : vector<16x16xf32>
    %42 = arith.truncf %41 : vector<16x16xf32> to vector<16x16xbf16>
    %c0_26 = arith.constant 0 : index
    %c0_27 = arith.constant 0 : index
    %c16_28 = arith.constant 16 : index
    %c0_29 = arith.constant 0 : index
    %43 = vector.load %arg5[%c0_26, %c0_27, %c16_28, %c0_29] : memref<1x1x128x16xbf16, #tpu.memory_space<vmem>>, vector<1x1x16x16xbf16>
    %44 = vector.shape_cast %43 : vector<1x1x16x16xbf16> to vector<16x16xbf16>
    %45 = vector.shape_cast %42 : vector<16x16xbf16> to vector<1x1x16x16xbf16>
    tpu.vector_store %arg5[%c0_26, %c0_27, %c16_28, %c0_29], %45 {strides = array<i32>} : memref<1x1x128x16xbf16, #tpu.memory_space<vmem>>, vector<1x1x16x16xbf16>,
    %c0_30 = arith.constant 0 : index
    %c0_31 = arith.constant 0 : index
    %c64 = arith.constant 64 : index
    %c0_32 = arith.constant 0 : index
    %46 = vector.load %arg2[%c0_30, %c0_31, %c64, %c0_32] : memref<1x1x288x12xbf16, #tpu.memory_space<vmem>>, vector<1x1x64x12xbf16>
    %47 = vector.shape_cast %46 : vector<1x1x64x12xbf16> to vector<64x12xbf16>
    %c0_33 = arith.constant 0 : index
    %c0_34 = arith.constant 0 : index
    %c0_35 = arith.constant 0 : index
    %48 = vector.load %arg3[%c0_33, %c0_34, %c0_35] : memref<3x12x32xbf16, #tpu.memory_space<vmem>>, vector<1x12x32xbf16>
    %49 = vector.shape_cast %48 : vector<1x12x32xbf16> to vector<12x32xbf16>
    %cst_36 = arith.constant dense<0.000000e+00> : vector<64x32xf32>
    %50 = tpu.matmul %47, %49, %cst_36 {dimension_numbers = #tpu.dot_dimension_numbers<[1], [0], [0], [1], [0, 0, 1, 1], [], []>} : vector<64x12xbf16>, vector<12x32xbf16>, vector<64x32xf32> -> vector<64x32xf32>
    %c0_37 = arith.constant 0 : index
    %c0_38 = arith.constant 0 : index
    %c80 = arith.constant 80 : index
    %c0_39 = arith.constant 0 : index
    %51 = vector.load %arg2[%c0_37, %c0_38, %c80, %c0_39] : memref<1x1x288x12xbf16, #tpu.memory_space<vmem>>, vector<1x1x64x12xbf16>
    %52 = vector.shape_cast %51 : vector<1x1x64x12xbf16> to vector<64x12xbf16>
    %c1_40 = arith.constant 1 : index
    %c0_41 = arith.constant 0 : index
    %c0_42 = arith.constant 0 : index
    %53 = vector.load %arg3[%c1_40, %c0_41, %c0_42] : memref<3x12x32xbf16, #tpu.memory_space<vmem>>, vector<1x12x32xbf16>
    %54 = vector.shape_cast %53 : vector<1x12x32xbf16> to vector<12x32xbf16>
    %cst_43 = arith.constant dense<0.000000e+00> : vector<64x32xf32>
    %55 = tpu.matmul %52, %54, %cst_43 {dimension_numbers = #tpu.dot_dimension_numbers<[1], [0], [0], [1], [0, 0, 1, 1], [], []>} : vector<64x12xbf16>, vector<12x32xbf16>, vector<64x32xf32> -> vector<64x32xf32>
    %56 = arith.addf %50, %55 : vector<64x32xf32>
    %c0_44 = arith.constant 0 : index
    %c0_45 = arith.constant 0 : index
    %c96 = arith.constant 96 : index
    %c0_46 = arith.constant 0 : index
    %57 = vector.load %arg2[%c0_44, %c0_45, %c96, %c0_46] : memref<1x1x288x12xbf16, #tpu.memory_space<vmem>>, vector<1x1x64x12xbf16>
    %58 = vector.shape_cast %57 : vector<1x1x64x12xbf16> to vector<64x12xbf16>
    %c2_47 = arith.constant 2 : index
    %c0_48 = arith.constant 0 : index
    %c0_49 = arith.constant 0 : index
    %59 = vector.load %arg3[%c2_47, %c0_48, %c0_49] : memref<3x12x32xbf16, #tpu.memory_space<vmem>>, vector<1x12x32xbf16>
    %60 = vector.shape_cast %59 : vector<1x12x32xbf16> to vector<12x32xbf16>
    %cst_50 = arith.constant dense<0.000000e+00> : vector<64x32xf32>
    %61 = tpu.matmul %58, %60, %cst_50 {dimension_numbers = #tpu.dot_dimension_numbers<[1], [0], [0], [1], [0, 0, 1, 1], [], []>} : vector<64x12xbf16>, vector<12x32xbf16>, vector<64x32xf32> -> vector<64x32xf32>
    %62 = arith.addf %56, %61 : vector<64x32xf32>
    %63 = vector.extract_strided_slice %62 {offsets = [0, 0], sizes = [16, 32], strides = [1, 1]} : vector<64x32xf32> to vector<16x32xf32>
    %64 = vector.extract_strided_slice %62 {offsets = [16, 0], sizes = [16, 32], strides = [1, 1]} : vector<64x32xf32> to vector<16x32xf32>
    %65 = arith.maximumf %63, %64 : vector<16x32xf32>
    %66 = vector.extract_strided_slice %65 {offsets = [0, 0], sizes = [16, 16], strides = [1, 1]} : vector<16x32xf32> to vector<16x16xf32>
    %67 = vector.extract_strided_slice %65 {offsets = [0, 16], sizes = [16, 16], strides = [1, 1]} : vector<16x32xf32> to vector<16x16xf32>
    %68 = arith.maximumf %66, %67 : vector<16x16xf32>
    %69 = vector.broadcast %0 : vector<1x16xf32> to vector<16x16xf32>
    %70 = arith.addf %68, %69 : vector<16x16xf32>
    %cst_51 = arith.constant 0.000000e+00 : f32
    %71 = vector.broadcast %cst_51 : f32 to vector<16x16xf32>
    %72 = arith.maximumf %70, %71 : vector<16x16xf32>
    %73 = arith.truncf %72 : vector<16x16xf32> to vector<16x16xbf16>
    %c0_52 = arith.constant 0 : index
    %c0_53 = arith.constant 0 : index
    %c32_54 = arith.constant 32 : index
    %c0_55 = arith.constant 0 : index
    %74 = vector.load %arg5[%c0_52, %c0_53, %c32_54, %c0_55] : memref<1x1x128x16xbf16, #tpu.memory_space<vmem>>, vector<1x1x16x16xbf16>
    %75 = vector.shape_cast %74 : vector<1x1x16x16xbf16> to vector<16x16xbf16>
    %76 = vector.shape_cast %73 : vector<16x16xbf16> to vector<1x1x16x16xbf16>
    tpu.vector_store %arg5[%c0_52, %c0_53, %c32_54, %c0_55], %76 {strides = array<i32>} : memref<1x1x128x16xbf16, #tpu.memory_space<vmem>>, vector<1x1x16x16xbf16>,
    %77 = vector.extract_strided_slice %62 {offsets = [32, 0], sizes = [16, 32], strides = [1, 1]} : vector<64x32xf32> to vector<16x32xf32>
    %78 = vector.extract_strided_slice %62 {offsets = [48, 0], sizes = [16, 32], strides = [1, 1]} : vector<64x32xf32> to vector<16x32xf32>
    %79 = arith.maximumf %77, %78 : vector<16x32xf32>
    %80 = vector.extract_strided_slice %79 {offsets = [0, 0], sizes = [16, 16], strides = [1, 1]} : vector<16x32xf32> to vector<16x16xf32>
    %81 = vector.extract_strided_slice %79 {offsets = [0, 16], sizes = [16, 16], strides = [1, 1]} : vector<16x32xf32> to vector<16x16xf32>
    %82 = arith.maximumf %80, %81 : vector<16x16xf32>
    %83 = vector.broadcast %0 : vector<1x16xf32> to vector<16x16xf32>
    %84 = arith.addf %82, %83 : vector<16x16xf32>
    %cst_56 = arith.constant 0.000000e+00 : f32
    %85 = vector.broadcast %cst_56 : f32 to vector<16x16xf32>
    %86 = arith.maximumf %84, %85 : vector<16x16xf32>
    %87 = arith.truncf %86 : vector<16x16xf32> to vector<16x16xbf16>
    %c0_57 = arith.constant 0 : index
    %c0_58 = arith.constant 0 : index
    %c48 = arith.constant 48 : index
    %c0_59 = arith.constant 0 : index
    %88 = vector.load %arg5[%c0_57, %c0_58, %c48, %c0_59] : memref<1x1x128x16xbf16, #tpu.memory_space<vmem>>, vector<1x1x16x16xbf16>
    %89 = vector.shape_cast %88 : vector<1x1x16x16xbf16> to vector<16x16xbf16>
    %90 = vector.shape_cast %87 : vector<16x16xbf16> to vector<1x1x16x16xbf16>
    tpu.vector_store %arg5[%c0_57, %c0_58, %c48, %c0_59], %90 {strides = array<i32>} : memref<1x1x128x16xbf16, #tpu.memory_space<vmem>>, vector<1x1x16x16xbf16>,
    %c0_60 = arith.constant 0 : index
    %c0_61 = arith.constant 0 : index
    %c128 = arith.constant 128 : index
    %c0_62 = arith.constant 0 : index
    %91 = vector.load %arg2[%c0_60, %c0_61, %c128, %c0_62] : memref<1x1x288x12xbf16, #tpu.memory_space<vmem>>, vector<1x1x64x12xbf16>
    %92 = vector.shape_cast %91 : vector<1x1x64x12xbf16> to vector<64x12xbf16>
    %c0_63 = arith.constant 0 : index
    %c0_64 = arith.constant 0 : index
    %c0_65 = arith.constant 0 : index
    %93 = vector.load %arg3[%c0_63, %c0_64, %c0_65] : memref<3x12x32xbf16, #tpu.memory_space<vmem>>, vector<1x12x32xbf16>
    %94 = vector.shape_cast %93 : vector<1x12x32xbf16> to vector<12x32xbf16>
    %cst_66 = arith.constant dense<0.000000e+00> : vector<64x32xf32>
    %95 = tpu.matmul %92, %94, %cst_66 {dimension_numbers = #tpu.dot_dimension_numbers<[1], [0], [0], [1], [0, 0, 1, 1], [], []>} : vector<64x12xbf16>, vector<12x32xbf16>, vector<64x32xf32> -> vector<64x32xf32>
    %c0_67 = arith.constant 0 : index
    %c0_68 = arith.constant 0 : index
    %c144 = arith.constant 144 : index
    %c0_69 = arith.constant 0 : index
    %96 = vector.load %arg2[%c0_67, %c0_68, %c144, %c0_69] : memref<1x1x288x12xbf16, #tpu.memory_space<vmem>>, vector<1x1x64x12xbf16>
    %97 = vector.shape_cast %96 : vector<1x1x64x12xbf16> to vector<64x12xbf16>
    %c1_70 = arith.constant 1 : index
    %c0_71 = arith.constant 0 : index
    %c0_72 = arith.constant 0 : index
    %98 = vector.load %arg3[%c1_70, %c0_71, %c0_72] : memref<3x12x32xbf16, #tpu.memory_space<vmem>>, vector<1x12x32xbf16>
    %99 = vector.shape_cast %98 : vector<1x12x32xbf16> to vector<12x32xbf16>
    %cst_73 = arith.constant dense<0.000000e+00> : vector<64x32xf32>
    %100 = tpu.matmul %97, %99, %cst_73 {dimension_numbers = #tpu.dot_dimension_numbers<[1], [0], [0], [1], [0, 0, 1, 1], [], []>} : vector<64x12xbf16>, vector<12x32xbf16>, vector<64x32xf32> -> vector<64x32xf32>
    %101 = arith.addf %95, %100 : vector<64x32xf32>
    %c0_74 = arith.constant 0 : index
    %c0_75 = arith.constant 0 : index
    %c160 = arith.constant 160 : index
    %c0_76 = arith.constant 0 : index
    %102 = vector.load %arg2[%c0_74, %c0_75, %c160, %c0_76] : memref<1x1x288x12xbf16, #tpu.memory_space<vmem>>, vector<1x1x64x12xbf16>
    %103 = vector.shape_cast %102 : vector<1x1x64x12xbf16> to vector<64x12xbf16>
    %c2_77 = arith.constant 2 : index
    %c0_78 = arith.constant 0 : index
    %c0_79 = arith.constant 0 : index
    %104 = vector.load %arg3[%c2_77, %c0_78, %c0_79] : memref<3x12x32xbf16, #tpu.memory_space<vmem>>, vector<1x12x32xbf16>
    %105 = vector.shape_cast %104 : vector<1x12x32xbf16> to vector<12x32xbf16>
    %cst_80 = arith.constant dense<0.000000e+00> : vector<64x32xf32>
    %106 = tpu.matmul %103, %105, %cst_80 {dimension_numbers = #tpu.dot_dimension_numbers<[1], [0], [0], [1], [0, 0, 1, 1], [], []>} : vector<64x12xbf16>, vector<12x32xbf16>, vector<64x32xf32> -> vector<64x32xf32>
    %107 = arith.addf %101, %106 : vector<64x32xf32>
    %108 = vector.extract_strided_slice %107 {offsets = [0, 0], sizes = [16, 32], strides = [1, 1]} : vector<64x32xf32> to vector<16x32xf32>
    %109 = vector.extract_strided_slice %107 {offsets = [16, 0], sizes = [16, 32], strides = [1, 1]} : vector<64x32xf32> to vector<16x32xf32>
    %110 = arith.maximumf %108, %109 : vector<16x32xf32>
    %111 = vector.extract_strided_slice %110 {offsets = [0, 0], sizes = [16, 16], strides = [1, 1]} : vector<16x32xf32> to vector<16x16xf32>
    %112 = vector.extract_strided_slice %110 {offsets = [0, 16], sizes = [16, 16], strides = [1, 1]} : vector<16x32xf32> to vector<16x16xf32>
    %113 = arith.maximumf %111, %112 : vector<16x16xf32>
    %114 = vector.broadcast %0 : vector<1x16xf32> to vector<16x16xf32>
    %115 = arith.addf %113, %114 : vector<16x16xf32>
    %cst_81 = arith.constant 0.000000e+00 : f32
    %116 = vector.broadcast %cst_81 : f32 to vector<16x16xf32>
    %117 = arith.maximumf %115, %116 : vector<16x16xf32>
    %118 = arith.truncf %117 : vector<16x16xf32> to vector<16x16xbf16>
    %c0_82 = arith.constant 0 : index
    %c0_83 = arith.constant 0 : index
    %c64_84 = arith.constant 64 : index
    %c0_85 = arith.constant 0 : index
    %119 = vector.load %arg5[%c0_82, %c0_83, %c64_84, %c0_85] : memref<1x1x128x16xbf16, #tpu.memory_space<vmem>>, vector<1x1x16x16xbf16>
    %120 = vector.shape_cast %119 : vector<1x1x16x16xbf16> to vector<16x16xbf16>
    %121 = vector.shape_cast %118 : vector<16x16xbf16> to vector<1x1x16x16xbf16>
    tpu.vector_store %arg5[%c0_82, %c0_83, %c64_84, %c0_85], %121 {strides = array<i32>} : memref<1x1x128x16xbf16, #tpu.memory_space<vmem>>, vector<1x1x16x16xbf16>,
    %122 = vector.extract_strided_slice %107 {offsets = [32, 0], sizes = [16, 32], strides = [1, 1]} : vector<64x32xf32> to vector<16x32xf32>
    %123 = vector.extract_strided_slice %107 {offsets = [48, 0], sizes = [16, 32], strides = [1, 1]} : vector<64x32xf32> to vector<16x32xf32>
    %124 = arith.maximumf %122, %123 : vector<16x32xf32>
    %125 = vector.extract_strided_slice %124 {offsets = [0, 0], sizes = [16, 16], strides = [1, 1]} : vector<16x32xf32> to vector<16x16xf32>
    %126 = vector.extract_strided_slice %124 {offsets = [0, 16], sizes = [16, 16], strides = [1, 1]} : vector<16x32xf32> to vector<16x16xf32>
    %127 = arith.maximumf %125, %126 : vector<16x16xf32>
    %128 = vector.broadcast %0 : vector<1x16xf32> to vector<16x16xf32>
    %129 = arith.addf %127, %128 : vector<16x16xf32>
    %cst_86 = arith.constant 0.000000e+00 : f32
    %130 = vector.broadcast %cst_86 : f32 to vector<16x16xf32>
    %131 = arith.maximumf %129, %130 : vector<16x16xf32>
    %132 = arith.truncf %131 : vector<16x16xf32> to vector<16x16xbf16>
    %c0_87 = arith.constant 0 : index
    %c0_88 = arith.constant 0 : index
    %c80_89 = arith.constant 80 : index
    %c0_90 = arith.constant 0 : index
    %133 = vector.load %arg5[%c0_87, %c0_88, %c80_89, %c0_90] : memref<1x1x128x16xbf16, #tpu.memory_space<vmem>>, vector<1x1x16x16xbf16>
    %134 = vector.shape_cast %133 : vector<1x1x16x16xbf16> to vector<16x16xbf16>
    %135 = vector.shape_cast %132 : vector<16x16xbf16> to vector<1x1x16x16xbf16>
    tpu.vector_store %arg5[%c0_87, %c0_88, %c80_89, %c0_90], %135 {strides = array<i32>} : memref<1x1x128x16xbf16, #tpu.memory_space<vmem>>, vector<1x1x16x16xbf16>,
    %c0_91 = arith.constant 0 : index
    %c0_92 = arith.constant 0 : index
    %c192 = arith.constant 192 : index
    %c0_93 = arith.constant 0 : index
    %136 = vector.load %arg2[%c0_91, %c0_92, %c192, %c0_93] : memref<1x1x288x12xbf16, #tpu.memory_space<vmem>>, vector<1x1x64x12xbf16>
    %137 = vector.shape_cast %136 : vector<1x1x64x12xbf16> to vector<64x12xbf16>
    %c0_94 = arith.constant 0 : index
    %c0_95 = arith.constant 0 : index
    %c0_96 = arith.constant 0 : index
    %138 = vector.load %arg3[%c0_94, %c0_95, %c0_96] : memref<3x12x32xbf16, #tpu.memory_space<vmem>>, vector<1x12x32xbf16>
    %139 = vector.shape_cast %138 : vector<1x12x32xbf16> to vector<12x32xbf16>
    %cst_97 = arith.constant dense<0.000000e+00> : vector<64x32xf32>
    %140 = tpu.matmul %137, %139, %cst_97 {dimension_numbers = #tpu.dot_dimension_numbers<[1], [0], [0], [1], [0, 0, 1, 1], [], []>} : vector<64x12xbf16>, vector<12x32xbf16>, vector<64x32xf32> -> vector<64x32xf32>
    %c0_98 = arith.constant 0 : index
    %c0_99 = arith.constant 0 : index
    %c208 = arith.constant 208 : index
    %c0_100 = arith.constant 0 : index
    %141 = vector.load %arg2[%c0_98, %c0_99, %c208, %c0_100] : memref<1x1x288x12xbf16, #tpu.memory_space<vmem>>, vector<1x1x64x12xbf16>
    %142 = vector.shape_cast %141 : vector<1x1x64x12xbf16> to vector<64x12xbf16>
    %c1_101 = arith.constant 1 : index
    %c0_102 = arith.constant 0 : index
    %c0_103 = arith.constant 0 : index
    %143 = vector.load %arg3[%c1_101, %c0_102, %c0_103] : memref<3x12x32xbf16, #tpu.memory_space<vmem>>, vector<1x12x32xbf16>
    %144 = vector.shape_cast %143 : vector<1x12x32xbf16> to vector<12x32xbf16>
    %cst_104 = arith.constant dense<0.000000e+00> : vector<64x32xf32>
    %145 = tpu.matmul %142, %144, %cst_104 {dimension_numbers = #tpu.dot_dimension_numbers<[1], [0], [0], [1], [0, 0, 1, 1], [], []>} : vector<64x12xbf16>, vector<12x32xbf16>, vector<64x32xf32> -> vector<64x32xf32>
    %146 = arith.addf %140, %145 : vector<64x32xf32>
    %c0_105 = arith.constant 0 : index
    %c0_106 = arith.constant 0 : index
    %c224 = arith.constant 224 : index
    %c0_107 = arith.constant 0 : index
    %147 = vector.load %arg2[%c0_105, %c0_106, %c224, %c0_107] : memref<1x1x288x12xbf16, #tpu.memory_space<vmem>>, vector<1x1x64x12xbf16>
    %148 = vector.shape_cast %147 : vector<1x1x64x12xbf16> to vector<64x12xbf16>
    %c2_108 = arith.constant 2 : index
    %c0_109 = arith.constant 0 : index
    %c0_110 = arith.constant 0 : index
    %149 = vector.load %arg3[%c2_108, %c0_109, %c0_110] : memref<3x12x32xbf16, #tpu.memory_space<vmem>>, vector<1x12x32xbf16>
    %150 = vector.shape_cast %149 : vector<1x12x32xbf16> to vector<12x32xbf16>
    %cst_111 = arith.constant dense<0.000000e+00> : vector<64x32xf32>
    %151 = tpu.matmul %148, %150, %cst_111 {dimension_numbers = #tpu.dot_dimension_numbers<[1], [0], [0], [1], [0, 0, 1, 1], [], []>} : vector<64x12xbf16>, vector<12x32xbf16>, vector<64x32xf32> -> vector<64x32xf32>
    %152 = arith.addf %146, %151 : vector<64x32xf32>
    %153 = vector.extract_strided_slice %152 {offsets = [0, 0], sizes = [16, 32], strides = [1, 1]} : vector<64x32xf32> to vector<16x32xf32>
    %154 = vector.extract_strided_slice %152 {offsets = [16, 0], sizes = [16, 32], strides = [1, 1]} : vector<64x32xf32> to vector<16x32xf32>
    %155 = arith.maximumf %153, %154 : vector<16x32xf32>
    %156 = vector.extract_strided_slice %155 {offsets = [0, 0], sizes = [16, 16], strides = [1, 1]} : vector<16x32xf32> to vector<16x16xf32>
    %157 = vector.extract_strided_slice %155 {offsets = [0, 16], sizes = [16, 16], strides = [1, 1]} : vector<16x32xf32> to vector<16x16xf32>
    %158 = arith.maximumf %156, %157 : vector<16x16xf32>
    %159 = vector.broadcast %0 : vector<1x16xf32> to vector<16x16xf32>
    %160 = arith.addf %158, %159 : vector<16x16xf32>
    %cst_112 = arith.constant 0.000000e+00 : f32
    %161 = vector.broadcast %cst_112 : f32 to vector<16x16xf32>
    %162 = arith.maximumf %160, %161 : vector<16x16xf32>
    %163 = arith.truncf %162 : vector<16x16xf32> to vector<16x16xbf16>
    %c0_113 = arith.constant 0 : index
    %c0_114 = arith.constant 0 : index
    %c96_115 = arith.constant 96 : index
    %c0_116 = arith.constant 0 : index
    %164 = vector.load %arg5[%c0_113, %c0_114, %c96_115, %c0_116] : memref<1x1x128x16xbf16, #tpu.memory_space<vmem>>, vector<1x1x16x16xbf16>
    %165 = vector.shape_cast %164 : vector<1x1x16x16xbf16> to vector<16x16xbf16>
    %166 = vector.shape_cast %163 : vector<16x16xbf16> to vector<1x1x16x16xbf16>
    tpu.vector_store %arg5[%c0_113, %c0_114, %c96_115, %c0_116], %166 {strides = array<i32>} : memref<1x1x128x16xbf16, #tpu.memory_space<vmem>>, vector<1x1x16x16xbf16>,
    %167 = vector.extract_strided_slice %152 {offsets = [32, 0], sizes = [16, 32], strides = [1, 1]} : vector<64x32xf32> to vector<16x32xf32>
    %168 = vector.extract_strided_slice %152 {offsets = [48, 0], sizes = [16, 32], strides = [1, 1]} : vector<64x32xf32> to vector<16x32xf32>
    %169 = arith.maximumf %167, %168 : vector<16x32xf32>
    %170 = vector.extract_strided_slice %169 {offsets = [0, 0], sizes = [16, 16], strides = [1, 1]} : vector<16x32xf32> to vector<16x16xf32>
    %171 = vector.extract_strided_slice %169 {offsets = [0, 16], sizes = [16, 16], strides = [1, 1]} : vector<16x32xf32> to vector<16x16xf32>
    %172 = arith.maximumf %170, %171 : vector<16x16xf32>
    %173 = vector.broadcast %0 : vector<1x16xf32> to vector<16x16xf32>
    %174 = arith.addf %172, %173 : vector<16x16xf32>
    %cst_117 = arith.constant 0.000000e+00 : f32
    %175 = vector.broadcast %cst_117 : f32 to vector<16x16xf32>
    %176 = arith.maximumf %174, %175 : vector<16x16xf32>
    %177 = arith.truncf %176 : vector<16x16xf32> to vector<16x16xbf16>
    %c0_118 = arith.constant 0 : index
    %c0_119 = arith.constant 0 : index
    %c112 = arith.constant 112 : index
    %c0_120 = arith.constant 0 : index
    %178 = vector.load %arg5[%c0_118, %c0_119, %c112, %c0_120] : memref<1x1x128x16xbf16, #tpu.memory_space<vmem>>, vector<1x1x16x16xbf16>
    %179 = vector.shape_cast %178 : vector<1x1x16x16xbf16> to vector<16x16xbf16>
    %180 = vector.shape_cast %177 : vector<16x16xbf16> to vector<1x1x16x16xbf16>
    tpu.vector_store %arg5[%c0_118, %c0_119, %c112, %c0_120], %180 {strides = array<i32>} : memref<1x1x128x16xbf16, #tpu.memory_space<vmem>>, vector<1x1x16x16xbf16>,
    return
  }
  func.func @transform_0(%arg0: i32, %arg1: i32) -> (i32, i32, i32, i32) {
    %c0_i32 = arith.constant 0 : i32
    %c0_i32_0 = arith.constant 0 : i32
    %c0_i32_1 = arith.constant 0 : i32
    return %arg0, %arg1, %c0_i32, %c0_i32_0 : i32, i32, i32, i32
  }
  func.func @transform_1(%arg0: i32, %arg1: i32) -> (i32, i32, i32) {
    %c0_i32 = arith.constant 0 : i32
    %c0_i32_0 = arith.constant 0 : i32
    %c0_i32_1 = arith.constant 0 : i32
    %c0_i32_2 = arith.constant 0 : i32
    return %c0_i32, %c0_i32_0, %c0_i32_1 : i32, i32, i32
  }
  func.func @transform_2(%arg0: i32, %arg1: i32) -> (i32, i32) {
    %c0_i32 = arith.constant 0 : i32
    %c0_i32_0 = arith.constant 0 : i32
    %c0_i32_1 = arith.constant 0 : i32
    return %c0_i32, %c0_i32_0 : i32, i32
  }
  func.func @transform_3(%arg0: i32, %arg1: i32) -> (i32, i32, i32, i32) {
    %c0_i32 = arith.constant 0 : i32
    %c0_i32_0 = arith.constant 0 : i32
    %c0_i32_1 = arith.constant 0 : i32
    return %arg0, %arg1, %c0_i32, %c0_i32_0 : i32, i32, i32, i32
  }
}

module attributes {stable_mosaic.version = 11 : i64} {
  func.func @_conv_relu_pool_kernel(%arg0: i32, %arg1: i32, %arg2: memref<1x1x80x192xbf16, #tpu.memory_space<vmem>>, %arg3: memref<3x192x64xbf16, #tpu.memory_space<vmem>>, %arg4: memref<1x32xf32, #tpu.memory_space<vmem>>, %arg5: memref<1x1x32x32xbf16, #tpu.memory_space<vmem>>) attributes {dimension_semantics = [#tpu.dimension_semantics<parallel>, #tpu.dimension_semantics<parallel>], iteration_bounds = array<i64: 2, 4>, scalar_prefetch = 0 : i64, scratch_operands = 0 : i64, tpu.core_type = #tpu.core_type<tc>, window_params = [{transform_indices = @transform_0, window_bounds = array<i64: 1, 1, 80, 192>}, {pipeline_mode = #tpu.pipeline_mode<synchronous>, transform_indices = @transform_1, window_bounds = array<i64: 3, 192, 64>}, {pipeline_mode = #tpu.pipeline_mode<synchronous>, transform_indices = @transform_2, window_bounds = array<i64: 1, 32>}, {transform_indices = @transform_3, window_bounds = array<i64: 1, 1, 32, 32>}]} {
    %c0 = arith.constant 0 : index
    %c0_0 = arith.constant 0 : index
    %0 = vector.load %arg4[%c0, %c0_0] : memref<1x32xf32, #tpu.memory_space<vmem>>, vector<1x32xf32>
    %c0_1 = arith.constant 0 : index
    %c0_2 = arith.constant 0 : index
    %c0_3 = arith.constant 0 : index
    %c0_4 = arith.constant 0 : index
    %1 = vector.load %arg2[%c0_1, %c0_2, %c0_3, %c0_4] : memref<1x1x80x192xbf16, #tpu.memory_space<vmem>>, vector<1x1x32x192xbf16>
    %2 = vector.shape_cast %1 : vector<1x1x32x192xbf16> to vector<32x192xbf16>
    %c0_5 = arith.constant 0 : index
    %c0_6 = arith.constant 0 : index
    %c0_7 = arith.constant 0 : index
    %3 = vector.load %arg3[%c0_5, %c0_6, %c0_7] : memref<3x192x64xbf16, #tpu.memory_space<vmem>>, vector<1x192x64xbf16>
    %4 = vector.shape_cast %3 : vector<1x192x64xbf16> to vector<192x64xbf16>
    %cst = arith.constant dense<0.000000e+00> : vector<32x64xf32>
    %5 = tpu.matmul %2, %4, %cst {dimension_numbers = #tpu.dot_dimension_numbers<[1], [0], [0], [1], [0, 0, 1, 1], [], []>} : vector<32x192xbf16>, vector<192x64xbf16>, vector<32x64xf32> -> vector<32x64xf32>
    %c0_8 = arith.constant 0 : index
    %c0_9 = arith.constant 0 : index
    %c8 = arith.constant 8 : index
    %c0_10 = arith.constant 0 : index
    %6 = vector.load %arg2[%c0_8, %c0_9, %c8, %c0_10] : memref<1x1x80x192xbf16, #tpu.memory_space<vmem>>, vector<1x1x32x192xbf16>
    %7 = vector.shape_cast %6 : vector<1x1x32x192xbf16> to vector<32x192xbf16>
    %c1 = arith.constant 1 : index
    %c0_11 = arith.constant 0 : index
    %c0_12 = arith.constant 0 : index
    %8 = vector.load %arg3[%c1, %c0_11, %c0_12] : memref<3x192x64xbf16, #tpu.memory_space<vmem>>, vector<1x192x64xbf16>
    %9 = vector.shape_cast %8 : vector<1x192x64xbf16> to vector<192x64xbf16>
    %cst_13 = arith.constant dense<0.000000e+00> : vector<32x64xf32>
    %10 = tpu.matmul %7, %9, %cst_13 {dimension_numbers = #tpu.dot_dimension_numbers<[1], [0], [0], [1], [0, 0, 1, 1], [], []>} : vector<32x192xbf16>, vector<192x64xbf16>, vector<32x64xf32> -> vector<32x64xf32>
    %11 = arith.addf %5, %10 : vector<32x64xf32>
    %c0_14 = arith.constant 0 : index
    %c0_15 = arith.constant 0 : index
    %c16 = arith.constant 16 : index
    %c0_16 = arith.constant 0 : index
    %12 = vector.load %arg2[%c0_14, %c0_15, %c16, %c0_16] : memref<1x1x80x192xbf16, #tpu.memory_space<vmem>>, vector<1x1x32x192xbf16>
    %13 = vector.shape_cast %12 : vector<1x1x32x192xbf16> to vector<32x192xbf16>
    %c2 = arith.constant 2 : index
    %c0_17 = arith.constant 0 : index
    %c0_18 = arith.constant 0 : index
    %14 = vector.load %arg3[%c2, %c0_17, %c0_18] : memref<3x192x64xbf16, #tpu.memory_space<vmem>>, vector<1x192x64xbf16>
    %15 = vector.shape_cast %14 : vector<1x192x64xbf16> to vector<192x64xbf16>
    %cst_19 = arith.constant dense<0.000000e+00> : vector<32x64xf32>
    %16 = tpu.matmul %13, %15, %cst_19 {dimension_numbers = #tpu.dot_dimension_numbers<[1], [0], [0], [1], [0, 0, 1, 1], [], []>} : vector<32x192xbf16>, vector<192x64xbf16>, vector<32x64xf32> -> vector<32x64xf32>
    %17 = arith.addf %11, %16 : vector<32x64xf32>
    %18 = vector.extract_strided_slice %17 {offsets = [0, 0], sizes = [8, 64], strides = [1, 1]} : vector<32x64xf32> to vector<8x64xf32>
    %19 = vector.extract_strided_slice %17 {offsets = [8, 0], sizes = [8, 64], strides = [1, 1]} : vector<32x64xf32> to vector<8x64xf32>
    %20 = arith.maximumf %18, %19 : vector<8x64xf32>
    %21 = vector.extract_strided_slice %20 {offsets = [0, 0], sizes = [8, 32], strides = [1, 1]} : vector<8x64xf32> to vector<8x32xf32>
    %22 = vector.extract_strided_slice %20 {offsets = [0, 32], sizes = [8, 32], strides = [1, 1]} : vector<8x64xf32> to vector<8x32xf32>
    %23 = arith.maximumf %21, %22 : vector<8x32xf32>
    %24 = vector.broadcast %0 : vector<1x32xf32> to vector<8x32xf32>
    %25 = arith.addf %23, %24 : vector<8x32xf32>
    %cst_20 = arith.constant 0.000000e+00 : f32
    %26 = vector.broadcast %cst_20 : f32 to vector<8x32xf32>
    %27 = arith.maximumf %25, %26 : vector<8x32xf32>
    %28 = arith.truncf %27 : vector<8x32xf32> to vector<8x32xbf16>
    %c0_21 = arith.constant 0 : index
    %c0_22 = arith.constant 0 : index
    %c0_23 = arith.constant 0 : index
    %c0_24 = arith.constant 0 : index
    %29 = vector.load %arg5[%c0_21, %c0_22, %c0_23, %c0_24] : memref<1x1x32x32xbf16, #tpu.memory_space<vmem>>, vector<1x1x8x32xbf16>
    %30 = vector.shape_cast %29 : vector<1x1x8x32xbf16> to vector<8x32xbf16>
    %31 = vector.shape_cast %28 : vector<8x32xbf16> to vector<1x1x8x32xbf16>
    tpu.vector_store %arg5[%c0_21, %c0_22, %c0_23, %c0_24], %31 {strides = array<i32>} : memref<1x1x32x32xbf16, #tpu.memory_space<vmem>>, vector<1x1x8x32xbf16>,
    %32 = vector.extract_strided_slice %17 {offsets = [16, 0], sizes = [8, 64], strides = [1, 1]} : vector<32x64xf32> to vector<8x64xf32>
    %33 = vector.extract_strided_slice %17 {offsets = [24, 0], sizes = [8, 64], strides = [1, 1]} : vector<32x64xf32> to vector<8x64xf32>
    %34 = arith.maximumf %32, %33 : vector<8x64xf32>
    %35 = vector.extract_strided_slice %34 {offsets = [0, 0], sizes = [8, 32], strides = [1, 1]} : vector<8x64xf32> to vector<8x32xf32>
    %36 = vector.extract_strided_slice %34 {offsets = [0, 32], sizes = [8, 32], strides = [1, 1]} : vector<8x64xf32> to vector<8x32xf32>
    %37 = arith.maximumf %35, %36 : vector<8x32xf32>
    %38 = vector.broadcast %0 : vector<1x32xf32> to vector<8x32xf32>
    %39 = arith.addf %37, %38 : vector<8x32xf32>
    %cst_25 = arith.constant 0.000000e+00 : f32
    %40 = vector.broadcast %cst_25 : f32 to vector<8x32xf32>
    %41 = arith.maximumf %39, %40 : vector<8x32xf32>
    %42 = arith.truncf %41 : vector<8x32xf32> to vector<8x32xbf16>
    %c0_26 = arith.constant 0 : index
    %c0_27 = arith.constant 0 : index
    %c8_28 = arith.constant 8 : index
    %c0_29 = arith.constant 0 : index
    %43 = vector.load %arg5[%c0_26, %c0_27, %c8_28, %c0_29] : memref<1x1x32x32xbf16, #tpu.memory_space<vmem>>, vector<1x1x8x32xbf16>
    %44 = vector.shape_cast %43 : vector<1x1x8x32xbf16> to vector<8x32xbf16>
    %45 = vector.shape_cast %42 : vector<8x32xbf16> to vector<1x1x8x32xbf16>
    tpu.vector_store %arg5[%c0_26, %c0_27, %c8_28, %c0_29], %45 {strides = array<i32>} : memref<1x1x32x32xbf16, #tpu.memory_space<vmem>>, vector<1x1x8x32xbf16>,
    %c0_30 = arith.constant 0 : index
    %c0_31 = arith.constant 0 : index
    %c32 = arith.constant 32 : index
    %c0_32 = arith.constant 0 : index
    %46 = vector.load %arg2[%c0_30, %c0_31, %c32, %c0_32] : memref<1x1x80x192xbf16, #tpu.memory_space<vmem>>, vector<1x1x32x192xbf16>
    %47 = vector.shape_cast %46 : vector<1x1x32x192xbf16> to vector<32x192xbf16>
    %c0_33 = arith.constant 0 : index
    %c0_34 = arith.constant 0 : index
    %c0_35 = arith.constant 0 : index
    %48 = vector.load %arg3[%c0_33, %c0_34, %c0_35] : memref<3x192x64xbf16, #tpu.memory_space<vmem>>, vector<1x192x64xbf16>
    %49 = vector.shape_cast %48 : vector<1x192x64xbf16> to vector<192x64xbf16>
    %cst_36 = arith.constant dense<0.000000e+00> : vector<32x64xf32>
    %50 = tpu.matmul %47, %49, %cst_36 {dimension_numbers = #tpu.dot_dimension_numbers<[1], [0], [0], [1], [0, 0, 1, 1], [], []>} : vector<32x192xbf16>, vector<192x64xbf16>, vector<32x64xf32> -> vector<32x64xf32>
    %c0_37 = arith.constant 0 : index
    %c0_38 = arith.constant 0 : index
    %c40 = arith.constant 40 : index
    %c0_39 = arith.constant 0 : index
    %51 = vector.load %arg2[%c0_37, %c0_38, %c40, %c0_39] : memref<1x1x80x192xbf16, #tpu.memory_space<vmem>>, vector<1x1x32x192xbf16>
    %52 = vector.shape_cast %51 : vector<1x1x32x192xbf16> to vector<32x192xbf16>
    %c1_40 = arith.constant 1 : index
    %c0_41 = arith.constant 0 : index
    %c0_42 = arith.constant 0 : index
    %53 = vector.load %arg3[%c1_40, %c0_41, %c0_42] : memref<3x192x64xbf16, #tpu.memory_space<vmem>>, vector<1x192x64xbf16>
    %54 = vector.shape_cast %53 : vector<1x192x64xbf16> to vector<192x64xbf16>
    %cst_43 = arith.constant dense<0.000000e+00> : vector<32x64xf32>
    %55 = tpu.matmul %52, %54, %cst_43 {dimension_numbers = #tpu.dot_dimension_numbers<[1], [0], [0], [1], [0, 0, 1, 1], [], []>} : vector<32x192xbf16>, vector<192x64xbf16>, vector<32x64xf32> -> vector<32x64xf32>
    %56 = arith.addf %50, %55 : vector<32x64xf32>
    %c0_44 = arith.constant 0 : index
    %c0_45 = arith.constant 0 : index
    %c48 = arith.constant 48 : index
    %c0_46 = arith.constant 0 : index
    %57 = vector.load %arg2[%c0_44, %c0_45, %c48, %c0_46] : memref<1x1x80x192xbf16, #tpu.memory_space<vmem>>, vector<1x1x32x192xbf16>
    %58 = vector.shape_cast %57 : vector<1x1x32x192xbf16> to vector<32x192xbf16>
    %c2_47 = arith.constant 2 : index
    %c0_48 = arith.constant 0 : index
    %c0_49 = arith.constant 0 : index
    %59 = vector.load %arg3[%c2_47, %c0_48, %c0_49] : memref<3x192x64xbf16, #tpu.memory_space<vmem>>, vector<1x192x64xbf16>
    %60 = vector.shape_cast %59 : vector<1x192x64xbf16> to vector<192x64xbf16>
    %cst_50 = arith.constant dense<0.000000e+00> : vector<32x64xf32>
    %61 = tpu.matmul %58, %60, %cst_50 {dimension_numbers = #tpu.dot_dimension_numbers<[1], [0], [0], [1], [0, 0, 1, 1], [], []>} : vector<32x192xbf16>, vector<192x64xbf16>, vector<32x64xf32> -> vector<32x64xf32>
    %62 = arith.addf %56, %61 : vector<32x64xf32>
    %63 = vector.extract_strided_slice %62 {offsets = [0, 0], sizes = [8, 64], strides = [1, 1]} : vector<32x64xf32> to vector<8x64xf32>
    %64 = vector.extract_strided_slice %62 {offsets = [8, 0], sizes = [8, 64], strides = [1, 1]} : vector<32x64xf32> to vector<8x64xf32>
    %65 = arith.maximumf %63, %64 : vector<8x64xf32>
    %66 = vector.extract_strided_slice %65 {offsets = [0, 0], sizes = [8, 32], strides = [1, 1]} : vector<8x64xf32> to vector<8x32xf32>
    %67 = vector.extract_strided_slice %65 {offsets = [0, 32], sizes = [8, 32], strides = [1, 1]} : vector<8x64xf32> to vector<8x32xf32>
    %68 = arith.maximumf %66, %67 : vector<8x32xf32>
    %69 = vector.broadcast %0 : vector<1x32xf32> to vector<8x32xf32>
    %70 = arith.addf %68, %69 : vector<8x32xf32>
    %cst_51 = arith.constant 0.000000e+00 : f32
    %71 = vector.broadcast %cst_51 : f32 to vector<8x32xf32>
    %72 = arith.maximumf %70, %71 : vector<8x32xf32>
    %73 = arith.truncf %72 : vector<8x32xf32> to vector<8x32xbf16>
    %c0_52 = arith.constant 0 : index
    %c0_53 = arith.constant 0 : index
    %c16_54 = arith.constant 16 : index
    %c0_55 = arith.constant 0 : index
    %74 = vector.load %arg5[%c0_52, %c0_53, %c16_54, %c0_55] : memref<1x1x32x32xbf16, #tpu.memory_space<vmem>>, vector<1x1x8x32xbf16>
    %75 = vector.shape_cast %74 : vector<1x1x8x32xbf16> to vector<8x32xbf16>
    %76 = vector.shape_cast %73 : vector<8x32xbf16> to vector<1x1x8x32xbf16>
    tpu.vector_store %arg5[%c0_52, %c0_53, %c16_54, %c0_55], %76 {strides = array<i32>} : memref<1x1x32x32xbf16, #tpu.memory_space<vmem>>, vector<1x1x8x32xbf16>,
    %77 = vector.extract_strided_slice %62 {offsets = [16, 0], sizes = [8, 64], strides = [1, 1]} : vector<32x64xf32> to vector<8x64xf32>
    %78 = vector.extract_strided_slice %62 {offsets = [24, 0], sizes = [8, 64], strides = [1, 1]} : vector<32x64xf32> to vector<8x64xf32>
    %79 = arith.maximumf %77, %78 : vector<8x64xf32>
    %80 = vector.extract_strided_slice %79 {offsets = [0, 0], sizes = [8, 32], strides = [1, 1]} : vector<8x64xf32> to vector<8x32xf32>
    %81 = vector.extract_strided_slice %79 {offsets = [0, 32], sizes = [8, 32], strides = [1, 1]} : vector<8x64xf32> to vector<8x32xf32>
    %82 = arith.maximumf %80, %81 : vector<8x32xf32>
    %83 = vector.broadcast %0 : vector<1x32xf32> to vector<8x32xf32>
    %84 = arith.addf %82, %83 : vector<8x32xf32>
    %cst_56 = arith.constant 0.000000e+00 : f32
    %85 = vector.broadcast %cst_56 : f32 to vector<8x32xf32>
    %86 = arith.maximumf %84, %85 : vector<8x32xf32>
    %87 = arith.truncf %86 : vector<8x32xf32> to vector<8x32xbf16>
    %c0_57 = arith.constant 0 : index
    %c0_58 = arith.constant 0 : index
    %c24 = arith.constant 24 : index
    %c0_59 = arith.constant 0 : index
    %88 = vector.load %arg5[%c0_57, %c0_58, %c24, %c0_59] : memref<1x1x32x32xbf16, #tpu.memory_space<vmem>>, vector<1x1x8x32xbf16>
    %89 = vector.shape_cast %88 : vector<1x1x8x32xbf16> to vector<8x32xbf16>
    %90 = vector.shape_cast %87 : vector<8x32xbf16> to vector<1x1x8x32xbf16>
    tpu.vector_store %arg5[%c0_57, %c0_58, %c24, %c0_59], %90 {strides = array<i32>} : memref<1x1x32x32xbf16, #tpu.memory_space<vmem>>, vector<1x1x8x32xbf16>,
    return
  }
  func.func @transform_0(%arg0: i32, %arg1: i32) -> (i32, i32, i32, i32) {
    %c0_i32 = arith.constant 0 : i32
    %c0_i32_0 = arith.constant 0 : i32
    %c0_i32_1 = arith.constant 0 : i32
    return %arg0, %arg1, %c0_i32, %c0_i32_0 : i32, i32, i32, i32
  }
  func.func @transform_1(%arg0: i32, %arg1: i32) -> (i32, i32, i32) {
    %c0_i32 = arith.constant 0 : i32
    %c0_i32_0 = arith.constant 0 : i32
    %c0_i32_1 = arith.constant 0 : i32
    %c0_i32_2 = arith.constant 0 : i32
    return %c0_i32, %c0_i32_0, %c0_i32_1 : i32, i32, i32
  }
  func.func @transform_2(%arg0: i32, %arg1: i32) -> (i32, i32) {
    %c0_i32 = arith.constant 0 : i32
    %c0_i32_0 = arith.constant 0 : i32
    %c0_i32_1 = arith.constant 0 : i32
    return %c0_i32, %c0_i32_0 : i32, i32
  }
  func.func @transform_3(%arg0: i32, %arg1: i32) -> (i32, i32, i32, i32) {
    %c0_i32 = arith.constant 0 : i32
    %c0_i32_0 = arith.constant 0 : i32
    %c0_i32_1 = arith.constant 0 : i32
    return %arg0, %arg1, %c0_i32, %c0_i32_0 : i32, i32, i32, i32
  }
}

module attributes {stable_mosaic.version = 11 : i64} {
  func.func @_fc_head_kernel(%arg0: i32, %arg1: i32, %arg2: memref<2x4096xbf16, #tpu.memory_space<vmem>>, %arg3: memref<1x4096x64xbf16, #tpu.memory_space<vmem>>, %arg4: memref<1x1x64xf32, #tpu.memory_space<vmem>>, %arg5: memref<1x64x2xbf16, #tpu.memory_space<vmem>>, %arg6: memref<1x2x2xf32, #tpu.memory_space<vmem>>, %arg7: memref<2x64xf32, #tpu.memory_space<vmem>>) attributes {dimension_semantics = [#tpu.dimension_semantics<parallel>, #tpu.dimension_semantics<arbitrary>], iteration_bounds = array<i64: 2, 1>, scalar_prefetch = 0 : i64, scratch_operands = 1 : i64, tpu.core_type = #tpu.core_type<tc>, window_params = [{transform_indices = @transform_0, window_bounds = array<i64: 2, 4096>}, {transform_indices = @transform_1, window_bounds = array<i64: 1, 4096, 64>}, {transform_indices = @transform_2, window_bounds = array<i64: 1, 1, 64>}, {transform_indices = @transform_3, window_bounds = array<i64: 1, 64, 2>}, {transform_indices = @transform_4, window_bounds = array<i64: 1, 2, 2>}]} {
    %c0_i32 = arith.constant 0 : i32
    %0 = arith.cmpi eq, %arg1, %c0_i32 : i32
    %1 = arith.extui %0 : i1 to i32
    %c0_i32_0 = arith.constant 0 : i32
    %2 = arith.cmpi ne, %1, %c0_i32_0 : i32
    scf.if %2 {
      %cst_11 = arith.constant 0.000000e+00 : f32
      %13 = vector.broadcast %cst_11 : f32 to vector<2x64xf32>
      %c0_12 = arith.constant 0 : index
      %c0_13 = arith.constant 0 : index
      %14 = vector.load %arg7[%c0_12, %c0_13] : memref<2x64xf32, #tpu.memory_space<vmem>>, vector<2x64xf32>
      tpu.vector_store %arg7[%c0_12, %c0_13], %13 {strides = array<i32>} : memref<2x64xf32, #tpu.memory_space<vmem>>, vector<2x64xf32>,
    } else {
    }
    %c0 = arith.constant 0 : index
    %c0_1 = arith.constant 0 : index
    %3 = vector.load %arg7[%c0, %c0_1] : memref<2x64xf32, #tpu.memory_space<vmem>>, vector<2x64xf32>
    %c0_2 = arith.constant 0 : index
    %c0_3 = arith.constant 0 : index
    %4 = vector.load %arg2[%c0_2, %c0_3] : memref<2x4096xbf16, #tpu.memory_space<vmem>>, vector<2x4096xbf16>
    %c0_4 = arith.constant 0 : index
    %c0_5 = arith.constant 0 : index
    %c0_6 = arith.constant 0 : index
    %5 = vector.load %arg3[%c0_4, %c0_5, %c0_6] : memref<1x4096x64xbf16, #tpu.memory_space<vmem>>, vector<1x4096x64xbf16>
    %6 = vector.shape_cast %5 : vector<1x4096x64xbf16> to vector<4096x64xbf16>
    %cst = arith.constant dense<0.000000e+00> : vector<2x64xf32>
    %7 = tpu.matmul %4, %6, %cst {dimension_numbers = #tpu.dot_dimension_numbers<[1], [0], [0], [1], [0, 0, 1, 1], [], []>} : vector<2x4096xbf16>, vector<4096x64xbf16>, vector<2x64xf32> -> vector<2x64xf32>
    %8 = arith.addf %3, %7 : vector<2x64xf32>
    %c0_7 = arith.constant 0 : index
    %c0_8 = arith.constant 0 : index
    %9 = vector.load %arg7[%c0_7, %c0_8] : memref<2x64xf32, #tpu.memory_space<vmem>>, vector<2x64xf32>
    tpu.vector_store %arg7[%c0_7, %c0_8], %8 {strides = array<i32>} : memref<2x64xf32, #tpu.memory_space<vmem>>, vector<2x64xf32>,
    %c0_i32_9 = arith.constant 0 : i32
    %10 = arith.cmpi eq, %arg1, %c0_i32_9 : i32
    %11 = arith.extui %10 : i1 to i32
    %c0_i32_10 = arith.constant 0 : i32
    %12 = arith.cmpi ne, %11, %c0_i32_10 : i32
    scf.if %12 {
      %c0_11 = arith.constant 0 : index
      %c0_12 = arith.constant 0 : index
      %13 = vector.load %arg7[%c0_11, %c0_12] : memref<2x64xf32, #tpu.memory_space<vmem>>, vector<2x64xf32>
      %c0_13 = arith.constant 0 : index
      %c0_14 = arith.constant 0 : index
      %c0_15 = arith.constant 0 : index
      %14 = vector.load %arg4[%c0_13, %c0_14, %c0_15] : memref<1x1x64xf32, #tpu.memory_space<vmem>>, vector<1x1x64xf32>
      %15 = vector.shape_cast %14 : vector<1x1x64xf32> to vector<1x64xf32>
      %16 = vector.broadcast %15 : vector<1x64xf32> to vector<2x64xf32>
      %17 = arith.addf %13, %16 : vector<2x64xf32>
      %cst_16 = arith.constant 0.000000e+00 : f32
      %18 = vector.broadcast %cst_16 : f32 to vector<2x64xf32>
      %19 = arith.maximumf %17, %18 : vector<2x64xf32>
      %20 = arith.truncf %19 : vector<2x64xf32> to vector<2x64xbf16>
      %c0_17 = arith.constant 0 : index
      %c0_18 = arith.constant 0 : index
      %c0_19 = arith.constant 0 : index
      %21 = vector.load %arg5[%c0_17, %c0_18, %c0_19] : memref<1x64x2xbf16, #tpu.memory_space<vmem>>, vector<1x64x2xbf16>
      %22 = vector.shape_cast %21 : vector<1x64x2xbf16> to vector<64x2xbf16>
      %cst_20 = arith.constant dense<0.000000e+00> : vector<2x2xf32>
      %23 = tpu.matmul %20, %22, %cst_20 {dimension_numbers = #tpu.dot_dimension_numbers<[1], [0], [0], [1], [0, 0, 1, 1], [], []>} : vector<2x64xbf16>, vector<64x2xbf16>, vector<2x2xf32> -> vector<2x2xf32>
      %c0_21 = arith.constant 0 : index
      %c0_22 = arith.constant 0 : index
      %c0_23 = arith.constant 0 : index
      %24 = vector.load %arg6[%c0_21, %c0_22, %c0_23] : memref<1x2x2xf32, #tpu.memory_space<vmem>>, vector<1x2x2xf32>
      %25 = vector.shape_cast %24 : vector<1x2x2xf32> to vector<2x2xf32>
      %26 = vector.shape_cast %23 : vector<2x2xf32> to vector<1x2x2xf32>
      tpu.vector_store %arg6[%c0_21, %c0_22, %c0_23], %26 {strides = array<i32>} : memref<1x2x2xf32, #tpu.memory_space<vmem>>, vector<1x2x2xf32>,
    } else {
    }
    return
  }
  func.func @transform_0(%arg0: i32, %arg1: i32) -> (i32, i32) {
    %c0_i32 = arith.constant 0 : i32
    %c0_i32_0 = arith.constant 0 : i32
    return %c0_i32, %arg1 : i32, i32
  }
  func.func @transform_1(%arg0: i32, %arg1: i32) -> (i32, i32, i32) {
    %c0_i32 = arith.constant 0 : i32
    %c0_i32_0 = arith.constant 0 : i32
    return %arg0, %arg1, %c0_i32 : i32, i32, i32
  }
  func.func @transform_2(%arg0: i32, %arg1: i32) -> (i32, i32, i32) {
    %c0_i32 = arith.constant 0 : i32
    %c0_i32_0 = arith.constant 0 : i32
    %c0_i32_1 = arith.constant 0 : i32
    return %arg0, %c0_i32, %c0_i32_0 : i32, i32, i32
  }
  func.func @transform_3(%arg0: i32, %arg1: i32) -> (i32, i32, i32) {
    %c0_i32 = arith.constant 0 : i32
    %c0_i32_0 = arith.constant 0 : i32
    %c0_i32_1 = arith.constant 0 : i32
    return %arg0, %c0_i32, %c0_i32_0 : i32, i32, i32
  }
  func.func @transform_4(%arg0: i32, %arg1: i32) -> (i32, i32, i32) {
    %c0_i32 = arith.constant 0 : i32
    %c0_i32_0 = arith.constant 0 : i32
    %c0_i32_1 = arith.constant 0 : i32
    return %arg0, %c0_i32, %c0_i32_0 : i32, i32, i32
  }
}

</mosaic_0001>

<bundles_post_ra>
// kernel: simple3dcnn_forward.3
= control target key start
LH: loop header
LB: loop body
LE: loop exit
PB: predicated region body
PF: predicated region fallthrough
CT: control target
= control target key end

     0   :  { %s2379_s12 = smov 0   ;;  %s2381_s13 = smov 0   ;;  %s2719_s0 = inlined_call_operand.vmem [shape: bf16[2,4,288,12], index: 0, kind: input, shape index: {}]   ;;  %s2720_s1 = inlined_call_operand.vmem [shape: bf16[3,12,32], index: 1, kind: input, shape index: {}]   ;;  %s2721_s2 = inlined_call_operand.vmem [shape: f32[1,16], index: 2, kind: input, shape index: {}]   ;;  %s2722_s3 = inlined_call_operand.vmem [shape: bf16[2,4,128,16], index: 3, kind: output, shape index: {}]  }
   0x1   :  { %s2383_s14 = smov 0   ;;  %s2385_s15 = smov 0  }
   0x2   :  { %s2387_s16 = smov 0  }
   0x3 LB: > { %s22_s17 = sadd.s32 1, %s2348_s14  ;;  %s25_s18 = sadd.s32 1, %s2352_s15  ;;  %s2356_s16 = sphi %s2387_s16, %s13_s16   ;;  %s2352_s15 = sphi %s2385_s15, %s2726_s15   ;;  %s2348_s14 = sphi %s2383_s14, %s2725_s14   ;;  %s2344_s13 = sphi %s2381_s13, %s2724_s13   ;;  %s2340_s12 = sphi %s2379_s12, %s2723_s12  }
   0x4   : > { %p23_p0 = scmp.ge.s32.totalorder %s22_s17, 4  ;;  %p1819_p1 = scmp.ge.s32.totalorder %s2356_s16, 1 }
   0x5   : > { %p157_p2 = scmp.lt.s32.totalorder %s2356_s16, 9 }
   0x6   : > { %s2728_s17 = smov (%p23_p0, %s22_s17), 0  ;;  %s2730_s18 = smov (!%p23_p0, %s25_s18), %s2352_s15 }
   0x7   : > { %p158_p3 = pnand %p1819_p1, %p157_p2  ;;  %p27_p4 = scmp.ge.s32.totalorder %s2730_s18, 2 }
   0x8   : > { %v2270_v0 = vld [vmem:[%s2720_s1 + $0x8] sm:$0x3f] (!%p158_p3)   ;;  %vm262_vm0 = vcmask (!%p158_p3), 1045504   ;;  %p189_p5 = scmp.lt.s32.totalorder (!%p158_p3), %s2344_s13, 1  ;;  %p191_p6 = scmp.lt.s32.totalorder (!%p158_p3), %s2340_s12, 3  ;;  %vm249_vm1 = vcmask (!%p158_p3), 97280  }
   0x9   : > { %s2732_s18 = smov (%p27_p4, %s2730_s18), 0  ;;  %161 = sbr.rel (%p158_p3) target bundleno = 458 (0x1ca), region = 32 }
   0xa   : > { %2215 = vmatprep.subr.msk.bf16.mxu0 (!%p158_p3), %vm262_vm0, %v2270_v0  ;;  %v264_v1 = vsel (!%p158_p3), %vm262_vm0, %v2270_v0, 0  ;;  %v2271_v2 = vld [vmem:[%s2720_s1 + $0x8] sm:$0x3f] (!%p158_p3)   ;;  %v2273_v4 = vld [vmem:[%s2720_s1] sm:$0x3f] (!%p158_p3)   ;;  %vm566_vm2 = vcmask (!%p158_p3), 125952  }
   0xb   : > { %2032 = vmatpush3.bf16.msra.mxu0 (!%p158_p3), %v264_v1  ;;  %2218 = vmatprep.subr.msk.bf16.mxu1 (!%p158_p3), %vm262_vm0, %v2271_v2  ;;  %v647_v3 = vsel (!%p158_p3), %vm262_vm0, %v2271_v2, 0  ;;  %v2277_v5 = vld [vmem:[%s2720_s1] sm:$0x3f] (!%p158_p3)   ;;  %v2283_v8 = vld [vmem:[%s2720_s1 + $0x10] sm:$0x3f] (!%p158_p3)   ;;  %v345_v10 = vsel (!%p158_p3), %vm262_vm0, %v2273_v4, 0 }
   0xc   : > { %2062 = vmatpush3.bf16.msra.mxu1 (!%p158_p3), %v647_v3  ;;  %2216 = vmatprep.subr.msk.bf16.mxu0 (!%p158_p3), %vm262_vm0, %v2273_v4  ;;  %v2285_v11 = vld [vmem:[%s2720_s1 + $0x10] sm:$0x3f] (!%p158_p3)   ;;  %v728_v13 = vsel (!%p158_p3), %vm262_vm0, %v2277_v5, 0  ;;  %v461_v20 = vsel (!%p158_p3), %vm262_vm0, %v2283_v8, 0  ;;  %v2288_v21 = vld [vmem:[%s2720_s1 + $0x8] sm:$0x3f] (!%p158_p3)  }
   0xd   : > { %2219 = vmatprep.subr.msk.bf16.mxu1 (!%p158_p3), %vm262_vm0, %v2277_v5  ;;  %v843_v22 = vsel (!%p158_p3), %vm262_vm0, %v2285_v11, 0  ;;  %v2291_v23 = vld [vmem:[%s2720_s1 + $0x8] sm:$0x3f] (!%p158_p3)   ;;  %v1022_v28 = vsel (!%p158_p3), %vm262_vm0, %v2288_v21, 0  ;;  %v2297_v32 = vld [vmem:[%s2720_s1] sm:$0x3f] (!%p158_p3)  }
   0xe   : > { %v1397_v30 = vsel (!%p158_p3), %vm262_vm0, %v2291_v23, 0  ;;  %v2301_v33 = vld [vmem:[%s2720_s1] sm:$0x3f] (!%p158_p3)   ;;  %v1103_v40 = vsel (!%p158_p3), %vm262_vm0, %v2297_v32, 0  ;;  %v2307_v44 = vld [vmem:[%s2720_s1 + $0x10] sm:$0x3f] (!%p158_p3)  }
   0xf   : > { %v1478_v42 = vsel (!%p158_p3), %vm262_vm0, %v2301_v33, 0  ;;  %v2309_v45 = vld [vmem:[%s2720_s1 + $0x10] sm:$0x3f] (!%p158_p3)   ;;  %v1218_v50 = vsel (!%p158_p3), %vm262_vm0, %v2307_v44, 0 }
  0x10   : > { %s2734_s13 = smov (!%p189_p5, %s2344_s13), 1  ;;  %s2736_s12 = smov (!%p191_p6, %s2340_s12), 3  ;;  %v1593_v51 = vsel %vm262_vm0, %v2309_v45, 0 }
  0x11   : > { %s2228_s25 = smul.u32 144, %s2734_s13  ;;  %s1821_s4 = sshll.u32 %s2736_s12, 4 }
  0x12   : > { %s2227_s28 = smul.u32 36, %s2736_s12  ;;  %s1822_s5 = sshll.u32 %s2734_s13, 6 }
  0x14   : > { %s195_s29 = sadd.s32 %s2228_s25, %s2227_s28 }
  0x15   : > { %s1820_s30 = sshll.u32 %s195_s29, 2 }
  0x16   : > { %s2436_s6 = scalar_lea.vmem %s2719_s0, %s1820_s30  ;;  %s2358_s30 = smov 112  }
  0x17   : > { %v2272_v6 = vld [vmem:[%s2436_s6 + $0x8] sm:$0xff]   ;;  %v2275_v9 = vld [vmem:[%s2436_s6 + $0x10] sm:$0xff]   ;;  %v2278_v14 = vld [vmem:[%s2436_s6 + $0x18] sm:$0xff]  }
  0x18   : > { %v2274_v7 = vld [vmem:[%s2436_s6 + $0x28] sm:$0xff]   ;;  %2033 = vmatprep.mubr.msk.bf16.mxu0 %vm249_vm1, %v2272_v6  ;;  %v2276_v12 = vld [vmem:[%s2436_s6 + $0x30] sm:$0xff]   ;;  %v2279_v15 = vld [vmem:[%s2436_s6 + $0x38] sm:$0xff]  }
  0x19   : > { %2063 = vmatprep.mubr.msk.bf16.mxu1 %vm249_vm1, %v2274_v7  ;;  %2034 = vmatmul.mubr.msk.bf16.vlgmr.msra.gmra.mrb[0].mxu0 %vm249_vm1, %v2275_v9  ;;  %v2280_v16 = vld [vmem:[%s2436_s6 + $0x20] sm:$0xff]   ;;  %v2286_v24 = vld [vmem:[%s2436_s6 + $0x10] sm:$0xff]   ;;  %v2289_v26 = vld [vmem:[%s2436_s6 + $0x18] sm:$0xff]  }
  0x1a   : > { %2042 = vmatpush3.bf16.msra.mxu0 %v345_v10  ;;  %2064 = vmatmul.mubr.msk.bf16.vlgmr.msra.gmra.mrb[0].mxu1 %vm249_vm1, %v2276_v12  ;;  %v2281_v17 = vld [vmem:[%s2436_s6 + $0x40] sm:$0xff]   ;;  %v2287_v25 = vld [vmem:[%s2436_s6 + $0x30] sm:$0xff]   ;;  %v2290_v27 = vld [vmem:[%s2436_s6 + $0x38] sm:$0xff]  }
  0x1b   : > { %2072 = vmatpush3.bf16.msra.mxu1 %v728_v13  ;;  %2037 = vmatprep.mubr.msk.bf16.mxu0 %vm249_vm1, %v2278_v14  ;;  %v2282_v18 = vld [vmem:[%s2436_s6] sm:$0xff]   ;;  %v2294_v34 = vld [vmem:[%s2436_s6 + $0x28] sm:$0xff]   ;;  %v2299_v38 = vld [vmem:[%s2436_s6 + $0x50] sm:$0xff]  }
  0x1c   : > { %2067 = vmatprep.mubr.msk.bf16.mxu1 %vm249_vm1, %v2279_v15  ;;  %2217 = vmatprep.subr.msk.bf16.mxu0 %vm262_vm0, %v2283_v8  ;;  %v2284_v19 = vld [vmem:[%s2436_s6 + $0x20] sm:$0xff]   ;;  %v2295_v35 = vld [vmem:[%s2436_s6 + $0x48] sm:$0xff]   ;;  %v2300_v39 = vld [vmem:[%s2436_s6 + $0x70] sm:$0xff]  }
  0x1d   : > { %2220 = vmatprep.subr.msk.bf16.mxu1 %vm262_vm0, %v2285_v11  ;;  %v2292_v29 = vld [vmem:[%s2436_s6 + $0x20] sm:$0xff]   ;;  %v2296_v36 = vld [vmem:[%s2436_s6 + $0x48] sm:$0xff]   ;;  %v2302_v41 = vld [vmem:[%s2436_s6 + $0x58] sm:$0xff]  }
  0x1e   : > { %v2293_v31 = vld [vmem:[%s2436_s6 + $0x40] sm:$0xff]   ;;  %v2298_v37 = vld [vmem:[%s2436_s6 + $0x68] sm:$0xff]   ;;  %v2303_v43 = vld [vmem:[%s2436_s6 + $0x78] sm:$0xff]  }
  0x1f   : > { %v2304_v46 = vld [vmem:[%s2436_s6 + $0x60] sm:$0xff]   ;;  %v2310_v52 = vld [vmem:[%s2436_s6 + $0x50] sm:$0xff]   ;;  %v2312_v54 = vld [vmem:[%s2436_s6 + $0x58] sm:$0xff]  }
  0x20   : > { %v2305_v47 = vld [vmem:[%s2436_s6 + $0x80] sm:$0xff]   ;;  %v2311_v53 = vld [vmem:[%s2436_s6 + $0x70] sm:$0xff]   ;;  %v2313_v55 = vld [vmem:[%s2436_s6 + $0x78] sm:$0xff]  }
  0x21   : > { %2038 = vmatmul.mubr.msk.bf16.gmra.mrb[4].mxu0 %vm249_vm1, %v2280_v16  ;;  %v2306_v48 = vld [vmem:[%s2436_s6 + $0x40] sm:$0xff]   ;;  %v2316_v58 = vld [vmem:[%s2436_s6 + $0x68] sm:$0xff]  }
  0x22   : > { %2068 = vmatmul.mubr.msk.bf16.gmra.mrb[4].mxu1 %vm249_vm1, %v2281_v17  ;;  %2043 = vmatprep.mubr.msk.bf16.mxu0 %vm249_vm1, %v2282_v18  ;;  %v2308_v49 = vld [vmem:[%s2436_s6 + $0x60] sm:$0xff]   ;;  %v2317_v59 = vld [vmem:[%s2436_s6 + $0x88] sm:$0xff]  }
  0x23   : > { %2073 = vmatprep.mubr.msk.bf16.mxu1 %vm249_vm1, %v2284_v19  ;;  %v2314_v56 = vld [vmem:[%s2436_s6 + $0x60] sm:$0xff]  }
  0x24   : > { %v2315_v57 = vld [vmem:[%s2436_s6 + $0x80] sm:$0xff]   ;;  %s204_s6 = sadd.s32 %s1822_s5, %s1821_s4 }
  0x25   : > { %s1823_s9 = sshll.u32 %s204_s6, 2 }
  0x26   : > { %s2642_s10 = scalar_lea.vmem %s2722_s3, %s1823_s9 }
  0x29   : > { %2044 = vmatmul.mubr.msk.bf16.vlgmr.msra.gmra.mrb[0].mxu0 %vm249_vm1, %v2272_v6 }
  0x2a   : > { %2052 = vmatpush3.bf16.msra.mxu0 %v461_v20  ;;  %2074 = vmatmul.mubr.msk.bf16.vlgmr.msra.gmra.mrb[0].mxu1 %vm249_vm1, %v2274_v7 }
  0x2b   : > { %2082 = vmatpush3.bf16.msra.mxu1 %v843_v22  ;;  %2047 = vmatprep.mubr.msk.bf16.mxu0 %vm249_vm1, %v2275_v9 }
  0x2c   : > { %2077 = vmatprep.mubr.msk.bf16.mxu1 %vm249_vm1, %v2276_v12  ;;  %2221 = vmatprep.subr.msk.bf16.mxu0 %vm262_vm0, %v2288_v21 }
  0x2d   : > { %2224 = vmatprep.subr.msk.bf16.mxu1 %vm262_vm0, %v2291_v23 }
  0x31   : > { %2048 = vmatmul.mubr.msk.bf16.gmra.mrb[4].mxu0 %vm249_vm1, %v2278_v14 }
  0x32   : > { %2078 = vmatmul.mubr.msk.bf16.gmra.mrb[4].mxu1 %vm249_vm1, %v2279_v15  ;;  %2053 = vmatprep.mubr.msk.bf16.mxu0 %vm249_vm1, %v2286_v24 }
  0x33   : > { %2083 = vmatprep.mubr.msk.bf16.mxu1 %vm249_vm1, %v2287_v25 }
  0x39   : > { %2054 = vmatmul.mubr.msk.bf16.vlgmr.msra.gmra.mrb[0].mxu0 %vm249_vm1, %v2289_v26 }
  0x3a   : > { %2084 = vmatmul.mubr.msk.bf16.vlgmr.msra.gmra.mrb[0].mxu1 %vm249_vm1, %v2290_v27  ;;  %2092 = vmatpush3.bf16.msra.mxu0 %v1022_v28 }
  0x3b   : > { %2122 = vmatpush3.bf16.msra.mxu1 %v1397_v30  ;;  %2057 = vmatprep.mubr.msk.bf16.mxu0 %vm249_vm1, %v2292_v29 }
  0x3c   : > { %2087 = vmatprep.mubr.msk.bf16.mxu1 %vm249_vm1, %v2293_v31  ;;  %2222 = vmatprep.subr.msk.bf16.mxu0 %vm262_vm0, %v2297_v32 }
  0x3d   : > { %2225 = vmatprep.subr.msk.bf16.mxu1 %vm262_vm0, %v2301_v33 }
  0x41   : > { %2058 = vmatmul.mubr.msk.bf16.gmra.mrb[4].mxu0 %vm249_vm1, %v2294_v34 }
  0x42   : > { %2088 = vmatmul.mubr.msk.bf16.gmra.mrb[4].mxu1 %vm249_vm1, %v2295_v35  ;;  %2093 = vmatprep.mubr.msk.bf16.mxu0 %vm249_vm1, %v2296_v36 }
  0x43   : > { %2123 = vmatprep.mubr.msk.bf16.mxu1 %vm249_vm1, %v2298_v37 }
  0x49   : > { %2094 = vmatmul.mubr.msk.bf16.vlgmr.msra.gmra.mrb[8].mxu0 %vm249_vm1, %v2299_v38 }
  0x4a   : > { %2102 = vmatpush3.bf16.msra.mxu0 %v1103_v40  ;;  %2124 = vmatmul.mubr.msk.bf16.vlgmr.msra.gmra.mrb[8].mxu1 %vm249_vm1, %v2300_v39 }
  0x4b   : > { %2132 = vmatpush3.bf16.msra.mxu1 %v1478_v42  ;;  %2097 = vmatprep.mubr.msk.bf16.mxu0 %vm249_vm1, %v2302_v41 }
  0x4c   : > { %2127 = vmatprep.mubr.msk.bf16.mxu1 %vm249_vm1, %v2303_v43  ;;  %2223 = vmatprep.subr.msk.bf16.mxu0 %vm262_vm0, %v2307_v44  ;;  %v2633_v44 = vld [vmem:[%s2721_s2] ss:$0 sm:$0xff] }
  0x4d   : > { %2226 = vmatprep.subr.msk.bf16.mxu1 %vm262_vm0, %v2309_v45 }
  0x51   : > { %2098 = vmatmul.mubr.msk.bf16.gmra.mrb[12].mxu0 %vm249_vm1, %v2304_v46 }
  0x52   : > { %2128 = vmatmul.mubr.msk.bf16.gmra.mrb[12].mxu1 %vm249_vm1, %v2305_v47  ;;  %2103 = vmatprep.mubr.msk.bf16.mxu0 %vm249_vm1, %v2306_v48 }
  0x53   : > { %2133 = vmatprep.mubr.msk.bf16.mxu1 %vm249_vm1, %v2308_v49 }
  0x59   : > { %2104 = vmatmul.mubr.msk.bf16.vlgmr.msra.gmra.mrb[8].mxu0 %vm249_vm1, %v2296_v36 }
  0x5a   : > { %2112 = vmatpush3.bf16.msra.mxu0 %v1218_v50  ;;  %2134 = vmatmul.mubr.msk.bf16.vlgmr.msra.gmra.mrb[8].mxu1 %vm249_vm1, %v2298_v37 }
  0x5b   : > { %2142 = vmatpush3.bf16.msra.mxu1 %v1593_v51  ;;  %2107 = vmatprep.mubr.msk.bf16.mxu0 %vm249_vm1, %v2299_v38 }
  0x5c   : > { %2137 = vmatprep.mubr.msk.bf16.mxu1 %vm249_vm1, %v2300_v39 }
  0x61   : > { %2108 = vmatmul.mubr.msk.bf16.gmra.mrb[12].mxu0 %vm249_vm1, %v2302_v41 }
  0x62   : > { %2138 = vmatmul.mubr.msk.bf16.gmra.mrb[12].mxu1 %vm249_vm1, %v2303_v43  ;;  %2113 = vmatprep.mubr.msk.bf16.mxu0 %vm249_vm1, %v2310_v52 }
  0x63   : > { %2143 = vmatprep.mubr.msk.bf16.mxu1 %vm249_vm1, %v2311_v53 }
  0x69   : > { %2114 = vmatmul.mubr.msk.bf16.vlgmr.msra.gmra.mrb[8].mxu0 %vm249_vm1, %v2312_v54 }
  0x6a   : > { %2144 = vmatmul.mubr.msk.bf16.vlgmr.msra.gmra.mrb[8].mxu1 %vm249_vm1, %v2313_v55  ;;  %2117 = vmatprep.mubr.msk.bf16.mxu0 %vm249_vm1, %v2314_v56 }
  0x6b   : > { %2147 = vmatprep.mubr.msk.bf16.mxu1 %vm249_vm1, %v2315_v57 }
  0x71   : > { %2118 = vmatmul.mubr.msk.bf16.gmra.mrb[12].mxu0 %vm249_vm1, %v2316_v58 }
  0x72   : > { %2148 = vmatmul.mubr.msk.bf16.gmra.mrb[12].mxu1 %vm249_vm1, %v2317_v59 }
 0x10c   : > { %v2055_v60 = vpop.f32.mrb[0].mxu0 }
 0x10d   : > { %v2085_v61 = vpop.f32.mrb[0].mxu1  ;;  %v497_v62 = vpop.f32.mrb[1].mxu0 }
 0x10e   : > { %v2564_v63 = vmax.f32 %v497_v62, %v2055_v60  ;;  %v879_v0 = vpop.f32.mrb[1].mxu1  ;;  %v2056_v1 = vpop.f32.mrb[2].mxu0 }
 0x10f   : > { %v2566_v2 = vmax.f32 %v879_v0, %v2085_v61  ;;  %v2086_v3 = vpop.f32.mrb[2].mxu1  ;;  %v500_v4 = vpop.f32.mrb[3].mxu0 }
 0x110   : > { %v2568_v5 = vmax.f32 %v500_v4, %v2056_v1  ;;  %v882_v6 = vpop.f32.mrb[3].mxu1  ;;  %540 = vrot.lane.b32.xlu0 %v2564_v63, %s2358_s30 }
 0x111   : > { %v2572_v7 = vmax.f32 %v882_v6, %v2086_v3 }
 0x113   : > { %924 = vrot.lane.b32.xlu1 %v2572_v7, %s2358_s30 }
 0x114   : > { %922 = vrot.lane.b32.xlu0 %v2566_v2, %s2358_s30  ;;  %v2059_v8 = vpop.f32.mrb[4].mxu0 }
 0x115   : > { %v2089_v9 = vpop.f32.mrb[4].mxu1  ;;  %v513_v10 = vpop.f32.mrb[5].mxu0 }
 0x116   : > { %v2578_v11 = vmax.f32 %v513_v10, %v2059_v8  ;;  %v895_v12 = vpop.f32.mrb[5].mxu1  ;;  %v2060_v13 = vpop.f32.mrb[6].mxu0 }
 0x117   : > { %v2580_v14 = vmax.f32 %v895_v12, %v2089_v9  ;;  %v2090_v15 = vpop.f32.mrb[6].mxu1  ;;  %v516_v16 = vpop.f32.mrb[7].mxu0 }
 0x118   : > { %v2582_v17 = vmax.f32 %v516_v16, %v2060_v13  ;;  %v898_v18 = vpop.f32.mrb[7].mxu1  ;;  %542 = vrot.lane.b32.xlu0 %v2568_v5, %s2358_s30  ;;  %573 = vrot.lane.b32.xlu1 %v2578_v11, %s2358_s30 }
 0x119   : > { %v2588_v19 = vmax.f32 %v898_v18, %v2090_v15 }
 0x11c   : > { %948 = vrot.lane.b32.xlu0 %v2580_v14, %s2358_s30  ;;  %575 = vrot.lane.b32.xlu1 %v2582_v17, %s2358_s30 }
 0x120   : > { %950 = vrot.lane.b32.xlu1 %v2588_v19, %s2358_s30 }
 0x13c   : > { %v2115_v20 = vpop.f32.mrb[8].mxu0 }
 0x13d   : > { %v2145_v21 = vpop.f32.mrb[8].mxu1  ;;  %v1254_v22 = vpop.f32.mrb[9].mxu0 }
 0x13e   : > { %v2596_v23 = vmax.f32 %v1254_v22, %v2115_v20  ;;  %v1629_v24 = vpop.f32.mrb[9].mxu1  ;;  %v2116_v25 = vpop.f32.mrb[10].mxu0 }
 0x13f   : > { %v2598_v26 = vmax.f32 %v1629_v24, %v2145_v21  ;;  %v2146_v27 = vpop.f32.mrb[10].mxu1  ;;  %v1257_v28 = vpop.f32.mrb[11].mxu0 }
 0x140   : > { %v2600_v29 = vmax.f32 %v1257_v28, %v2116_v25  ;;  %v1632_v30 = vpop.f32.mrb[11].mxu1  ;;  %1297 = vrot.lane.b32.xlu0 %v2596_v23, %s2358_s30 }
 0x141   : > { %v2604_v31 = vmax.f32 %v1632_v30, %v2146_v27 }
 0x142   : > { %1299 = vrot.lane.b32.xlu1 %v2600_v29, %s2358_s30 }
 0x144   : > { %1672 = vrot.lane.b32.xlu0 %v2598_v26, %s2358_s30  ;;  %v2119_v32 = vpop.f32.mrb[12].mxu0 }
 0x145   : > { %v2149_v33 = vpop.f32.mrb[12].mxu1  ;;  %v1270_v34 = vpop.f32.mrb[13].mxu0 }
 0x146   : > { %v2610_v35 = vmax.f32 %v1270_v34, %v2119_v32  ;;  %v1645_v36 = vpop.f32.mrb[13].mxu1  ;;  %v2120_v37 = vpop.f32.mrb[14].mxu0  ;;  %1674 = vrot.lane.b32.xlu1 %v2604_v31, %s2358_s30 }
 0x147   : > { %v2614_v38 = vmax.f32 %v1645_v36, %v2149_v33  ;;  %v2150_v39 = vpop.f32.mrb[14].mxu1  ;;  %v1273_v40 = vpop.f32.mrb[15].mxu0 }
 0x148   : > { %v2616_v41 = vmax.f32 %v1273_v40, %v2120_v37  ;;  %v1648_v42 = vpop.f32.mrb[15].mxu1  ;;  %1323 = vrot.lane.b32.xlu0 %v2610_v35, %s2358_s30 }
 0x149   : > { %v2620_v43 = vmax.f32 %v1648_v42, %v2150_v39 }
 0x14a   : > { %1325 = vrot.lane.b32.xlu1 %v2616_v41, %s2358_s30 }
 0x14c   : > { %1698 = vrot.lane.b32.xlu0 %v2614_v38, %s2358_s30 }
 0x14e   : > { %1700 = vrot.lane.b32.xlu1 %v2620_v43, %s2358_s30 }
 0x182   : > { %v541_v45 = vpop.permute.xlu0 %540 }
 0x183   : > { %v546_v46 = vmax.f32 %v2564_v63, %v541_v45 }
 0x185   : > { %v554_v47 = vadd.f32 %v2633_v44, %v546_v46  ;;  %v925_v48 = vpop.permute.xlu1 %924 }
 0x186   : > { %v929_v49 = vmax.f32 %v2572_v7, %v925_v48  ;;  %v923_v50 = vpop.permute.xlu0 %922 }
 0x187   : > { %v556_v51 = vmax.f32 %v554_v47, 0.0  ;;  %v928_v52 = vmax.f32 %v2566_v2, %v923_v50 }
 0x188   : > { %v931_v53 = vadd.f32 %v2633_v44, %v929_v49 }
 0x189   : > { %v1955_v54 = vpack.c.bf16 %v556_v51, %v556_v51  ;;  %v930_v55 = vadd.f32 %v2633_v44, %v928_v52 }
 0x18a   : > { %v933_v56 = vmax.f32 %v931_v53, 0.0  ;;  %v543_v57 = vpop.permute.xlu0 %542  ;;  %v574_v58 = vpop.permute.xlu1 %573 }
 0x18b   : > { %567 = vst.msk [vmem:[%s2642_s10] sm:$0xf] %vm566_vm2, %v1955_v54  ;;  %v932_v59 = vmax.f32 %v930_v55, 0.0  ;;  %v547_v60 = vmax.f32 %v2568_v5, %v543_v57  ;;  %v579_v61 = vmax.f32 %v2578_v11, %v574_v58 }
 0x18c   : > { %v1960_v62 = vpack.c.bf16 %v933_v56, %v933_v56 }
 0x18d   : > { %v1959_v63 = vpack.c.bf16 %v932_v59, %v932_v59  ;;  %v555_v0 = vadd.f32 %v2633_v44, %v547_v60  ;;  %v581_v1 = vadd.f32 %v2633_v44, %v579_v61 }
 0x18e   : > { %943 = vst.msk [vmem:[%s2642_s10 + $0x14] sm:$0xf] %vm566_vm2, %v1960_v62  ;;  %v949_v2 = vpop.permute.xlu0 %948  ;;  %v576_v3 = vpop.permute.xlu1 %575 }
 0x18f   : > { %942 = vst.msk [vmem:[%s2642_s10 + $0x10] sm:$0xf] %vm566_vm2, %v1959_v63  ;;  %v557_v4 = vmax.f32 %v555_v0, 0.0  ;;  %v583_v6 = vmax.f32 %v581_v1, 0.0  ;;  %v954_v5 = vmax.f32 %v2580_v14, %v949_v2  ;;  %v580_v7 = vmax.f32 %v2582_v17, %v576_v3 }
 0x191   : > { %v1956_v8 = vpack.c.bf16 %v557_v4, %v557_v4  ;;  %v1957_v9 = vpack.c.bf16 %v583_v6, %v583_v6  ;;  %v956_v10 = vadd.f32 %v2633_v44, %v954_v5  ;;  %v582_v11 = vadd.f32 %v2633_v44, %v580_v7 }
 0x192   : > { %v951_v12 = vpop.permute.xlu1 %950 }
 0x193   : > { %568 = vst.msk [vmem:[%s2642_s10 + $0x4] sm:$0xf] %vm566_vm2, %v1956_v8  ;;  %593 = vst.msk [vmem:[%s2642_s10 + $0x8] sm:$0xf] %vm566_vm2, %v1957_v9  ;;  %v958_v13 = vmax.f32 %v956_v10, 0.0  ;;  %v584_v15 = vmax.f32 %v582_v11, 0.0  ;;  %v955_v16 = vmax.f32 %v2588_v19, %v951_v12 }
 0x195   : > { %v1961_v14 = vpack.c.bf16 %v958_v13, %v958_v13  ;;  %v1958_v18 = vpack.c.bf16 %v584_v15, %v584_v15  ;;  %v957_v17 = vadd.f32 %v2633_v44, %v955_v16 }
 0x197   : > { %968 = vst.msk [vmem:[%s2642_s10 + $0x18] sm:$0xf] %vm566_vm2, %v1961_v14  ;;  %594 = vst.msk [vmem:[%s2642_s10 + $0xc] sm:$0xf] %vm566_vm2, %v1958_v18  ;;  %v959_v20 = vmax.f32 %v957_v17, 0.0 }
 0x199   : > { %v1962_v21 = vpack.c.bf16 %v959_v20, %v959_v20 }
 0x19b   : > { %969 = vst.msk [vmem:[%s2642_s10 + $0x1c] sm:$0xf] %vm566_vm2, %v1962_v21 }
 0x1b2   : > { %v1298_v22 = vpop.permute.xlu0 %1297 }
 0x1b3   : > { %v1303_v24 = vmax.f32 %v2596_v23, %v1298_v22 }
 0x1b4   : > { %v1300_v25 = vpop.permute.xlu1 %1299 }
 0x1b5   : > { %v1305_v27 = vadd.f32 %v2633_v44, %v1303_v24  ;;  %v1304_v19 = vmax.f32 %v2600_v29, %v1300_v25 }
 0x1b6   : > { %v1673_v28 = vpop.permute.xlu0 %1672 }
 0x1b7   : > { %v1307_v30 = vmax.f32 %v1305_v27, 0.0  ;;  %v1306_v32 = vadd.f32 %v2633_v44, %v1304_v19  ;;  %v1678_v33 = vmax.f32 %v2598_v26, %v1673_v28 }
 0x1b8   : > { %v1675_v34 = vpop.permute.xlu1 %1674 }
 0x1b9   : > { %v1963_v36 = vpack.c.bf16 %v1307_v30, %v1307_v30  ;;  %v1308_v37 = vmax.f32 %v1306_v32, 0.0  ;;  %v1680_v39 = vadd.f32 %v2633_v44, %v1678_v33  ;;  %v1679_v23 = vmax.f32 %v2604_v31, %v1675_v34 }
 0x1ba   : > { %v1324_v40 = vpop.permute.xlu0 %1323 }
 0x1bb   : > { %1317 = vst.msk [vmem:[%s2642_s10 + $0x20] sm:$0xf] %vm566_vm2, %v1963_v36  ;;  %v1964_v42 = vpack.c.bf16 %v1308_v37, %v1308_v37  ;;  %v1682_v29 = vmax.f32 %v1680_v39, 0.0  ;;  %v1681_v45 = vadd.f32 %v2633_v44, %v1679_v23  ;;  %v1329_v46 = vmax.f32 %v2610_v35, %v1324_v40 }
 0x1bc   : > { %v1326_v47 = vpop.permute.xlu1 %1325 }
 0x1bd   : > { %1318 = vst.msk [vmem:[%s2642_s10 + $0x24] sm:$0xf] %vm566_vm2, %v1964_v42  ;;  %v1967_v26 = vpack.c.bf16 %v1682_v29, %v1682_v29  ;;  %v1683_v48 = vmax.f32 %v1681_v45, 0.0  ;;  %v1331_v49 = vadd.f32 %v2633_v44, %v1329_v46  ;;  %v1330_v31 = vmax.f32 %v2616_v41, %v1326_v47 }
 0x1be   : > { %v1699_v50 = vpop.permute.xlu0 %1698 }
 0x1bf   : > { %1692 = vst.msk [vmem:[%s2642_s10 + $0x30] sm:$0xf] %vm566_vm2, %v1967_v26  ;;  %v1968_v51 = vpack.c.bf16 %v1683_v48, %v1683_v48  ;;  %v1333_v52 = vmax.f32 %v1331_v49, 0.0  ;;  %v1332_v53 = vadd.f32 %v2633_v44, %v1330_v31  ;;  %v1704_v35 = vmax.f32 %v2614_v38, %v1699_v50 }
 0x1c0   : > { %v1701_v54 = vpop.permute.xlu1 %1700 }
 0x1c1   : > { %1693 = vst.msk [vmem:[%s2642_s10 + $0x34] sm:$0xf] %vm566_vm2, %v1968_v51  ;;  %v1965_v55 = vpack.c.bf16 %v1333_v52, %v1333_v52  ;;  %v1334_v56 = vmax.f32 %v1332_v53, 0.0  ;;  %v1706_v57 = vadd.f32 %v2633_v44, %v1704_v35  ;;  %v1705_v41 = vmax.f32 %v2620_v43, %v1701_v54 }
 0x1c3   : > { %1343 = vst.msk [vmem:[%s2642_s10 + $0x28] sm:$0xf] %vm566_vm2, %v1965_v55  ;;  %v1966_v58 = vpack.c.bf16 %v1334_v56, %v1334_v56  ;;  %v1708_v59 = vmax.f32 %v1706_v57, 0.0  ;;  %v1707_v60 = vadd.f32 %v2633_v44, %v1705_v41 }
 0x1c5   : > { %1344 = vst.msk [vmem:[%s2642_s10 + $0x2c] sm:$0xf] %vm566_vm2, %v1966_v58  ;;  %v1969_v61 = vpack.c.bf16 %v1708_v59, %v1708_v59  ;;  %v1709_v38 = vmax.f32 %v1707_v60, 0.0 }
 0x1c7   : > { %1718 = vst.msk [vmem:[%s2642_s10 + $0x38] sm:$0xf] %vm566_vm2, %v1969_v61  ;;  %v1970_v62 = vpack.c.bf16 %v1709_v38, %v1709_v38 }
 0x1c9   : > { %1719 = vst.msk [vmem:[%s2642_s10 + $0x3c] sm:$0xf] %vm566_vm2, %v1970_v62 }
 0x1ca PF: > { %s13_s16 = sadd.s32 1, %s2356_s16   ;;  %s2723_s12 = smov %s2348_s14 }
 0x1cb   : > { %p10_p7 = scmp.ge.s32.totalorder %s13_s16, 10   ;;  %s2724_s13 = smov %s2352_s15 }
 0x1cc   : > { %s2725_s14 = smov %s2728_s17  ;;  %s2726_s15 = smov %s2732_s18 }
 0x1cd   :  { %12 = sbr.rel (!%p10_p7) target bundleno = 3 (0x3), region = 64 }

// kernel: simple3dcnn_forward.4
= control target key start
LH: loop header
LB: loop body
LE: loop exit
PB: predicated region body
PF: predicated region fallthrough
CT: control target
= control target key end

     0   :  { %s1820_s12 = smov 0   ;;  %s1822_s13 = smov 0   ;;  %s2284_s0 = inlined_call_operand.vmem [shape: bf16[2,4,80,192], index: 0, kind: input, shape index: {}]   ;;  %s2285_s1 = inlined_call_operand.vmem [shape: bf16[3,192,64], index: 1, kind: input, shape index: {}]   ;;  %s2286_s2 = inlined_call_operand.vmem [shape: f32[1,32], index: 2, kind: input, shape index: {}]   ;;  %s2287_s3 = inlined_call_operand.vmem [shape: bf16[2,4,32,32], index: 3, kind: output, shape index: {}]  }
   0x1   :  { %s1824_s14 = smov 0   ;;  %s1826_s15 = smov 0  }
   0x2   :  { %s1828_s16 = smov 0  }
   0x3 LB: > { %s22_s17 = sadd.s32 1, %s1788_s14  ;;  %s25_s18 = sadd.s32 1, %s1792_s15  ;;  %s1796_s16 = sphi %s1828_s16, %s13_s16   ;;  %s1792_s15 = sphi %s1826_s15, %s2291_s15   ;;  %s1788_s14 = sphi %s1824_s14, %s2290_s14   ;;  %s1784_s13 = sphi %s1822_s13, %s2289_s13   ;;  %s1780_s12 = sphi %s1820_s12, %s2288_s12  }
   0x4   : > { %p23_p0 = scmp.ge.s32.totalorder %s22_s17, 4  ;;  %p1380_p1 = scmp.ge.s32.totalorder %s1796_s16, 1 }
   0x5   : > { %p157_p2 = scmp.lt.s32.totalorder %s1796_s16, 9 }
   0x6   : > { %s2293_s17 = smov (%p23_p0, %s22_s17), 0  ;;  %s2295_s18 = smov (!%p23_p0, %s25_s18), %s1792_s15 }
   0x7   : > { %p158_p3 = pnand %p1380_p1, %p157_p2  ;;  %p27_p4 = scmp.ge.s32.totalorder %s2295_s18, 2 }
   0x8   : > { %v1668_v0 = vld [vmem:[%s2285_s1 + $0x60] sm:$0xff] (!%p158_p3)   ;;  %v1798_v1 = vmov (!%p158_p3), 0   ;;  %v1670_v3 = vld [vmem:[%s2285_s1 + $0x68] sm:$0xff] (!%p158_p3)   ;;  %p189_p5 = scmp.lt.s32.totalorder (!%p158_p3), %s1784_s13, 1  ;;  %p191_p6 = scmp.lt.s32.totalorder (!%p158_p3), %s1780_s12, 3  ;;  %v1672_v5 = vld [vmem:[%s2285_s1 + $0x70] sm:$0xff] (!%p158_p3)  }
   0x9   : > { %s2297_s18 = smov (%p27_p4, %s2295_s18), 0  ;;  %161 = sbr.rel (%p158_p3) target bundleno = 502 (0x1f6), region = 32 }
   0xa   : > { %360 = vmatprep.subr.bf16.mxu0 (!%p158_p3), %v1798_v1  ;;  %899 = vmatprep.subr.bf16.mxu1 (!%p158_p3), %v1798_v1  ;;  %v1669_v2 = vld [vmem:[%s2285_s1 + $0x60] sm:$0xff] (!%p158_p3)   ;;  %v1671_v4 = vld [vmem:[%s2285_s1 + $0x68] sm:$0xff] (!%p158_p3)   ;;  %v1673_v6 = vld [vmem:[%s2285_s1 + $0x70] sm:$0xff] (!%p158_p3)   ;;  %vm353_vm0 = vcmask (!%p158_p3), 523264   ;;  %vm738_vm1 = vcmask (!%p158_p3), 257024  }
   0xb   : > { %361 = vmatpush1.bf16.msra.mxu0 (!%p158_p3), %v1668_v0  ;;  %900 = vmatpush1.bf16.msra.mxu1 (!%p158_p3), %v1669_v2  ;;  %v1674_v7 = vld [vmem:[%s2285_s1 + $0x78] sm:$0xff] (!%p158_p3)   ;;  %v1676_v9 = vld [vmem:[%s2285_s1 + $0x80] sm:$0xff] (!%p158_p3)   ;;  %v1678_v11 = vld [vmem:[%s2285_s1 + $0x88] sm:$0xff] (!%p158_p3)  }
   0xc   : > { %362 = vmatprep.subr.bf16.mxu0 (!%p158_p3), %v1798_v1  ;;  %901 = vmatprep.subr.bf16.mxu1 (!%p158_p3), %v1798_v1  ;;  %v1675_v8 = vld [vmem:[%s2285_s1 + $0x78] sm:$0xff] (!%p158_p3)   ;;  %v1677_v10 = vld [vmem:[%s2285_s1 + $0x80] sm:$0xff] (!%p158_p3)   ;;  %v1679_v12 = vld [vmem:[%s2285_s1 + $0x88] sm:$0xff] (!%p158_p3)  }
   0xd   : > { %v1680_v13 = vld [vmem:[%s2285_s1 + $0x90] sm:$0xff] (!%p158_p3)   ;;  %v1682_v20 = vld [vmem:[%s2285_s1 + $0x98] sm:$0xff] (!%p158_p3)   ;;  %v1684_v23 = vld [vmem:[%s2285_s1 + $0xa0] sm:$0xff] (!%p158_p3)  }
   0xe   : > { %v1681_v14 = vld [vmem:[%s2285_s1 + $0x90] sm:$0xff] (!%p158_p3)   ;;  %v1683_v22 = vld [vmem:[%s2285_s1 + $0x98] sm:$0xff] (!%p158_p3)   ;;  %v1685_v24 = vld [vmem:[%s2285_s1 + $0xa0] sm:$0xff] (!%p158_p3)  }
   0xf   : > { %363 = vmatpush1.bf16.msra.mxu0 (!%p158_p3), %v1670_v3  ;;  %902 = vmatpush1.bf16.msra.mxu1 (!%p158_p3), %v1671_v4  ;;  %v1686_v25 = vld [vmem:[%s2285_s1 + $0xa8] sm:$0xff] (!%p158_p3)   ;;  %v1688_v27 = vld [vmem:[%s2285_s1 + $0xb0] sm:$0xff] (!%p158_p3)   ;;  %v1690_v29 = vld [vmem:[%s2285_s1 + $0xb8] sm:$0xff] (!%p158_p3)  }
  0x10   : > { %s2299_s13 = smov (!%p189_p5, %s1784_s13), 1  ;;  %364 = vmatprep.subr.bf16.mxu0 %v1798_v1  ;;  %s2301_s12 = smov (!%p191_p6, %s1780_s12), 3  ;;  %903 = vmatprep.subr.bf16.mxu1 %v1798_v1  ;;  %v1687_v26 = vld [vmem:[%s2285_s1 + $0xa8] sm:$0xff]   ;;  %v1689_v28 = vld [vmem:[%s2285_s1 + $0xb0] sm:$0xff]   ;;  %v1691_v30 = vld [vmem:[%s2285_s1 + $0xb8] sm:$0xff]  }
  0x11   : > { %s1625_s6 = smul.u32 80, %s2299_s13  ;;  %v1695_v32 = vld [vmem:[%s2285_s1] sm:$0xff]   ;;  %v1698_v41 = vld [vmem:[%s2285_s1 + $0x8] sm:$0xff]   ;;  %v1700_v45 = vld [vmem:[%s2285_s1 + $0x10] sm:$0xff]   ;;  %s1383_s7 = sshll.u32 %s2299_s13, 4 }
  0x12   : > { %s1624_s9 = smul.u32 20, %s2301_s12  ;;  %v1697_v38 = vld [vmem:[%s2285_s1] sm:$0xff]   ;;  %v1699_v42 = vld [vmem:[%s2285_s1 + $0x8] sm:$0xff]   ;;  %v1701_v47 = vld [vmem:[%s2285_s1 + $0x10] sm:$0xff]  }
  0x13   : > { %365 = vmatpush1.bf16.msra.mxu0 %v1672_v5  ;;  %904 = vmatpush1.bf16.msra.mxu1 %v1673_v6  ;;  %v1702_v50 = vld [vmem:[%s2285_s1 + $0x18] sm:$0xff]   ;;  %v1704_v52 = vld [vmem:[%s2285_s1 + $0x20] sm:$0xff]   ;;  %v1706_v54 = vld [vmem:[%s2285_s1 + $0x28] sm:$0xff]  }
  0x14   : > { %366 = vmatprep.subr.bf16.mxu0 %v1798_v1  ;;  %905 = vmatprep.subr.bf16.mxu1 %v1798_v1  ;;  %s195_s21 = sadd.s32 %s1625_s6, %s1624_s9  ;;  %v1703_v51 = vld [vmem:[%s2285_s1 + $0x18] sm:$0xff]   ;;  %v1705_v53 = vld [vmem:[%s2285_s1 + $0x20] sm:$0xff]   ;;  %v1707_v55 = vld [vmem:[%s2285_s1 + $0x28] sm:$0xff]   ;;  %s1382_s6 = sshll.u32 %s2301_s12, 2 }
  0x15   : > { %s1381_s24 = sshll.u32 %s195_s21, 2  ;;  %v1708_v56 = vld [vmem:[%s2285_s1 + $0x30] sm:$0xff]   ;;  %v1710_v58 = vld [vmem:[%s2285_s1 + $0x38] sm:$0xff]   ;;  %v1712_v63 = vld [vmem:[%s2285_s1 + $0x40] sm:$0xff]   ;;  %s204_s8 = sadd.s32 %s1383_s7, %s1382_s6 }
  0x16   : > { %s1915_s29 = scalar_lea.vmem %s2284_s0, %s1381_s24  ;;  %v1709_v57 = vld [vmem:[%s2285_s1 + $0x30] sm:$0xff]   ;;  %v1711_v59 = vld [vmem:[%s2285_s1 + $0x38] sm:$0xff]   ;;  %v1713_v0 = vld [vmem:[%s2285_s1 + $0x40] sm:$0xff]   ;;  %s1384_s11 = sshll.u32 %s204_s8, 2 }
  0x17   : > { %367 = vmatpush1.bf16.msra.mxu0 %v1674_v7  ;;  %906 = vmatpush1.bf16.msra.mxu1 %v1675_v8  ;;  %v1926_v15 = vld [vmem:[%s1915_s29 + $0x8] sm:$0xff]  ;;  %v1929_v16 = vld [vmem:[%s1915_s29 + $0x10] sm:$0xff]  ;;  %v1989_v33 = vld [vmem:[%s1915_s29 + $0x18] sm:$0xff]  ;;  %s206_s21 = scalar_lea.vmem %s2287_s3, %s1384_s11 }
  0x18   : > { %368 = vmatprep.subr.bf16.mxu0 %v1798_v1  ;;  %907 = vmatprep.subr.bf16.mxu1 %v1798_v1  ;;  %v1932_v17 = vld [vmem:[%s1915_s29 + $0x28] sm:$0xff]  ;;  %v1410_v18 = vcombine.high %v1926_v15, %v1929_v16  ;;  %v1937_v19 = vld [vmem:[%s1915_s29 + $0x30] sm:$0xff]  ;;  %v1409_v31 = vcombine.low %v1926_v15, %v1929_v16  ;;  %v1992_v34 = vld [vmem:[%s1915_s29 + $0x20] sm:$0xff] }
  0x19   : > { %v1513_v21 = vcombine.high %v1932_v17, %v1937_v19  ;;  %v1512_v35 = vcombine.low %v1932_v17, %v1937_v19  ;;  %v1997_v36 = vld [vmem:[%s1915_s29 + $0x38] sm:$0xff]  ;;  %v2000_v37 = vld [vmem:[%s1915_s29 + $0x40] sm:$0xff]  ;;  %v1412_v39 = vcombine.high %v1989_v33, %v1992_v34  ;;  %v1411_v43 = vcombine.low %v1989_v33, %v1992_v34  ;;  %v2085_v60 = vld [vmem:[%s1915_s29 + $0x48] sm:$0xff] }
  0x1a   : > { %1425 = vmatprep.mubr.msk.bf16.mxu0 %vm353_vm0, %v1410_v18  ;;  %v1515_v40 = vcombine.high %v1997_v36, %v2000_v37  ;;  %v2024_v44 = vld [vmem:[%s1915_s29] sm:$0xff]  ;;  %v1514_v46 = vcombine.low %v1997_v36, %v2000_v37  ;;  %v2040_v49 = vcombine.high %v1992_v34, %v1932_v17  ;;  %v1575_v61 = vcombine.high %v2000_v37, %v2085_v60  ;;  %v1714_v2 = vld [vmem:[%s2285_s1 + $0x48] sm:$0xff]   ;;  %v1719_v4 = vld [vmem:[%s2285_s1 + $0x50] sm:$0xff]   ;;  %s1799_s29 = smov 96  }
  0x1b   : > { %369 = vmatpush1.bf16.msra.mxu0 %v1676_v9  ;;  %908 = vmatpush1.bf16.msra.mxu1 %v1677_v10  ;;  %v1428_v48 = vcombine.high %v2024_v44, %v1926_v15  ;;  %v1574_v62 = vcombine.low %v2000_v37, %v2085_v60  ;;  %v1715_v3 = vld [vmem:[%s2285_s1 + $0x48] sm:$0xff]   ;;  %v1721_v5 = vld [vmem:[%s2285_s1 + $0x50] sm:$0xff]   ;;  %v1722_v6 = vld [vmem:[%s2285_s1 + $0x58] sm:$0xff]   ;;  %v1427_v8 = vcombine.low %v2024_v44, %v1926_v15 }
  0x1c   : > { %370 = vmatprep.subr.bf16.mxu0 %v1798_v1  ;;  %909 = vmatprep.subr.bf16.mxu1 %v1798_v1  ;;  %v1723_v7 = vld [vmem:[%s2285_s1 + $0x58] sm:$0xff]   ;;  %v2128_v9 = vcombine.low %v1992_v34, %v1932_v17  ;;  %v1728_v10 = vld [vmem:[%s2285_s1 + $0xc0] sm:$0xff]   ;;  %v1731_v15 = vld [vmem:[%s2285_s1 + $0xc8] sm:$0xff]   ;;  %v2155_v17 = vcombine.low %v1929_v16, %v1989_v33 }
  0x1d   : > { %1528 = vmatprep.mubr.msk.bf16.mxu1 %vm353_vm0, %v1513_v21  ;;  %v1732_v18 = vld [vmem:[%s2285_s1 + $0xd0] sm:$0xff]  }
  0x1e   : > { %v1733_v21 = vld [vmem:[%s2285_s1 + $0xd0] sm:$0xff]  }
  0x1f   : > { %371 = vmatpush1.bf16.msra.mxu0 %v1678_v11  ;;  %910 = vmatpush1.bf16.msra.mxu1 %v1679_v12  ;;  %v1729_v11 = vld [vmem:[%s2285_s1 + $0xc0] sm:$0xff]   ;;  %v1430_v12 = vcombine.high %v1929_v16, %v1989_v33  ;;  %v1734_v16 = vld [vmem:[%s2285_s1 + $0xd8] sm:$0xff]   ;;  %v1747_v33 = vld [vmem:[%s2285_s1 + $0x108] sm:$0xff]  }
  0x20   : > { %372 = vmatprep.subr.bf16.mxu0 %v1798_v1  ;;  %911 = vmatprep.subr.bf16.mxu1 %v1798_v1  ;;  %v1752_v34 = vld [vmem:[%s2285_s1 + $0x110] sm:$0xff]  }
  0x23   : > { %373 = vmatpush1.bf16.msra.mxu0 %v1680_v13  ;;  %912 = vmatpush1.bf16.msra.mxu1 %v1681_v14  ;;  %v1533_v13 = vcombine.high %v1937_v19, %v1997_v36  ;;  %v1730_v14 = vld [vmem:[%s2285_s1 + $0xc8] sm:$0xff]  }
  0x24   : > { %374 = vmatprep.subr.bf16.mxu0 %v1798_v1  ;;  %913 = vmatprep.subr.bf16.mxu1 %v1798_v1 }
  0x27   : > { %375 = vmatpush1.bf16.msra.mxu0 %v1682_v20  ;;  %914 = vmatpush1.bf16.msra.mxu1 %v1683_v22  ;;  %v2162_v20 = vcombine.low %v1937_v19, %v1997_v36  ;;  %v1735_v19 = vld [vmem:[%s2285_s1 + $0xd8] sm:$0xff]   ;;  %v1736_v22 = vld [vmem:[%s2285_s1 + $0xe0] sm:$0xff]  }
  0x28   : > { %376 = vmatprep.subr.bf16.mxu0 %v1798_v1  ;;  %915 = vmatprep.subr.bf16.mxu1 %v1798_v1  ;;  %v1754_v36 = vld [vmem:[%s2285_s1 + $0x118] sm:$0xff]  }
  0x2b   : > { %377 = vmatpush1.bf16.msra.mxu0 %v1684_v23  ;;  %916 = vmatpush1.bf16.msra.mxu1 %v1685_v24  ;;  %v1737_v23 = vld [vmem:[%s2285_s1 + $0xe0] sm:$0xff]   ;;  %v1738_v24 = vld [vmem:[%s2285_s1 + $0xe8] sm:$0xff]  }
  0x2c   : > { %378 = vmatprep.subr.bf16.mxu0 %v1798_v1  ;;  %917 = vmatprep.subr.bf16.mxu1 %v1798_v1 }
  0x2f   : > { %379 = vmatpush1.bf16.msra.mxu0 %v1686_v25  ;;  %918 = vmatpush1.bf16.msra.mxu1 %v1687_v26  ;;  %v1739_v25 = vld [vmem:[%s2285_s1 + $0xe8] sm:$0xff]   ;;  %v1740_v26 = vld [vmem:[%s2285_s1 + $0xf0] sm:$0xff]  }
  0x30   : > { %380 = vmatprep.subr.bf16.mxu0 %v1798_v1  ;;  %919 = vmatprep.subr.bf16.mxu1 %v1798_v1 }
  0x33   : > { %381 = vmatpush1.bf16.msra.mxu0 %v1688_v27  ;;  %920 = vmatpush1.bf16.msra.mxu1 %v1689_v28  ;;  %v1741_v27 = vld [vmem:[%s2285_s1 + $0xf0] sm:$0xff]   ;;  %v1742_v28 = vld [vmem:[%s2285_s1 + $0xf8] sm:$0xff]  }
  0x34   : > { %382 = vmatprep.subr.bf16.mxu0 %v1798_v1  ;;  %921 = vmatprep.subr.bf16.mxu1 %v1798_v1 }
  0x37   : > { %383 = vmatpush1.bf16.msra.mxu0 %v1690_v29  ;;  %922 = vmatpush1.bf16.msra.mxu1 %v1691_v30  ;;  %v1743_v29 = vld [vmem:[%s2285_s1 + $0xf8] sm:$0xff]   ;;  %v1744_v30 = vld [vmem:[%s2285_s1 + $0x100] sm:$0xff]  }
  0x38   : > { %496 = vmatprep.subr.bf16.mxu0 %v1798_v1  ;;  %1035 = vmatprep.subr.bf16.mxu1 %v1798_v1 }
  0x3a   : > { %393 = vmatmul.mubr.bf16.vlgmr.msra.gmra.mrb[0].mxu0 %v1409_v31  ;;  %932 = vmatmul.mubr.bf16.vlgmr.msra.gmra.mrb[0].mxu1 %v1512_v35  ;;  %v1745_v31 = vld [vmem:[%s2285_s1 + $0x100] sm:$0xff]   ;;  %v1753_v35 = vld [vmem:[%s2285_s1 + $0x110] sm:$0xff]  }
  0x3b   : > { %497 = vmatpush1.bf16.msra.mxu0 %v1695_v32  ;;  %1036 = vmatpush1.bf16.msra.mxu1 %v1697_v38  ;;  %v1746_v32 = vld [vmem:[%s2285_s1 + $0x108] sm:$0xff]   ;;  %v1755_v38 = vld [vmem:[%s2285_s1 + $0x118] sm:$0xff]  }
  0x3c   : > { %498 = vmatprep.subr.bf16.mxu0 %v1798_v1  ;;  %1037 = vmatprep.subr.bf16.mxu1 %v1798_v1 }
  0x3d   : > { %1426 = vmatprep.mubr.msk.bf16.mxu0 %vm353_vm0, %v1412_v39  ;;  %1529 = vmatprep.mubr.msk.bf16.mxu1 %vm353_vm0, %v1515_v40 }
  0x3f   : > { %499 = vmatpush1.bf16.msra.mxu0 %v1698_v41  ;;  %1038 = vmatpush1.bf16.msra.mxu1 %v1699_v42 }
  0x40   : > { %500 = vmatprep.subr.bf16.mxu0 %v1798_v1  ;;  %1039 = vmatprep.subr.bf16.mxu1 %v1798_v1 }
  0x42   : > { %401 = vmatmul.mubr.bf16.gmra.mrb[4].mxu0 %v1411_v43  ;;  %940 = vmatmul.mubr.bf16.gmra.mrb[4].mxu1 %v1514_v46 }
  0x43   : > { %501 = vmatpush1.bf16.msra.mxu0 %v1700_v45  ;;  %1040 = vmatpush1.bf16.msra.mxu1 %v1701_v47 }
  0x44   : > { %502 = vmatprep.subr.bf16.mxu0 %v1798_v1  ;;  %1041 = vmatprep.subr.bf16.mxu1 %v1798_v1 }
  0x45   : > { %1443 = vmatprep.mubr.msk.bf16.mxu0 %vm353_vm0, %v1428_v48  ;;  %1546 = vmatprep.mubr.msk.bf16.mxu1 %vm353_vm0, %v2040_v49 }
  0x47   : > { %503 = vmatpush1.bf16.msra.mxu0 %v1702_v50  ;;  %1042 = vmatpush1.bf16.msra.mxu1 %v1703_v51 }
  0x48   : > { %504 = vmatprep.subr.bf16.mxu0 %v1798_v1  ;;  %1043 = vmatprep.subr.bf16.mxu1 %v1798_v1 }
  0x4b   : > { %505 = vmatpush1.bf16.msra.mxu0 %v1704_v52  ;;  %1044 = vmatpush1.bf16.msra.mxu1 %v1705_v53 }
  0x4c   : > { %506 = vmatprep.subr.bf16.mxu0 %v1798_v1  ;;  %1045 = vmatprep.subr.bf16.mxu1 %v1798_v1 }
  0x4f   : > { %507 = vmatpush1.bf16.msra.mxu0 %v1706_v54  ;;  %1046 = vmatpush1.bf16.msra.mxu1 %v1707_v55 }
  0x50   : > { %508 = vmatprep.subr.bf16.mxu0 %v1798_v1  ;;  %1047 = vmatprep.subr.bf16.mxu1 %v1798_v1 }
  0x53   : > { %509 = vmatpush1.bf16.msra.mxu0 %v1708_v56  ;;  %1048 = vmatpush1.bf16.msra.mxu1 %v1709_v57  ;;  %v1487_v57 = vld [vmem:[%s2286_s2] ss:$0 sm:$0xff] }
  0x54   : > { %510 = vmatprep.subr.bf16.mxu0 %v1798_v1  ;;  %1049 = vmatprep.subr.bf16.mxu1 %v1798_v1 }
  0x57   : > { %511 = vmatpush1.bf16.msra.mxu0 %v1710_v58  ;;  %1050 = vmatpush1.bf16.msra.mxu1 %v1711_v59 }
  0x58   : > { %512 = vmatprep.subr.bf16.mxu0 %v1798_v1  ;;  %1051 = vmatprep.subr.bf16.mxu1 %v1798_v1 }
  0x5b   : > { %513 = vmatpush1.bf16.msra.mxu0 %v1712_v63  ;;  %1052 = vmatpush1.bf16.msra.mxu1 %v1713_v0 }
  0x5c   : > { %514 = vmatprep.subr.bf16.mxu0 %v1798_v1  ;;  %1053 = vmatprep.subr.bf16.mxu1 %v1798_v1 }
  0x5f   : > { %515 = vmatpush1.bf16.msra.mxu0 %v1714_v2  ;;  %1054 = vmatpush1.bf16.msra.mxu1 %v1715_v3 }
  0x60   : > { %516 = vmatprep.subr.bf16.mxu0 %v1798_v1  ;;  %1055 = vmatprep.subr.bf16.mxu1 %v1798_v1 }
  0x63   : > { %517 = vmatpush1.bf16.msra.mxu0 %v1719_v4  ;;  %1056 = vmatpush1.bf16.msra.mxu1 %v1721_v5 }
  0x64   : > { %518 = vmatprep.subr.bf16.mxu0 %v1798_v1  ;;  %1057 = vmatprep.subr.bf16.mxu1 %v1798_v1 }
  0x67   : > { %519 = vmatpush1.bf16.msra.mxu0 %v1722_v6  ;;  %1058 = vmatpush1.bf16.msra.mxu1 %v1723_v7 }
  0x68   : > { %670 = vmatprep.subr.bf16.mxu0 %v1798_v1  ;;  %1208 = vmatprep.subr.bf16.mxu1 %v1798_v1 }
  0x6a   : > { %529 = vmatmul.mubr.bf16.vlgmr.msra.gmra.mrb[0].mxu0 %v1427_v8  ;;  %1068 = vmatmul.mubr.bf16.vlgmr.msra.gmra.mrb[0].mxu1 %v2128_v9 }
  0x6b   : > { %671 = vmatpush1.bf16.msra.mxu0 %v1728_v10  ;;  %1209 = vmatpush1.bf16.msra.mxu1 %v1729_v11 }
  0x6c   : > { %672 = vmatprep.subr.bf16.mxu0 %v1798_v1  ;;  %1210 = vmatprep.subr.bf16.mxu1 %v1798_v1 }
  0x6d   : > { %1444 = vmatprep.mubr.msk.bf16.mxu0 %vm353_vm0, %v1430_v12  ;;  %1547 = vmatprep.mubr.msk.bf16.mxu1 %vm353_vm0, %v1533_v13 }
  0x6f   : > { %673 = vmatpush1.bf16.msra.mxu0 %v1730_v14  ;;  %1211 = vmatpush1.bf16.msra.mxu1 %v1731_v15 }
  0x70   : > { %674 = vmatprep.subr.bf16.mxu0 %v1798_v1  ;;  %1212 = vmatprep.subr.bf16.mxu1 %v1798_v1 }
  0x72   : > { %537 = vmatmul.mubr.bf16.gmra.mrb[4].mxu0 %v2155_v17  ;;  %1076 = vmatmul.mubr.bf16.gmra.mrb[4].mxu1 %v2162_v20 }
  0x73   : > { %675 = vmatpush1.bf16.msra.mxu0 %v1732_v18  ;;  %1213 = vmatpush1.bf16.msra.mxu1 %v1733_v21 }
  0x74   : > { %676 = vmatprep.subr.bf16.mxu0 %v1798_v1  ;;  %1214 = vmatprep.subr.bf16.mxu1 %v1798_v1 }
  0x75   : > { %1485 = vmatprep.mubr.msk.bf16.mxu0 %vm353_vm0, %v1430_v12  ;;  %1588 = vmatprep.mubr.msk.bf16.mxu1 %vm353_vm0, %v1533_v13 }
  0x77   : > { %677 = vmatpush1.bf16.msra.mxu0 %v1734_v16  ;;  %1215 = vmatpush1.bf16.msra.mxu1 %v1735_v19 }
  0x78   : > { %678 = vmatprep.subr.bf16.mxu0 %v1798_v1  ;;  %1216 = vmatprep.subr.bf16.mxu1 %v1798_v1 }
  0x7b   : > { %679 = vmatpush1.bf16.msra.mxu0 %v1736_v22  ;;  %1217 = vmatpush1.bf16.msra.mxu1 %v1737_v23 }
  0x7c   : > { %680 = vmatprep.subr.bf16.mxu0 %v1798_v1  ;;  %1218 = vmatprep.subr.bf16.mxu1 %v1798_v1 }
  0x7f   : > { %681 = vmatpush1.bf16.msra.mxu0 %v1738_v24  ;;  %1219 = vmatpush1.bf16.msra.mxu1 %v1739_v25 }
  0x80   : > { %682 = vmatprep.subr.bf16.mxu0 %v1798_v1  ;;  %1220 = vmatprep.subr.bf16.mxu1 %v1798_v1 }
  0x83   : > { %683 = vmatpush1.bf16.msra.mxu0 %v1740_v26  ;;  %1221 = vmatpush1.bf16.msra.mxu1 %v1741_v27 }
  0x84   : > { %684 = vmatprep.subr.bf16.mxu0 %v1798_v1  ;;  %1222 = vmatprep.subr.bf16.mxu1 %v1798_v1 }
  0x87   : > { %685 = vmatpush1.bf16.msra.mxu0 %v1742_v28  ;;  %1223 = vmatpush1.bf16.msra.mxu1 %v1743_v29 }
  0x88   : > { %686 = vmatprep.subr.bf16.mxu0 %v1798_v1  ;;  %1224 = vmatprep.subr.bf16.mxu1 %v1798_v1 }
  0x8b   : > { %687 = vmatpush1.bf16.msra.mxu0 %v1744_v30  ;;  %1225 = vmatpush1.bf16.msra.mxu1 %v1745_v31 }
  0x8c   : > { %688 = vmatprep.subr.bf16.mxu0 %v1798_v1  ;;  %1226 = vmatprep.subr.bf16.mxu1 %v1798_v1 }
  0x8f   : > { %689 = vmatpush1.bf16.msra.mxu0 %v1746_v32  ;;  %1227 = vmatpush1.bf16.msra.mxu1 %v1747_v33 }
  0x90   : > { %690 = vmatprep.subr.bf16.mxu0 %v1798_v1  ;;  %1228 = vmatprep.subr.bf16.mxu1 %v1798_v1 }
  0x93   : > { %691 = vmatpush1.bf16.msra.mxu0 %v1752_v34  ;;  %1229 = vmatpush1.bf16.msra.mxu1 %v1753_v35 }
  0x94   : > { %692 = vmatprep.subr.bf16.mxu0 %v1798_v1  ;;  %1230 = vmatprep.subr.bf16.mxu1 %v1798_v1 }
  0x97   : > { %693 = vmatpush1.bf16.msra.mxu0 %v1754_v36  ;;  %1231 = vmatpush1.bf16.msra.mxu1 %v1755_v38 }
  0x9a   : > { %703 = vmatmul.mubr.bf16.vlgmr.msra.gmra.mrb[0].mxu0 %v2155_v17  ;;  %1241 = vmatmul.mubr.bf16.vlgmr.msra.gmra.mrb[0].mxu1 %v2162_v20 }
  0x9b   : > { %1486 = vmatprep.mubr.msk.bf16.mxu0 %vm353_vm0, %v2040_v49  ;;  %1589 = vmatprep.mubr.msk.bf16.mxu1 %vm353_vm0, %v1575_v61 }
  0xa2   : > { %711 = vmatmul.mubr.bf16.gmra.mrb[4].mxu0 %v2128_v9  ;;  %1249 = vmatmul.mubr.bf16.gmra.mrb[4].mxu1 %v1574_v62 }
 0x16d   : > { %v704_v1 = vpop.f32.mrb[0].mxu0  ;;  %v1242_v39 = vpop.f32.mrb[0].mxu1 }
 0x16e   : > { %v706_v40 = vpop.f32.mrb[1].mxu0  ;;  %v1244_v41 = vpop.f32.mrb[1].mxu1 }
 0x16f   : > { %v707_v42 = vpop.f32.mrb[2].mxu0  ;;  %v1245_v44 = vpop.f32.mrb[2].mxu1 }
 0x170   : > { %v723_v43 = vmax.f32 %v704_v1, %v707_v42  ;;  %v709_v45 = vpop.f32.mrb[3].mxu0  ;;  %v1261_v46 = vmax.f32 %v1242_v39, %v1245_v44  ;;  %v1247_v47 = vpop.f32.mrb[3].mxu1 }
 0x172   : > { %725 = vrot.lane.b32.xlu0 %v723_v43, %s1799_s29  ;;  %1263 = vrot.lane.b32.xlu1 %v1261_v46, %s1799_s29 }
 0x175   : > { %v712_v48 = vpop.f32.mrb[4].mxu0  ;;  %v1250_v49 = vpop.f32.mrb[4].mxu1 }
 0x176   : > { %v714_v50 = vpop.f32.mrb[5].mxu0  ;;  %v1252_v37 = vpop.f32.mrb[5].mxu1 }
 0x177   : > { %v715_v51 = vpop.f32.mrb[6].mxu0  ;;  %v1253_v53 = vpop.f32.mrb[6].mxu1 }
 0x178   : > { %v740_v52 = vmax.f32 %v712_v48, %v715_v51  ;;  %v717_v54 = vpop.f32.mrb[7].mxu0  ;;  %v1271_v55 = vmax.f32 %v1250_v49, %v1253_v53  ;;  %v1255_v56 = vpop.f32.mrb[7].mxu1 }
 0x17a   : > { %742 = vrot.lane.b32.xlu0 %v740_v52, %s1799_s29  ;;  %1273 = vrot.lane.b32.xlu1 %v1271_v55, %s1799_s29 }
 0x1e4   : > { %v726_v58 = vpop.permute.xlu0 %725  ;;  %v1264_v59 = vpop.permute.xlu1 %1263 }
 0x1e5   : > { %v728_v60 = vmax.f32 %v723_v43, %v726_v58  ;;  %v1266_v61 = vmax.f32 %v1261_v46, %v1264_v59 }
 0x1e7   : > { %v735_v62 = vadd.f32 %v1487_v57, %v728_v60  ;;  %v1267_v63 = vadd.f32 %v1487_v57, %v1266_v61 }
 0x1e9   : > { %v736_v0 = vmax.f32 %v735_v62, 0.0  ;;  %v1268_v2 = vmax.f32 %v1267_v63, 0.0 }
 0x1eb   : > { %v737_v3 = vpack.c.bf16 %v736_v0, %v736_v0  ;;  %v1269_v4 = vpack.c.bf16 %v1268_v2, %v1268_v2 }
 0x1ec   : > { %v743_v5 = vpop.permute.xlu0 %742  ;;  %v1274_v6 = vpop.permute.xlu1 %1273 }
 0x1ed   : > { %739 = vst.msk [vmem:[%s206_s21] sm:$0xf] %vm738_vm1, %v737_v3  ;;  %v745_v7 = vmax.f32 %v740_v52, %v743_v5  ;;  %1270 = vst.msk [vmem:[%s206_s21 + $0x8] sm:$0xf] %vm738_vm1, %v1269_v4  ;;  %v1276_v8 = vmax.f32 %v1271_v55, %v1274_v6 }
 0x1ef   : > { %v746_v9 = vadd.f32 %v1487_v57, %v745_v7  ;;  %v1277_v10 = vadd.f32 %v1487_v57, %v1276_v8 }
 0x1f1   : > { %v747_v11 = vmax.f32 %v746_v9, 0.0  ;;  %v1278_v12 = vmax.f32 %v1277_v10, 0.0 }
 0x1f3   : > { %v748_v13 = vpack.c.bf16 %v747_v11, %v747_v11  ;;  %v1279_v14 = vpack.c.bf16 %v1278_v12, %v1278_v12 }
 0x1f5   : > { %749 = vst.msk [vmem:[%s206_s21 + $0x4] sm:$0xf] %vm738_vm1, %v748_v13  ;;  %1280 = vst.msk [vmem:[%s206_s21 + $0xc] sm:$0xf] %vm738_vm1, %v1279_v14 }
 0x1f6 PF: > { %s13_s16 = sadd.s32 1, %s1796_s16   ;;  %s2288_s12 = smov %s1788_s14 }
 0x1f7   : > { %p10_p7 = scmp.ge.s32.totalorder %s13_s16, 10   ;;  %s2289_s13 = smov %s1792_s15 }
 0x1f8   : > { %s2290_s14 = smov %s2293_s17  ;;  %s2291_s15 = smov %s2297_s18 }
 0x1f9   :  { %12 = sbr.rel (!%p10_p7) target bundleno = 3 (0x3), region = 64 }

// kernel: simple3dcnn_forward.5
= control target key start
LH: loop header
LB: loop body
LE: loop exit
PB: predicated region body
PF: predicated region fallthrough
CT: control target
= control target key end

     0   :  { %s4394_s15 = smov 0   ;;  %s4396_s16 = smov 0   ;;  %s4772_s0 = inlined_call_operand.vmem [shape: bf16[2,4096], index: 0, kind: input, shape index: {}]   ;;  %s4773_s1 = inlined_call_operand.vmem [shape: bf16[2,4096,64], index: 1, kind: input, shape index: {}]   ;;  %s4774_s2 = inlined_call_operand.vmem [shape: f32[2,1,64], index: 2, kind: input, shape index: {}]   ;;  %s4775_s3 = inlined_call_operand.vmem [shape: bf16[2,64,2], index: 3, kind: input, shape index: {}]   ;;  %s4776_s4 = inlined_call_operand.vmem [shape: f32[2,2,2], index: 4, kind: output, shape index: {}]  }
   0x1   :  { %s4398_s17 = smov 0  }
   0x2 LB: > { %s26_s18 = sadd.s32 1, %s4360_s16  ;;  %p3410_p0 = scmp.ge.s32.totalorder %s4364_s17, 1  ;;  %s4364_s17 = sphi %s4398_s17, %s14_s17   ;;  %s4360_s16 = sphi %s4396_s16, %s4778_s16   ;;  %s4356_s15 = sphi %s4394_s15, %s4777_s15  }
   0x3   : > { %p28_p1 = scmp.ge.s32.totalorder %s26_s18, 2  ;;  %p209_p2 = scmp.lt.s32.totalorder %s4364_s17, 3 }
   0x5   : > { %s4780_s18 = smov (%p28_p1, %s26_s18), 0  ;;  %p210_p3 = pnand %p3410_p0, %p209_p2 }
   0x6   : > { %p256_p4 = scmp.lt.s32.totalorder (!%p210_p3), %s4356_s15, 1  ;;  %v809_v0 = vlaneseq (!%p210_p3)  ;;  %v4366_v1 = vmov (!%p210_p3), 1966171168   ;;  %v285_v5 = vld [vmem:[%s4772_s0] sm:$0xff] (!%p210_p3)  ;;  %vm282_vm0 = vcmask (!%p210_p3), 517120   ;;  %vm4368_vm1 = vmmov (!%p210_p3), 0  }
   0x7   : > { %213 = sbr.rel (%p210_p3) target bundleno = 725 (0x2d5), region = 36  ;;  %v807_v2 = vunpack.c.l.s4 (!%p210_p3), %v4366_v1  ;;  %v805_v30 = vcombine.high (!%p210_p3), %v285_v5, %v285_v5  ;;  %vm3258_vm2 = vcmask (!%p210_p3), 523264   ;;  %vm3302_vm3 = vcmask (!%p210_p3), 9216  }
   0x8   : > { %v810_v3 = vshrl.u32 (!%p210_p3), %v809_v0, 7 }
   0x9   : > { %v808_v4 = vunpack.c.0.s8 (!%p210_p3), %v807_v2 }
   0xb   : > { %v4423_v6 = vsub.s32 (!%p210_p3), %v808_v4, %v810_v3  ;;  %v4492_v4 = vld [vmem:[%s4772_s0 + $0x8] sm:$0xff] (!%p210_p3) }
   0xd   : > { %v4428_v9 = vrot.slane (!%p210_p3), %v285_v5, %v4423_v6  ;;  %v4455_v35 = vrot.slane (!%p210_p3), %v805_v30, %v4423_v6 }
   0xe   : > { %s4782_s15 = smov (!%p256_p4, %s4356_s15), 1 }
   0xf   : > { %s3680_s19 = sshll.u32 %s4782_s15, 11  ;;  %v820_v12 = vcombine.high %v4428_v9, %v4428_v9  ;;  %v821_v40 = vcombine.high %v4455_v35, %v4455_v35  ;;  %v828_v43 = vrot.slane %v4428_v9, %v4423_v6  ;;  %s3681_s5 = sshll.u32 %s4782_s15, 5 }
  0x10   : > { %s4421_s24 = scalar_lea.vmem %s4773_s1, %s3680_s19  ;;  %s272_s8 = scalar_lea.vmem %s4775_s3, %s3681_s5 }
  0x11   : > { %v4078_v7 = vld [vmem:[%s4421_s24 + $0x40] sm:$0xff]   ;;  %v4082_v13 = vld [vmem:[%s4421_s24 + $0x48] sm:$0xff]   ;;  %v842_v15 = vrot.slane %v820_v12, %v4423_v6  ;;  %v4086_v19 = vld [vmem:[%s4421_s24 + $0x50] sm:$0xff]   ;;  %v849_v46 = vrot.slane %v821_v40, %v4423_v6  ;;  %v850_v48 = vcombine.high %v828_v43, %v828_v43  ;;  %s267_s11 = scalar_lea.vmem %s4774_s2, %s4782_s15  ;;  %s3415_s12 = sshll.u32 %s4782_s15, 1 }
  0x12   : > { %v4079_v8 = vld [vmem:[%s4421_s24 + $0xc0] sm:$0xff]   ;;  %3682 = vmatprep.subr.bf16.mxu0 %v4078_v7  ;;  %v4083_v14 = vld [vmem:[%s4421_s24 + $0xc8] sm:$0xff]   ;;  %v4087_v20 = vld [vmem:[%s4421_s24 + $0xd0] sm:$0xff]   ;;  %s276_s19 = scalar_lea.vmem %s4776_s4, %s3415_s12 }
  0x13   : > { %v4080_v10 = vld [vmem:[%s4421_s24] sm:$0xff]   ;;  %3704 = vmatprep.subr.bf16.mxu1 %v4079_v8  ;;  %v4084_v16 = vld [vmem:[%s4421_s24 + $0x8] sm:$0xff]   ;;  %2601 = vmatprep.mubr.bf16.mxu0 %v842_v15  ;;  %v852_v18 = vcombine.high %v842_v15, %v842_v15  ;;  %v4088_v21 = vld [vmem:[%s4421_s24 + $0x10] sm:$0xff]   ;;  %v853_v52 = vcombine.high %v849_v46, %v849_v46 }
  0x14   : > { %v4081_v11 = vld [vmem:[%s4421_s24 + $0x80] sm:$0xff]   ;;  %3683 = vmatpush3.bf16.msra.mxu0 %v4080_v10  ;;  %v4085_v17 = vld [vmem:[%s4421_s24 + $0x88] sm:$0xff]   ;;  %v4089_v22 = vld [vmem:[%s4421_s24 + $0x90] sm:$0xff]  }
  0x15   : > { %3705 = vmatpush3.bf16.msra.mxu1 %v4081_v11  ;;  %3684 = vmatprep.subr.bf16.mxu0 %v4082_v13  ;;  %v4090_v23 = vld [vmem:[%s4421_s24 + $0x58] sm:$0xff]   ;;  %v4094_v27 = vld [vmem:[%s4421_s24 + $0x60] sm:$0xff]   ;;  %v4098_v32 = vld [vmem:[%s4421_s24 + $0x68] sm:$0xff]   ;;  %v4501_v11 = vrot.slane %v4492_v4, %v4423_v6 }
  0x16   : > { %3706 = vmatprep.subr.bf16.mxu1 %v4083_v14  ;;  %2641 = vmatprep.mubr.bf16.mxu1 %v852_v18  ;;  %v4091_v24 = vld [vmem:[%s4421_s24 + $0xd8] sm:$0xff]   ;;  %v4095_v28 = vld [vmem:[%s4421_s24 + $0xe0] sm:$0xff]   ;;  %v4099_v33 = vld [vmem:[%s4421_s24 + $0xe8] sm:$0xff]  }
  0x17   : > { %v4092_v25 = vld [vmem:[%s4421_s24 + $0x18] sm:$0xff]   ;;  %v4096_v29 = vld [vmem:[%s4421_s24 + $0x20] sm:$0xff]   ;;  %v4100_v34 = vld [vmem:[%s4421_s24 + $0x28] sm:$0xff]  }
  0x18   : > { %3685 = vmatpush3.bf16.msra.mxu0 %v4084_v16  ;;  %v4093_v26 = vld [vmem:[%s4421_s24 + $0x98] sm:$0xff]   ;;  %v4097_v31 = vld [vmem:[%s4421_s24 + $0xa0] sm:$0xff]   ;;  %v4101_v36 = vld [vmem:[%s4421_s24 + $0xa8] sm:$0xff]   ;;  %v869_v16 = vcombine.high %v4501_v11, %v4501_v11 }
  0x19   : > { %3707 = vmatpush3.bf16.msra.mxu1 %v4085_v17  ;;  %3686 = vmatprep.subr.bf16.mxu0 %v4086_v19  ;;  %v4102_v37 = vld [vmem:[%s4421_s24 + $0x70] sm:$0xff]   ;;  %v4106_v42 = vld [vmem:[%s4421_s24 + $0x78] sm:$0xff]   ;;  %v4111_v49 = vld [vmem:[%s4421_s24 + $0x140] sm:$0xff]   ;;  %v835_v19 = vrot.slane %v4455_v35, %v4423_v6 }
  0x1a   : > { %3708 = vmatprep.subr.bf16.mxu1 %v4087_v20  ;;  %v4103_v38 = vld [vmem:[%s4421_s24 + $0xf0] sm:$0xff]   ;;  %v4107_v44 = vld [vmem:[%s4421_s24 + $0xf8] sm:$0xff]   ;;  %v4112_v50 = vld [vmem:[%s4421_s24 + $0x1c0] sm:$0xff]  }
  0x1b   : > { %v4104_v39 = vld [vmem:[%s4421_s24 + $0x30] sm:$0xff]   ;;  %v4108_v45 = vld [vmem:[%s4421_s24 + $0x38] sm:$0xff]   ;;  %v4113_v51 = vld [vmem:[%s4421_s24 + $0x100] sm:$0xff]  }
  0x1c   : > { %3687 = vmatpush3.bf16.msra.mxu0 %v4088_v21  ;;  %v4105_v41 = vld [vmem:[%s4421_s24 + $0xb0] sm:$0xff]   ;;  %v4109_v47 = vld [vmem:[%s4421_s24 + $0xb8] sm:$0xff]   ;;  %v4114_v53 = vld [vmem:[%s4421_s24 + $0x180] sm:$0xff]  }
  0x1d   : > { %3709 = vmatpush3.bf16.msra.mxu1 %v4089_v22  ;;  %3688 = vmatprep.subr.bf16.mxu0 %v4090_v23  ;;  %v4115_v54 = vld [vmem:[%s4421_s24 + $0x148] sm:$0xff]   ;;  %v4119_v58 = vld [vmem:[%s4421_s24 + $0x150] sm:$0xff]   ;;  %v4123_v62 = vld [vmem:[%s4421_s24 + $0x158] sm:$0xff]   ;;  %v891_v22 = vrot.slane %v869_v16, %v4423_v6 }
  0x1e   : > { %3710 = vmatprep.subr.bf16.mxu1 %v4091_v24  ;;  %v4116_v55 = vld [vmem:[%s4421_s24 + $0x1c8] sm:$0xff]   ;;  %v4120_v59 = vld [vmem:[%s4421_s24 + $0x1d0] sm:$0xff]   ;;  %v4124_v63 = vld [vmem:[%s4421_s24 + $0x1d8] sm:$0xff]   ;;  %v851_v24 = vcombine.high %v835_v19, %v835_v19 }
  0x1f   : > { %v4117_v56 = vld [vmem:[%s4421_s24 + $0x108] sm:$0xff]   ;;  %v4121_v60 = vld [vmem:[%s4421_s24 + $0x110] sm:$0xff]   ;;  %v4125_v0 = vld [vmem:[%s4421_s24 + $0x118] sm:$0xff]  }
  0x20   : > { %3689 = vmatpush3.bf16.msra.mxu0 %v4092_v25  ;;  %v4118_v57 = vld [vmem:[%s4421_s24 + $0x188] sm:$0xff]   ;;  %v4122_v61 = vld [vmem:[%s4421_s24 + $0x190] sm:$0xff]   ;;  %v4126_v1 = vld [vmem:[%s4421_s24 + $0x198] sm:$0xff]  }
  0x21   : > { %3711 = vmatpush3.bf16.msra.mxu1 %v4093_v26  ;;  %3690 = vmatprep.subr.bf16.mxu0 %v4094_v27  ;;  %v4127_v2 = vld [vmem:[%s4421_s24 + $0x160] sm:$0xff]   ;;  %v4131_v8 = vld [vmem:[%s4421_s24 + $0x168] sm:$0xff]   ;;  %v4135_v13 = vld [vmem:[%s4421_s24 + $0x170] sm:$0xff]  }
  0x22   : > { %3712 = vmatprep.subr.bf16.mxu1 %v4095_v28  ;;  %v4128_v3 = vld [vmem:[%s4421_s24 + $0x1e0] sm:$0xff]   ;;  %v4132_v9 = vld [vmem:[%s4421_s24 + $0x1e8] sm:$0xff]   ;;  %v4136_v14 = vld [vmem:[%s4421_s24 + $0x1f0] sm:$0xff]   ;;  %v901_v28 = vcombine.high %v891_v22, %v891_v22 }
  0x23   : > { %v4129_v5 = vld [vmem:[%s4421_s24 + $0x120] sm:$0xff]   ;;  %v4133_v10 = vld [vmem:[%s4421_s24 + $0x128] sm:$0xff]   ;;  %v4137_v15 = vld [vmem:[%s4421_s24 + $0x130] sm:$0xff]  }
  0x24   : > { %3691 = vmatpush3.bf16.msra.mxu0 %v4096_v29  ;;  %v4130_v7 = vld [vmem:[%s4421_s24 + $0x1a0] sm:$0xff]   ;;  %v4134_v12 = vld [vmem:[%s4421_s24 + $0x1a8] sm:$0xff]   ;;  %v4138_v17 = vld [vmem:[%s4421_s24 + $0x1b0] sm:$0xff]  }
  0x25   : > { %3713 = vmatpush3.bf16.msra.mxu1 %v4097_v31  ;;  %3692 = vmatprep.subr.bf16.mxu0 %v4098_v32  ;;  %v4139_v18 = vld [vmem:[%s4421_s24 + $0x178] sm:$0xff]   ;;  %v4143_v25 = vld [vmem:[%s4421_s24 + $0x240] sm:$0xff]   ;;  %v4147_v30 = vld [vmem:[%s4421_s24 + $0x248] sm:$0xff]  }
  0x26   : > { %3714 = vmatprep.subr.bf16.mxu1 %v4099_v33  ;;  %v4140_v20 = vld [vmem:[%s4421_s24 + $0x1f8] sm:$0xff]   ;;  %v4144_v26 = vld [vmem:[%s4421_s24 + $0x2c0] sm:$0xff]   ;;  %v4148_v31 = vld [vmem:[%s4421_s24 + $0x2c8] sm:$0xff]  }
  0x27   : > { %v4141_v21 = vld [vmem:[%s4421_s24 + $0x138] sm:$0xff]   ;;  %v4145_v27 = vld [vmem:[%s4421_s24 + $0x200] sm:$0xff]   ;;  %v4149_v32 = vld [vmem:[%s4421_s24 + $0x208] sm:$0xff]  }
  0x28   : > { %3693 = vmatpush3.bf16.msra.mxu0 %v4100_v34  ;;  %v4142_v23 = vld [vmem:[%s4421_s24 + $0x1b8] sm:$0xff]   ;;  %v4146_v29 = vld [vmem:[%s4421_s24 + $0x280] sm:$0xff]   ;;  %v4150_v33 = vld [vmem:[%s4421_s24 + $0x288] sm:$0xff]  }
  0x29   : > { %3715 = vmatpush3.bf16.msra.mxu1 %v4101_v36  ;;  %3694 = vmatprep.subr.bf16.mxu0 %v4102_v37  ;;  %v4151_v34 = vld [vmem:[%s4421_s24 + $0x250] sm:$0xff]   ;;  %v4157_v40 = vld [vmem:[%s4421_s24 + $0x218] sm:$0xff]  }
  0x2a   : > { %3716 = vmatprep.subr.bf16.mxu1 %v4103_v38  ;;  %v4152_v35 = vld [vmem:[%s4421_s24 + $0x2d0] sm:$0xff]   ;;  %v4155_v38 = vld [vmem:[%s4421_s24 + $0x258] sm:$0xff]  }
  0x2b   : > { %v4153_v36 = vld [vmem:[%s4421_s24 + $0x210] sm:$0xff]   ;;  %v4189_v16 = vld [vmem:[%s4421_s24 + $0x318] sm:$0xff]  }
  0x2c   : > { %3695 = vmatpush3.bf16.msra.mxu0 %v4104_v39  ;;  %v4154_v37 = vld [vmem:[%s4421_s24 + $0x290] sm:$0xff]   ;;  %v4156_v39 = vld [vmem:[%s4421_s24 + $0x2d8] sm:$0xff]  }
  0x2d   : > { %3717 = vmatpush3.bf16.msra.mxu1 %v4105_v41  ;;  %3696 = vmatprep.subr.bf16.mxu0 %v4106_v42  ;;  %v4158_v41 = vld [vmem:[%s4421_s24 + $0x298] sm:$0xff]   ;;  %v4159_v42 = vld [vmem:[%s4421_s24 + $0x260] sm:$0xff]  }
  0x2e   : > { %3718 = vmatprep.subr.bf16.mxu1 %v4107_v44  ;;  %v4161_v44 = vld [vmem:[%s4421_s24 + $0x220] sm:$0xff]  }
  0x30   : > { %3697 = vmatpush3.bf16.msra.mxu0 %v4108_v45  ;;  %v854_v45 = vcombine.high %v4492_v4, %v4492_v4  ;;  %v4178_v4 = vld [vmem:[%s4421_s24 + $0x380] sm:$0xff]  }
  0x31   : > { %3719 = vmatpush3.bf16.msra.mxu1 %v4109_v47  ;;  %3726 = vmatprep.subr.bf16.mxu0 %v4111_v49  ;;  %v4163_v47 = vld [vmem:[%s4421_s24 + $0x268] sm:$0xff]  }
  0x32   : > { %3748 = vmatprep.subr.bf16.mxu1 %v4112_v50  ;;  %v4165_v49 = vld [vmem:[%s4421_s24 + $0x228] sm:$0xff]   ;;  %v4543_v50 = vrot.slane %v854_v45, %v4423_v6  ;;  %v4217_v45 = vld [vmem:[%s4421_s24 + $0x4d0] sm:$0xff]  }
  0x33   : > { %2602 = vmatmul.mubr.bf16.vlgmr.msra.gmra.mrb[0].mxu0 %v828_v43  ;;  %v4160_v43 = vld [vmem:[%s4421_s24 + $0x2e0] sm:$0xff]  }
  0x34   : > { %2642 = vmatmul.mubr.bf16.vlgmr.msra.gmra.mrb[0].mxu1 %v850_v48  ;;  %3727 = vmatpush3.bf16.msra.mxu0 %v4113_v51  ;;  %v4164_v48 = vld [vmem:[%s4421_s24 + $0x2e8] sm:$0xff]  }
  0x35   : > { %3749 = vmatpush3.bf16.msra.mxu1 %v4114_v53  ;;  %2681 = vmatprep.mubr.bf16.mxu0 %v849_v46  ;;  %v4162_v46 = vld [vmem:[%s4421_s24 + $0x2a0] sm:$0xff]   ;;  %v4166_v51 = vld [vmem:[%s4421_s24 + $0x2a8] sm:$0xff]   ;;  %v4168_v53 = vld [vmem:[%s4421_s24 + $0x2f0] sm:$0xff]  }
  0x36   : > { %3728 = vmatprep.subr.bf16.mxu0 %v4115_v54  ;;  %2721 = vmatprep.mubr.bf16.mxu1 %v853_v52  ;;  %v4167_v52 = vld [vmem:[%s4421_s24 + $0x270] sm:$0xff]  }
  0x37   : > { %3750 = vmatprep.subr.bf16.mxu1 %v4116_v55  ;;  %v4169_v54 = vld [vmem:[%s4421_s24 + $0x230] sm:$0xff]   ;;  %v870_v55 = vcombine.high %v4543_v50, %v4543_v50 }
  0x38   : > { %3729 = vmatpush3.bf16.msra.mxu0 %v4117_v56  ;;  %v4170_v56 = vld [vmem:[%s4421_s24 + $0x2b0] sm:$0xff]  }
  0x39   : > { %3751 = vmatpush3.bf16.msra.mxu1 %v4118_v57  ;;  %3730 = vmatprep.subr.bf16.mxu0 %v4119_v58  ;;  %v4171_v57 = vld [vmem:[%s4421_s24 + $0x278] sm:$0xff]   ;;  %v877_v58 = vrot.slane %v4501_v11, %v4423_v6  ;;  %v4184_v11 = vld [vmem:[%s4421_s24 + $0x3d0] sm:$0xff]  }
  0x3a   : > { %3752 = vmatprep.subr.bf16.mxu1 %v4120_v59  ;;  %v4172_v59 = vld [vmem:[%s4421_s24 + $0x2f8] sm:$0xff]  }
  0x3c   : > { %3731 = vmatpush3.bf16.msra.mxu0 %v4121_v60  ;;  %v4173_v60 = vld [vmem:[%s4421_s24 + $0x238] sm:$0xff]  }
  0x3d   : > { %3753 = vmatpush3.bf16.msra.mxu1 %v4122_v61  ;;  %3732 = vmatprep.subr.bf16.mxu0 %v4123_v62  ;;  %v898_v61 = vrot.slane %v870_v55, %v4423_v6  ;;  %v4174_v62 = vld [vmem:[%s4421_s24 + $0x2b8] sm:$0xff]   ;;  %v4227_v55 = vld [vmem:[%s4421_s24 + $0x4a0] sm:$0xff]  }
  0x3e   : > { %3754 = vmatprep.subr.bf16.mxu1 %v4124_v63  ;;  %v899_v63 = vcombine.high %v877_v58, %v877_v58 }
  0x40   : > { %3733 = vmatpush3.bf16.msra.mxu0 %v4125_v0  ;;  %v4175_v0 = vld [vmem:[%s4421_s24 + $0x340] sm:$0xff]  }
  0x41   : > { %3755 = vmatpush3.bf16.msra.mxu1 %v4126_v1  ;;  %3734 = vmatprep.subr.bf16.mxu0 %v4127_v2  ;;  %v4176_v1 = vld [vmem:[%s4421_s24 + $0x3c0] sm:$0xff]  }
  0x42   : > { %3756 = vmatprep.subr.bf16.mxu1 %v4128_v3  ;;  %v4177_v2 = vld [vmem:[%s4421_s24 + $0x300] sm:$0xff]   ;;  %v902_v3 = vcombine.high %v898_v61, %v898_v61 }
  0x44   : > { %3735 = vmatpush3.bf16.msra.mxu0 %v4129_v5  ;;  %v4179_v5 = vld [vmem:[%s4421_s24 + $0x348] sm:$0xff]  }
  0x45   : > { %3757 = vmatpush3.bf16.msra.mxu1 %v4130_v7  ;;  %3736 = vmatprep.subr.bf16.mxu0 %v4131_v8  ;;  %v4180_v7 = vld [vmem:[%s4421_s24 + $0x3c8] sm:$0xff]  }
  0x46   : > { %3758 = vmatprep.subr.bf16.mxu1 %v4132_v9  ;;  %v4181_v8 = vld [vmem:[%s4421_s24 + $0x308] sm:$0xff]  }
  0x47   : > { %v4182_v9 = vld [vmem:[%s4421_s24 + $0x388] sm:$0xff]  }
  0x48   : > { %3737 = vmatpush3.bf16.msra.mxu0 %v4133_v10  ;;  %v4183_v10 = vld [vmem:[%s4421_s24 + $0x350] sm:$0xff]  }
  0x49   : > { %3759 = vmatpush3.bf16.msra.mxu1 %v4134_v12  ;;  %3738 = vmatprep.subr.bf16.mxu0 %v4135_v13  ;;  %v4185_v12 = vld [vmem:[%s4421_s24 + $0x310] sm:$0xff]  }
  0x4a   : > { %3760 = vmatprep.subr.bf16.mxu1 %v4136_v14  ;;  %v4186_v13 = vld [vmem:[%s4421_s24 + $0x390] sm:$0xff]   ;;  %v4187_v14 = vld [vmem:[%s4421_s24 + $0x358] sm:$0xff]  }
  0x4c   : > { %3739 = vmatpush3.bf16.msra.mxu0 %v4137_v15  ;;  %v4188_v15 = vld [vmem:[%s4421_s24 + $0x3d8] sm:$0xff]  }
  0x4d   : > { %3761 = vmatpush3.bf16.msra.mxu1 %v4138_v17  ;;  %3740 = vmatprep.subr.bf16.mxu0 %v4139_v18  ;;  %v4190_v17 = vld [vmem:[%s4421_s24 + $0x398] sm:$0xff]   ;;  %v4191_v18 = vld [vmem:[%s4421_s24 + $0x360] sm:$0xff]  }
  0x4e   : > { %3762 = vmatprep.subr.bf16.mxu1 %v4140_v20  ;;  %v4193_v20 = vld [vmem:[%s4421_s24 + $0x320] sm:$0xff]  }
  0x50   : > { %3741 = vmatpush3.bf16.msra.mxu0 %v4141_v21  ;;  %v4194_v21 = vld [vmem:[%s4421_s24 + $0x3a0] sm:$0xff]  }
  0x51   : > { %3763 = vmatpush3.bf16.msra.mxu1 %v4142_v23  ;;  %3770 = vmatprep.subr.bf16.mxu0 %v4143_v25  ;;  %v4196_v23 = vld [vmem:[%s4421_s24 + $0x3e8] sm:$0xff]  }
  0x52   : > { %3792 = vmatprep.subr.bf16.mxu1 %v4144_v26  ;;  %v4198_v25 = vld [vmem:[%s4421_s24 + $0x3a8] sm:$0xff]   ;;  %v4199_v26 = vld [vmem:[%s4421_s24 + $0x370] sm:$0xff]  }
  0x53   : > { %2682 = vmatmul.mubr.bf16.vlgmr.msra.gmra.mrb[4].mxu0 %v835_v19  ;;  %v4192_v19 = vld [vmem:[%s4421_s24 + $0x3e0] sm:$0xff]  }
  0x54   : > { %2722 = vmatmul.mubr.bf16.vlgmr.msra.gmra.mrb[4].mxu1 %v851_v24  ;;  %3771 = vmatpush3.bf16.msra.mxu0 %v4145_v27  ;;  %v4197_v24 = vld [vmem:[%s4421_s24 + $0x328] sm:$0xff]   ;;  %v4200_v27 = vld [vmem:[%s4421_s24 + $0x3f0] sm:$0xff]  }
  0x55   : > { %3793 = vmatpush3.bf16.msra.mxu1 %v4146_v29  ;;  %2761 = vmatprep.mubr.bf16.mxu0 %v891_v22  ;;  %v4195_v22 = vld [vmem:[%s4421_s24 + $0x368] sm:$0xff]   ;;  %v4202_v29 = vld [vmem:[%s4421_s24 + $0x3b0] sm:$0xff]  }
  0x56   : > { %3772 = vmatprep.subr.bf16.mxu0 %v4147_v30  ;;  %2801 = vmatprep.mubr.bf16.mxu1 %v901_v28  ;;  %v4201_v28 = vld [vmem:[%s4421_s24 + $0x330] sm:$0xff]   ;;  %v4203_v30 = vld [vmem:[%s4421_s24 + $0x378] sm:$0xff]  }
  0x57   : > { %3794 = vmatprep.subr.bf16.mxu1 %v4148_v31  ;;  %v884_v31 = vrot.slane %v4543_v50, %v4423_v6  ;;  %v4222_v50 = vld [vmem:[%s4421_s24 + $0x418] sm:$0xff]  }
  0x58   : > { %3773 = vmatpush3.bf16.msra.mxu0 %v4149_v32  ;;  %v4204_v32 = vld [vmem:[%s4421_s24 + $0x3f8] sm:$0xff]  }
  0x59   : > { %3795 = vmatpush3.bf16.msra.mxu1 %v4150_v33  ;;  %3774 = vmatprep.subr.bf16.mxu0 %v4151_v34  ;;  %v4205_v33 = vld [vmem:[%s4421_s24 + $0x338] sm:$0xff]  }
  0x5a   : > { %3796 = vmatprep.subr.bf16.mxu1 %v4152_v35  ;;  %v4206_v34 = vld [vmem:[%s4421_s24 + $0x3b8] sm:$0xff]   ;;  %v900_v35 = vcombine.high %v884_v31, %v884_v31 }
  0x5c   : > { %3775 = vmatpush3.bf16.msra.mxu0 %v4153_v36  ;;  %v4208_v36 = vld [vmem:[%s4421_s24 + $0x440] sm:$0xff]  }
  0x5d   : > { %3797 = vmatpush3.bf16.msra.mxu1 %v4154_v37  ;;  %3776 = vmatprep.subr.bf16.mxu0 %v4155_v38  ;;  %v4209_v37 = vld [vmem:[%s4421_s24 + $0x4c0] sm:$0xff]  }
  0x5e   : > { %3798 = vmatprep.subr.bf16.mxu1 %v4156_v39  ;;  %v4210_v38 = vld [vmem:[%s4421_s24 + $0x400] sm:$0xff]  }
  0x5f   : > { %v4211_v39 = vld [vmem:[%s4421_s24 + $0x480] sm:$0xff]  }
  0x60   : > { %3777 = vmatpush3.bf16.msra.mxu0 %v4157_v40  ;;  %v4212_v40 = vld [vmem:[%s4421_s24 + $0x448] sm:$0xff]  }
  0x61   : > { %3799 = vmatpush3.bf16.msra.mxu1 %v4158_v41  ;;  %3778 = vmatprep.subr.bf16.mxu0 %v4159_v42  ;;  %v4213_v41 = vld [vmem:[%s4421_s24 + $0x4c8] sm:$0xff]  }
  0x62   : > { %3800 = vmatprep.subr.bf16.mxu1 %v4160_v43  ;;  %v4214_v42 = vld [vmem:[%s4421_s24 + $0x408] sm:$0xff]  }
  0x63   : > { %v4215_v43 = vld [vmem:[%s4421_s24 + $0x488] sm:$0xff]  }
  0x64   : > { %3779 = vmatpush3.bf16.msra.mxu0 %v4161_v44  ;;  %v4216_v44 = vld [vmem:[%s4421_s24 + $0x450] sm:$0xff]  }
  0x65   : > { %3801 = vmatpush3.bf16.msra.mxu1 %v4162_v46  ;;  %3780 = vmatprep.subr.bf16.mxu0 %v4163_v47  ;;  %v4218_v46 = vld [vmem:[%s4421_s24 + $0x410] sm:$0xff]  }
  0x66   : > { %3802 = vmatprep.subr.bf16.mxu1 %v4164_v48  ;;  %v4219_v47 = vld [vmem:[%s4421_s24 + $0x490] sm:$0xff]   ;;  %v4220_v48 = vld [vmem:[%s4421_s24 + $0x458] sm:$0xff]  }
  0x68   : > { %3781 = vmatpush3.bf16.msra.mxu0 %v4165_v49  ;;  %v4221_v49 = vld [vmem:[%s4421_s24 + $0x4d8] sm:$0xff]  }
  0x69   : > { %3803 = vmatpush3.bf16.msra.mxu1 %v4166_v51  ;;  %3782 = vmatprep.subr.bf16.mxu0 %v4167_v52  ;;  %v4223_v51 = vld [vmem:[%s4421_s24 + $0x498] sm:$0xff]   ;;  %v4224_v52 = vld [vmem:[%s4421_s24 + $0x460] sm:$0xff]  }
  0x6a   : > { %3804 = vmatprep.subr.bf16.mxu1 %v4168_v53  ;;  %v4225_v53 = vld [vmem:[%s4421_s24 + $0x4e0] sm:$0xff]  }
  0x6c   : > { %3783 = vmatpush3.bf16.msra.mxu0 %v4169_v54  ;;  %v4226_v54 = vld [vmem:[%s4421_s24 + $0x420] sm:$0xff]  }
  0x6d   : > { %3805 = vmatpush3.bf16.msra.mxu1 %v4170_v56  ;;  %3784 = vmatprep.subr.bf16.mxu0 %v4171_v57  ;;  %v4228_v56 = vld [vmem:[%s4421_s24 + $0x468] sm:$0xff]  }
  0x6e   : > { %3806 = vmatprep.subr.bf16.mxu1 %v4172_v59  ;;  %v4229_v57 = vld [vmem:[%s4421_s24 + $0x4e8] sm:$0xff]  }
  0x6f   : > { %v4231_v59 = vld [vmem:[%s4421_s24 + $0x4a8] sm:$0xff]  }
  0x70   : > { %3785 = vmatpush3.bf16.msra.mxu0 %v4173_v60  ;;  %v4232_v60 = vld [vmem:[%s4421_s24 + $0x470] sm:$0xff]  }
  0x71   : > { %3807 = vmatpush3.bf16.msra.mxu1 %v4174_v62  ;;  %3814 = vmatprep.subr.bf16.mxu0 %v4175_v0  ;;  %v4234_v62 = vld [vmem:[%s4421_s24 + $0x430] sm:$0xff]   ;;  %v4236_v0 = vld [vmem:[%s4421_s24 + $0x478] sm:$0xff]  }
  0x72   : > { %3836 = vmatprep.subr.bf16.mxu1 %v4176_v1  ;;  %v4237_v1 = vld [vmem:[%s4421_s24 + $0x4f8] sm:$0xff]  }
  0x73   : > { %2762 = vmatmul.mubr.bf16.vlgmr.msra.gmra.mrb[8].mxu0 %v877_v58  ;;  %v4230_v58 = vld [vmem:[%s4421_s24 + $0x428] sm:$0xff]  }
  0x74   : > { %2802 = vmatmul.mubr.bf16.vlgmr.msra.gmra.mrb[8].mxu1 %v899_v63  ;;  %3815 = vmatpush3.bf16.msra.mxu0 %v4177_v2  ;;  %v4235_v63 = vld [vmem:[%s4421_s24 + $0x4b0] sm:$0xff]   ;;  %v4238_v2 = vld [vmem:[%s4421_s24 + $0x438] sm:$0xff]  }
  0x75   : > { %3837 = vmatpush3.bf16.msra.mxu1 %v4178_v4  ;;  %2841 = vmatprep.mubr.bf16.mxu0 %v898_v61  ;;  %v4233_v61 = vld [vmem:[%s4421_s24 + $0x4f0] sm:$0xff]  }
  0x76   : > { %3816 = vmatprep.subr.bf16.mxu0 %v4179_v5  ;;  %2881 = vmatprep.mubr.bf16.mxu1 %v902_v3  ;;  %v4239_v3 = vld [vmem:[%s4421_s24 + $0x4b8] sm:$0xff]   ;;  %v287_v4 = vld [vmem:[%s4772_s0 + $0x10] sm:$0xff] }
  0x77   : > { %3838 = vmatprep.subr.bf16.mxu1 %v4180_v7  ;;  %v910_v5 = vrot.slane %v287_v4, %v4423_v6  ;;  %v4240_v7 = vld [vmem:[%s4421_s24 + $0x540] sm:$0xff]  }
  0x78   : > { %3817 = vmatpush3.bf16.msra.mxu0 %v4181_v8  ;;  %v903_v8 = vcombine.high %v287_v4, %v287_v4  ;;  %v4290_v4 = vld [vmem:[%s4421_s24 + $0x6e0] sm:$0xff]  }
  0x79   : > { %3839 = vmatpush3.bf16.msra.mxu1 %v4182_v9  ;;  %3818 = vmatprep.subr.bf16.mxu0 %v4183_v10  ;;  %v4241_v9 = vld [vmem:[%s4421_s24 + $0x5c0] sm:$0xff]   ;;  %v918_v10 = vcombine.high %v910_v5, %v910_v5 }
  0x7a   : > { %3840 = vmatprep.subr.bf16.mxu1 %v4184_v11  ;;  %v926_v11 = vrot.slane %v910_v5, %v4423_v6  ;;  %v4291_v5 = vld [vmem:[%s4421_s24 + $0x620] sm:$0xff]  }
  0x7c   : > { %3819 = vmatpush3.bf16.msra.mxu0 %v4185_v12  ;;  %v4633_v12 = vrot.slane %v903_v8, %v4423_v6  ;;  %v4293_v8 = vld [vmem:[%s4421_s24 + $0x668] sm:$0xff]  }
  0x7d   : > { %3841 = vmatpush3.bf16.msra.mxu1 %v4186_v13  ;;  %3820 = vmatprep.subr.bf16.mxu0 %v4187_v14  ;;  %v4242_v13 = vld [vmem:[%s4421_s24 + $0x500] sm:$0xff]   ;;  %v940_v14 = vrot.slane %v918_v10, %v4423_v6  ;;  %v4295_v10 = vld [vmem:[%s4421_s24 + $0x628] sm:$0xff]  }
  0x7e   : > { %3842 = vmatprep.subr.bf16.mxu1 %v4188_v15  ;;  %v4243_v15 = vld [vmem:[%s4421_s24 + $0x580] sm:$0xff]  }
  0x80   : > { %3821 = vmatpush3.bf16.msra.mxu0 %v4189_v16  ;;  %v919_v16 = vcombine.high %v4633_v12, %v4633_v12 }
  0x81   : > { %3843 = vmatpush3.bf16.msra.mxu1 %v4190_v17  ;;  %3822 = vmatprep.subr.bf16.mxu0 %v4191_v18  ;;  %v948_v17 = vcombine.high %v926_v11, %v926_v11  ;;  %v4244_v18 = vld [vmem:[%s4421_s24 + $0x548] sm:$0xff]  }
  0x82   : > { %3844 = vmatprep.subr.bf16.mxu1 %v4192_v19  ;;  %v950_v19 = vcombine.high %v940_v14, %v940_v14 }
  0x84   : > { %3823 = vmatpush3.bf16.msra.mxu0 %v4193_v20  ;;  %v4245_v20 = vld [vmem:[%s4421_s24 + $0x5c8] sm:$0xff]  }
  0x85   : > { %3845 = vmatpush3.bf16.msra.mxu1 %v4194_v21  ;;  %3824 = vmatprep.subr.bf16.mxu0 %v4195_v22  ;;  %v947_v21 = vrot.slane %v919_v16, %v4423_v6  ;;  %v4246_v22 = vld [vmem:[%s4421_s24 + $0x508] sm:$0xff]   ;;  %v4301_v16 = vld [vmem:[%s4421_s24 + $0x678] sm:$0xff]  }
  0x86   : > { %3846 = vmatprep.subr.bf16.mxu1 %v4196_v23  ;;  %v4247_v23 = vld [vmem:[%s4421_s24 + $0x588] sm:$0xff]  }
  0x88   : > { %3825 = vmatpush3.bf16.msra.mxu0 %v4197_v24  ;;  %v951_v24 = vcombine.high %v947_v21, %v947_v21 }
  0x89   : > { %3847 = vmatpush3.bf16.msra.mxu1 %v4198_v25  ;;  %3826 = vmatprep.subr.bf16.mxu0 %v4199_v26  ;;  %v4248_v25 = vld [vmem:[%s4421_s24 + $0x550] sm:$0xff]  }
  0x8a   : > { %3848 = vmatprep.subr.bf16.mxu1 %v4200_v27  ;;  %v4249_v26 = vld [vmem:[%s4421_s24 + $0x5d0] sm:$0xff]  }
  0x8b   : > { %v4250_v27 = vld [vmem:[%s4421_s24 + $0x510] sm:$0xff]  }
  0x8c   : > { %3827 = vmatpush3.bf16.msra.mxu0 %v4201_v28  ;;  %v4251_v28 = vld [vmem:[%s4421_s24 + $0x590] sm:$0xff]  }
  0x8d   : > { %3849 = vmatpush3.bf16.msra.mxu1 %v4202_v29  ;;  %3828 = vmatprep.subr.bf16.mxu0 %v4203_v30  ;;  %v4252_v29 = vld [vmem:[%s4421_s24 + $0x558] sm:$0xff]  }
  0x8e   : > { %3850 = vmatprep.subr.bf16.mxu1 %v4204_v32  ;;  %v4253_v30 = vld [vmem:[%s4421_s24 + $0x5d8] sm:$0xff]  }
  0x8f   : > { %v4255_v32 = vld [vmem:[%s4421_s24 + $0x598] sm:$0xff]  }
  0x90   : > { %3829 = vmatpush3.bf16.msra.mxu0 %v4205_v33  ;;  %v4256_v33 = vld [vmem:[%s4421_s24 + $0x560] sm:$0xff]  }
  0x91   : > { %3851 = vmatpush3.bf16.msra.mxu1 %v4206_v34  ;;  %3858 = vmatprep.subr.bf16.mxu0 %v4208_v36  ;;  %v4257_v34 = vld [vmem:[%s4421_s24 + $0x5e0] sm:$0xff]  }
  0x92   : > { %3880 = vmatprep.subr.bf16.mxu1 %v4209_v37  ;;  %v4259_v36 = vld [vmem:[%s4421_s24 + $0x5a0] sm:$0xff]   ;;  %v4260_v37 = vld [vmem:[%s4421_s24 + $0x568] sm:$0xff]  }
  0x93   : > { %2842 = vmatmul.mubr.bf16.vlgmr.msra.gmra.mrb[12].mxu0 %v884_v31  ;;  %v4254_v31 = vld [vmem:[%s4421_s24 + $0x518] sm:$0xff]  }
  0x94   : > { %2882 = vmatmul.mubr.bf16.vlgmr.msra.gmra.mrb[12].mxu1 %v900_v35  ;;  %3859 = vmatpush3.bf16.msra.mxu0 %v4210_v38  ;;  %v4258_v35 = vld [vmem:[%s4421_s24 + $0x520] sm:$0xff]   ;;  %v4261_v38 = vld [vmem:[%s4421_s24 + $0x5e8] sm:$0xff]  }
  0x95   : > { %3881 = vmatpush3.bf16.msra.mxu1 %v4211_v39  ;;  %3860 = vmatprep.subr.bf16.mxu0 %v4212_v40  ;;  %v4262_v39 = vld [vmem:[%s4421_s24 + $0x528] sm:$0xff]  }
  0x96   : > { %3882 = vmatprep.subr.bf16.mxu1 %v4213_v41  ;;  %2921 = vmatprep.mubr.bf16.mxu0 %v940_v14  ;;  %v4263_v40 = vld [vmem:[%s4421_s24 + $0x5a8] sm:$0xff]   ;;  %v4264_v41 = vld [vmem:[%s4421_s24 + $0x570] sm:$0xff]  }
  0x97   : > { %2961 = vmatprep.mubr.bf16.mxu1 %v950_v19  ;;  %v4299_v14 = vld [vmem:[%s4421_s24 + $0x630] sm:$0xff]   ;;  %v288_v19 = vld [vmem:[%s4772_s0 + $0x18] sm:$0xff] }
  0x98   : > { %3861 = vmatpush3.bf16.msra.mxu0 %v4214_v42  ;;  %v4265_v42 = vld [vmem:[%s4421_s24 + $0x5f0] sm:$0xff]  }
  0x99   : > { %3883 = vmatpush3.bf16.msra.mxu1 %v4215_v43  ;;  %3862 = vmatprep.subr.bf16.mxu0 %v4216_v44  ;;  %v4266_v43 = vld [vmem:[%s4421_s24 + $0x530] sm:$0xff]  }
  0x9a   : > { %3884 = vmatprep.subr.bf16.mxu1 %v4217_v45  ;;  %v4267_v44 = vld [vmem:[%s4421_s24 + $0x5b0] sm:$0xff]   ;;  %v4268_v45 = vld [vmem:[%s4421_s24 + $0x578] sm:$0xff]  }
  0x9c   : > { %3863 = vmatpush3.bf16.msra.mxu0 %v4218_v46  ;;  %v4269_v46 = vld [vmem:[%s4421_s24 + $0x5f8] sm:$0xff]  }
  0x9d   : > { %3885 = vmatpush3.bf16.msra.mxu1 %v4219_v47  ;;  %3864 = vmatprep.subr.bf16.mxu0 %v4220_v48  ;;  %v4270_v47 = vld [vmem:[%s4421_s24 + $0x538] sm:$0xff]  }
  0x9e   : > { %3886 = vmatprep.subr.bf16.mxu1 %v4221_v49  ;;  %v4271_v48 = vld [vmem:[%s4421_s24 + $0x5b8] sm:$0xff]   ;;  %v933_v49 = vrot.slane %v4633_v12, %v4423_v6  ;;  %v4297_v12 = vld [vmem:[%s4421_s24 + $0x670] sm:$0xff]  }
  0xa0   : > { %3865 = vmatpush3.bf16.msra.mxu0 %v4222_v50  ;;  %v4273_v50 = vld [vmem:[%s4421_s24 + $0x640] sm:$0xff]  }
  0xa1   : > { %3887 = vmatpush3.bf16.msra.mxu1 %v4223_v51  ;;  %3866 = vmatprep.subr.bf16.mxu0 %v4224_v52  ;;  %v4274_v51 = vld [vmem:[%s4421_s24 + $0x6c0] sm:$0xff]  }
  0xa2   : > { %3888 = vmatprep.subr.bf16.mxu1 %v4225_v53  ;;  %v4275_v52 = vld [vmem:[%s4421_s24 + $0x600] sm:$0xff]  }
  0xa3   : > { %v4276_v53 = vld [vmem:[%s4421_s24 + $0x680] sm:$0xff]  }
  0xa4   : > { %3867 = vmatpush3.bf16.msra.mxu0 %v4226_v54  ;;  %v949_v54 = vcombine.high %v933_v49, %v933_v49 }
  0xa5   : > { %3889 = vmatpush3.bf16.msra.mxu1 %v4227_v55  ;;  %3868 = vmatprep.subr.bf16.mxu0 %v4228_v56  ;;  %v4277_v55 = vld [vmem:[%s4421_s24 + $0x648] sm:$0xff]  }
  0xa6   : > { %3890 = vmatprep.subr.bf16.mxu1 %v4229_v57  ;;  %v4278_v56 = vld [vmem:[%s4421_s24 + $0x6c8] sm:$0xff]  }
  0xa7   : > { %v4279_v57 = vld [vmem:[%s4421_s24 + $0x608] sm:$0xff]  }
  0xa8   : > { %3869 = vmatpush3.bf16.msra.mxu0 %v4230_v58  ;;  %v4280_v58 = vld [vmem:[%s4421_s24 + $0x688] sm:$0xff]  }
  0xa9   : > { %3891 = vmatpush3.bf16.msra.mxu1 %v4231_v59  ;;  %3870 = vmatprep.subr.bf16.mxu0 %v4232_v60  ;;  %v4281_v59 = vld [vmem:[%s4421_s24 + $0x650] sm:$0xff]  }
  0xaa   : > { %3892 = vmatprep.subr.bf16.mxu1 %v4233_v61  ;;  %v4282_v60 = vld [vmem:[%s4421_s24 + $0x6d0] sm:$0xff]  }
  0xab   : > { %v4283_v61 = vld [vmem:[%s4421_s24 + $0x610] sm:$0xff]  }
  0xac   : > { %3871 = vmatpush3.bf16.msra.mxu0 %v4234_v62  ;;  %v4284_v62 = vld [vmem:[%s4421_s24 + $0x690] sm:$0xff]  }
  0xad   : > { %3893 = vmatpush3.bf16.msra.mxu1 %v4235_v63  ;;  %3872 = vmatprep.subr.bf16.mxu0 %v4236_v0  ;;  %v4285_v63 = vld [vmem:[%s4421_s24 + $0x658] sm:$0xff]  }
  0xae   : > { %3894 = vmatprep.subr.bf16.mxu1 %v4237_v1  ;;  %v4286_v0 = vld [vmem:[%s4421_s24 + $0x6d8] sm:$0xff]  }
  0xaf   : > { %v4287_v1 = vld [vmem:[%s4421_s24 + $0x618] sm:$0xff]  }
  0xb0   : > { %3873 = vmatpush3.bf16.msra.mxu0 %v4238_v2  ;;  %v4288_v2 = vld [vmem:[%s4421_s24 + $0x698] sm:$0xff]  }
  0xb1   : > { %3895 = vmatpush3.bf16.msra.mxu1 %v4239_v3  ;;  %3902 = vmatprep.subr.bf16.mxu0 %v4240_v7  ;;  %v4289_v3 = vld [vmem:[%s4421_s24 + $0x660] sm:$0xff]  }
  0xb2   : > { %3924 = vmatprep.subr.bf16.mxu1 %v4241_v9  ;;  %v4292_v7 = vld [vmem:[%s4421_s24 + $0x6a0] sm:$0xff]   ;;  %v4294_v9 = vld [vmem:[%s4421_s24 + $0x6e8] sm:$0xff]  }
  0xb3   : > { %2922 = vmatmul.mubr.bf16.vlgmr.msra.gmra.mrb[16].mxu0 %v926_v11  ;;  %v4296_v11 = vld [vmem:[%s4421_s24 + $0x6a8] sm:$0xff]  }
  0xb4   : > { %3903 = vmatpush3.bf16.msra.mxu0 %v4242_v13  ;;  %2962 = vmatmul.mubr.bf16.vlgmr.msra.gmra.mrb[16].mxu1 %v948_v17  ;;  %v4298_v13 = vld [vmem:[%s4421_s24 + $0x6f0] sm:$0xff]   ;;  %v4302_v17 = vld [vmem:[%s4421_s24 + $0x6f8] sm:$0xff]  }
  0xb5   : > { %3904 = vmatprep.subr.bf16.mxu0 %v4244_v18  ;;  %3925 = vmatpush3.bf16.msra.mxu1 %v4243_v15  ;;  %v4300_v15 = vld [vmem:[%s4421_s24 + $0x6b0] sm:$0xff]   ;;  %v4303_v18 = vld [vmem:[%s4421_s24 + $0x638] sm:$0xff]  }
  0xb6   : > { %3001 = vmatprep.mubr.bf16.mxu0 %v947_v21  ;;  %3926 = vmatprep.subr.bf16.mxu1 %v4245_v20  ;;  %v4304_v20 = vld [vmem:[%s4421_s24 + $0x6b8] sm:$0xff]   ;;  %v959_v21 = vrot.slane %v288_v19, %v4423_v6 }
  0xb7   : > { %3041 = vmatprep.mubr.bf16.mxu1 %v951_v24 }
  0xb8   : > { %3905 = vmatpush3.bf16.msra.mxu0 %v4246_v22  ;;  %v952_v22 = vcombine.high %v288_v19, %v288_v19  ;;  %v967_v24 = vcombine.high %v959_v21, %v959_v21 }
  0xb9   : > { %3906 = vmatprep.subr.bf16.mxu0 %v4248_v25  ;;  %3927 = vmatpush3.bf16.msra.mxu1 %v4247_v23  ;;  %v4305_v23 = vld [vmem:[%s4421_s24 + $0x740] sm:$0xff]   ;;  %v975_v25 = vrot.slane %v959_v21, %v4423_v6 }
  0xba   : > { %3928 = vmatprep.subr.bf16.mxu1 %v4249_v26  ;;  %v4306_v26 = vld [vmem:[%s4421_s24 + $0x7c0] sm:$0xff]  }
  0xbc   : > { %3907 = vmatpush3.bf16.msra.mxu0 %v4250_v27  ;;  %v4711_v27 = vrot.slane %v952_v22, %v4423_v6 }
  0xbd   : > { %3908 = vmatprep.subr.bf16.mxu0 %v4252_v29  ;;  %3929 = vmatpush3.bf16.msra.mxu1 %v4251_v28  ;;  %v4307_v28 = vld [vmem:[%s4421_s24 + $0x700] sm:$0xff]   ;;  %v989_v29 = vrot.slane %v967_v24, %v4423_v6 }
  0xbe   : > { %3930 = vmatprep.subr.bf16.mxu1 %v4253_v30  ;;  %v4308_v30 = vld [vmem:[%s4421_s24 + $0x780] sm:$0xff]  }
  0xc0   : > { %3909 = vmatpush3.bf16.msra.mxu0 %v4254_v31  ;;  %v968_v31 = vcombine.high %v4711_v27, %v4711_v27 }
  0xc1   : > { %3910 = vmatprep.subr.bf16.mxu0 %v4256_v33  ;;  %3931 = vmatpush3.bf16.msra.mxu1 %v4255_v32  ;;  %v997_v32 = vcombine.high %v975_v25, %v975_v25  ;;  %v4309_v33 = vld [vmem:[%s4421_s24 + $0x748] sm:$0xff]  }
  0xc2   : > { %3932 = vmatprep.subr.bf16.mxu1 %v4257_v34  ;;  %v999_v34 = vcombine.high %v989_v29, %v989_v29 }
  0xc4   : > { %3911 = vmatpush3.bf16.msra.mxu0 %v4258_v35  ;;  %v4310_v35 = vld [vmem:[%s4421_s24 + $0x7c8] sm:$0xff]  }
  0xc5   : > { %3912 = vmatprep.subr.bf16.mxu0 %v4260_v37  ;;  %3933 = vmatpush3.bf16.msra.mxu1 %v4259_v36  ;;  %v996_v36 = vrot.slane %v968_v31, %v4423_v6  ;;  %v4311_v37 = vld [vmem:[%s4421_s24 + $0x708] sm:$0xff]  }
  0xc6   : > { %3934 = vmatprep.subr.bf16.mxu1 %v4261_v38  ;;  %v4312_v38 = vld [vmem:[%s4421_s24 + $0x788] sm:$0xff]  }
  0xc8   : > { %3913 = vmatpush3.bf16.msra.mxu0 %v4262_v39  ;;  %v1000_v39 = vcombine.high %v996_v36, %v996_v36 }
  0xc9   : > { %3914 = vmatprep.subr.bf16.mxu0 %v4264_v41  ;;  %3935 = vmatpush3.bf16.msra.mxu1 %v4263_v40  ;;  %v4313_v40 = vld [vmem:[%s4421_s24 + $0x750] sm:$0xff]  }
  0xca   : > { %3936 = vmatprep.subr.bf16.mxu1 %v4265_v42  ;;  %v4314_v41 = vld [vmem:[%s4421_s24 + $0x7d0] sm:$0xff]  }
  0xcb   : > { %v4315_v42 = vld [vmem:[%s4421_s24 + $0x710] sm:$0xff]  }
  0xcc   : > { %3915 = vmatpush3.bf16.msra.mxu0 %v4266_v43  ;;  %v4316_v43 = vld [vmem:[%s4421_s24 + $0x790] sm:$0xff]  }
  0xcd   : > { %3916 = vmatprep.subr.bf16.mxu0 %v4268_v45  ;;  %3937 = vmatpush3.bf16.msra.mxu1 %v4267_v44  ;;  %v4317_v44 = vld [vmem:[%s4421_s24 + $0x758] sm:$0xff]  }
  0xce   : > { %3938 = vmatprep.subr.bf16.mxu1 %v4269_v46  ;;  %v4318_v45 = vld [vmem:[%s4421_s24 + $0x7d8] sm:$0xff]  }
  0xcf   : > { %v4319_v46 = vld [vmem:[%s4421_s24 + $0x718] sm:$0xff]  }
  0xd0   : > { %3917 = vmatpush3.bf16.msra.mxu0 %v4270_v47  ;;  %v4320_v47 = vld [vmem:[%s4421_s24 + $0x798] sm:$0xff]  }
  0xd1   : > { %3946 = vmatprep.subr.bf16.mxu0 %v4273_v50  ;;  %3939 = vmatpush3.bf16.msra.mxu1 %v4271_v48  ;;  %v4321_v48 = vld [vmem:[%s4421_s24 + $0x760] sm:$0xff]  }
  0xd2   : > { %3968 = vmatprep.subr.bf16.mxu1 %v4274_v51  ;;  %v4323_v50 = vld [vmem:[%s4421_s24 + $0x720] sm:$0xff]  }
  0xd3   : > { %3002 = vmatmul.mubr.bf16.vlgmr.msra.gmra.mrb[20].mxu0 %v933_v49  ;;  %v4322_v49 = vld [vmem:[%s4421_s24 + $0x7e0] sm:$0xff]  }
  0xd4   : > { %3947 = vmatpush3.bf16.msra.mxu0 %v4275_v52  ;;  %3042 = vmatmul.mubr.bf16.vlgmr.msra.gmra.mrb[20].mxu1 %v949_v54  ;;  %v4324_v51 = vld [vmem:[%s4421_s24 + $0x7a0] sm:$0xff]  }
  0xd5   : > { %3948 = vmatprep.subr.bf16.mxu0 %v4277_v55  ;;  %3969 = vmatpush3.bf16.msra.mxu1 %v4276_v53  ;;  %v4325_v53 = vld [vmem:[%s4421_s24 + $0x768] sm:$0xff]  }
  0xd6   : > { %3970 = vmatprep.subr.bf16.mxu1 %v4278_v56  ;;  %3081 = vmatprep.mubr.bf16.mxu0 %v989_v29  ;;  %v4326_v56 = vld [vmem:[%s4421_s24 + $0x7e8] sm:$0xff]  }
  0xd7   : > { %3121 = vmatprep.mubr.bf16.mxu1 %v999_v34 }
  0xd8   : > { %3949 = vmatpush3.bf16.msra.mxu0 %v4279_v57  ;;  %v4327_v57 = vld [vmem:[%s4421_s24 + $0x728] sm:$0xff]  }
  0xd9   : > { %3950 = vmatprep.subr.bf16.mxu0 %v4281_v59  ;;  %3971 = vmatpush3.bf16.msra.mxu1 %v4280_v58 }
  0xda   : > { %3972 = vmatprep.subr.bf16.mxu1 %v4282_v60 }
  0xdc   : > { %3951 = vmatpush3.bf16.msra.mxu0 %v4283_v61 }
  0xdd   : > { %3952 = vmatprep.subr.bf16.mxu0 %v4285_v63  ;;  %3973 = vmatpush3.bf16.msra.mxu1 %v4284_v62 }
  0xde   : > { %3974 = vmatprep.subr.bf16.mxu1 %v4286_v0 }
  0xe0   : > { %3953 = vmatpush3.bf16.msra.mxu0 %v4287_v1  ;;  %v4329_v1 = vld [vmem:[%s4421_s24 + $0x770] sm:$0xff]  }
  0xe1   : > { %3954 = vmatprep.subr.bf16.mxu0 %v4289_v3  ;;  %3975 = vmatpush3.bf16.msra.mxu1 %v4288_v2  ;;  %v4328_v3 = vld [vmem:[%s4421_s24 + $0x7a8] sm:$0xff]  }
  0xe2   : > { %3976 = vmatprep.subr.bf16.mxu1 %v4290_v4  ;;  %v4330_v4 = vld [vmem:[%s4421_s24 + $0x7f0] sm:$0xff]  }
  0xe4   : > { %3955 = vmatpush3.bf16.msra.mxu0 %v4291_v5  ;;  %v4331_v5 = vld [vmem:[%s4421_s24 + $0x730] sm:$0xff]  }
  0xe5   : > { %3956 = vmatprep.subr.bf16.mxu0 %v4293_v8  ;;  %3977 = vmatpush3.bf16.msra.mxu1 %v4292_v7  ;;  %v4333_v7 = vld [vmem:[%s4421_s24 + $0x778] sm:$0xff]   ;;  %v4332_v8 = vld [vmem:[%s4421_s24 + $0x7b0] sm:$0xff]  }
  0xe6   : > { %3978 = vmatprep.subr.bf16.mxu1 %v4294_v9  ;;  %v4334_v9 = vld [vmem:[%s4421_s24 + $0x7f8] sm:$0xff]  }
  0xe8   : > { %3957 = vmatpush3.bf16.msra.mxu0 %v4295_v10  ;;  %v4335_v10 = vld [vmem:[%s4421_s24 + $0x738] sm:$0xff]  }
  0xe9   : > { %3958 = vmatprep.subr.bf16.mxu0 %v4297_v12  ;;  %3979 = vmatpush3.bf16.msra.mxu1 %v4296_v11  ;;  %v982_v11 = vrot.slane %v4711_v27, %v4423_v6  ;;  %v4336_v12 = vld [vmem:[%s4421_s24 + $0x7b8] sm:$0xff]  }
  0xea   : > { %3980 = vmatprep.subr.bf16.mxu1 %v4298_v13 }
  0xeb   : > { %v998_v13 = vcombine.high %v982_v11, %v982_v11 }
  0xec   : > { %3959 = vmatpush3.bf16.msra.mxu0 %v4299_v14 }
  0xed   : > { %3960 = vmatprep.subr.bf16.mxu0 %v4301_v16  ;;  %3981 = vmatpush3.bf16.msra.mxu1 %v4300_v15 }
  0xee   : > { %3982 = vmatprep.subr.bf16.mxu1 %v4302_v17 }
  0xf0   : > { %3961 = vmatpush3.bf16.msra.mxu0 %v4303_v18 }
  0xf1   : > { %3990 = vmatprep.subr.bf16.mxu0 %v4305_v23  ;;  %3983 = vmatpush3.bf16.msra.mxu1 %v4304_v20 }
  0xf2   : > { %4012 = vmatprep.subr.bf16.mxu1 %v4306_v26 }
  0xf3   : > { %3082 = vmatmul.mubr.bf16.vlgmr.msra.gmra.mrb[24].mxu0 %v975_v25 }
  0xf4   : > { %3991 = vmatpush3.bf16.msra.mxu0 %v4307_v28  ;;  %3122 = vmatmul.mubr.bf16.vlgmr.msra.gmra.mrb[24].mxu1 %v997_v32 }
  0xf5   : > { %3992 = vmatprep.subr.bf16.mxu0 %v4309_v33  ;;  %4013 = vmatpush3.bf16.msra.mxu1 %v4308_v30 }
  0xf6   : > { %3161 = vmatprep.mubr.bf16.mxu0 %v996_v36  ;;  %4014 = vmatprep.subr.bf16.mxu1 %v4310_v35 }
  0xf7   : > { %3201 = vmatprep.mubr.bf16.mxu1 %v1000_v39 }
  0xf8   : > { %3993 = vmatpush3.bf16.msra.mxu0 %v4311_v37 }
  0xf9   : > { %3994 = vmatprep.subr.bf16.mxu0 %v4313_v40  ;;  %4015 = vmatpush3.bf16.msra.mxu1 %v4312_v38 }
  0xfa   : > { %4016 = vmatprep.subr.bf16.mxu1 %v4314_v41 }
  0xfc   : > { %3995 = vmatpush3.bf16.msra.mxu0 %v4315_v42 }
  0xfd   : > { %3996 = vmatprep.subr.bf16.mxu0 %v4317_v44  ;;  %4017 = vmatpush3.bf16.msra.mxu1 %v4316_v43 }
  0xfe   : > { %4018 = vmatprep.subr.bf16.mxu1 %v4318_v45 }
 0x100   : > { %3997 = vmatpush3.bf16.msra.mxu0 %v4319_v46 }
 0x101   : > { %3998 = vmatprep.subr.bf16.mxu0 %v4321_v48  ;;  %4019 = vmatpush3.bf16.msra.mxu1 %v4320_v47 }
 0x102   : > { %4020 = vmatprep.subr.bf16.mxu1 %v4322_v49  ;;  %v4367_v49 = vmov 0.0  }
 0x103   : > { %283 = vst.msk [vmem:[#allocation2] sm:$0x3] %vm282_vm0, %v4367_v49 }
 0x104   : > { %3999 = vmatpush3.bf16.msra.mxu0 %v4323_v50  ;;  %v4338_v50 = vld [vmem:[%s272_s8] sm:$0xff]  }
 0x105   : > { %4000 = vmatprep.subr.bf16.mxu0 %v4325_v53  ;;  %4021 = vmatpush3.bf16.msra.mxu1 %v4324_v51  ;;  %v4339_v51 = vld [vmem:[%s272_s8 + $0x8] sm:$0xff]   ;;  %v4341_v53 = vld [vmem:[%s272_s8 + $0x18] sm:$0xff]  }
 0x106   : > { %v3698_v52 = vpop.f32.mrb[0].mxu0  ;;  %4022 = vmatprep.subr.bf16.mxu1 %v4326_v56 }
 0x107   : > { %v3720_v54 = vpop.f32.mrb[0].mxu1  ;;  %v3699_v55 = vpop.f32.mrb[1].mxu0 }
 0x108   : > { %v3700_v58 = vadd.f32 %v3699_v55, %v3698_v52  ;;  %v3721_v59 = vpop.f32.mrb[1].mxu1  ;;  %v3701_v60 = vpop.f32.mrb[2].mxu0  ;;  %4001 = vmatpush3.bf16.msra.mxu0 %v4327_v57  ;;  %v4340_v52 = vld [vmem:[%s272_s8 + $0x10] sm:$0xff]  }
 0x109   : > { %v3722_v61 = vadd.f32 %v3721_v59, %v3720_v54  ;;  %v3723_v62 = vpop.f32.mrb[2].mxu1  ;;  %v3702_v63 = vpop.f32.mrb[3].mxu0  ;;  %4002 = vmatprep.subr.bf16.mxu0 %v4329_v1  ;;  %4023 = vmatpush3.bf16.msra.mxu1 %v4328_v3 }
 0x10a   : > { %v3724_v0 = vpop.f32.mrb[3].mxu1  ;;  %4024 = vmatprep.subr.bf16.mxu1 %v4330_v4 }
 0x10b   : > { %v2644_v2 = vadd.f32 %v3722_v61, %v3700_v58 }
 0x10c   : > { %4003 = vmatpush3.bf16.msra.mxu0 %v4331_v5 }
 0x10d   : > { %4004 = vmatprep.subr.bf16.mxu0 %v4333_v7  ;;  %4025 = vmatpush3.bf16.msra.mxu1 %v4332_v8 }
 0x10e   : > { %4026 = vmatprep.subr.bf16.mxu1 %v4334_v9 }
 0x110   : > { %4005 = vmatpush3.bf16.msra.mxu0 %v4335_v10 }
 0x111   : > { %4027 = vmatpush3.bf16.msra.mxu1 %v4336_v12  ;;  %4039 = vmatprep.subr.bf16.mxu0 %v4367_v49 }
 0x113   : > { %3162 = vmatmul.mubr.bf16.vlgmr.msra.gmra.mrb[28].mxu0 %v982_v11 }
 0x114   : > { %3202 = vmatmul.mubr.bf16.vlgmr.msra.gmra.mrb[28].mxu1 %v998_v13  ;;  %4047 = vmatprep.mubr.msk.bf16.mxu0 %vm4368_vm1, %v4367_v49 }
 0x115   : > { %4040 = vmatpush3.bf16.msra.mxu0 %v4338_v50 }
 0x116   : > { %4041 = vmatprep.subr.bf16.mxu0 %v4367_v49 }
 0x119   : > { %4042 = vmatpush3.bf16.msra.mxu0 %v4339_v51 }
 0x11a   : > { %4043 = vmatprep.subr.bf16.mxu0 %v4367_v49 }
 0x11d   : > { %4044 = vmatpush3.bf16.msra.mxu0 %v4340_v52 }
 0x11e   : > { %4045 = vmatprep.subr.bf16.mxu0 %v4367_v49 }
 0x121   : > { %4046 = vmatpush3.bf16.msra.mxu0 %v4341_v53 }
 0x126   : > { %v3742_v14 = vpop.f32.mrb[4].mxu0 }
 0x127   : > { %v3764_v15 = vpop.f32.mrb[4].mxu1  ;;  %v3743_v16 = vpop.f32.mrb[5].mxu0 }
 0x128   : > { %v3744_v17 = vadd.f32 %v3743_v16, %v3742_v14  ;;  %v3765_v18 = vpop.f32.mrb[5].mxu1  ;;  %v3745_v19 = vpop.f32.mrb[6].mxu0 }
 0x129   : > { %v3766_v20 = vadd.f32 %v3765_v18, %v3764_v15  ;;  %v3767_v21 = vpop.f32.mrb[6].mxu1  ;;  %v3746_v22 = vpop.f32.mrb[7].mxu0 }
 0x12a   : > { %v2684_v23 = vadd.f32 %v3744_v17, %v2644_v2  ;;  %v3768_v24 = vpop.f32.mrb[7].mxu1 }
 0x12c   : > { %v2724_v6 = vadd.f32 %v3766_v20, %v2684_v23 }
 0x146   : > { %v3786_v25 = vpop.f32.mrb[8].mxu0 }
 0x147   : > { %v3808_v26 = vpop.f32.mrb[8].mxu1  ;;  %v3787_v27 = vpop.f32.mrb[9].mxu0 }
 0x148   : > { %v3788_v28 = vadd.f32 %v3787_v27, %v3786_v25  ;;  %v3809_v29 = vpop.f32.mrb[9].mxu1  ;;  %v3789_v30 = vpop.f32.mrb[10].mxu0 }
 0x149   : > { %v3810_v31 = vadd.f32 %v3809_v29, %v3808_v26  ;;  %v3811_v32 = vpop.f32.mrb[10].mxu1  ;;  %v3790_v33 = vpop.f32.mrb[11].mxu0 }
 0x14a   : > { %v2764_v34 = vadd.f32 %v3788_v28, %v2724_v6  ;;  %v3812_v35 = vpop.f32.mrb[11].mxu1 }
 0x14c   : > { %v2804_v36 = vadd.f32 %v3810_v31, %v2764_v34 }
 0x166   : > { %v3830_v37 = vpop.f32.mrb[12].mxu0 }
 0x167   : > { %v3852_v38 = vpop.f32.mrb[12].mxu1  ;;  %v3831_v39 = vpop.f32.mrb[13].mxu0 }
 0x168   : > { %v3832_v40 = vadd.f32 %v3831_v39, %v3830_v37  ;;  %v3853_v41 = vpop.f32.mrb[13].mxu1  ;;  %v3833_v42 = vpop.f32.mrb[14].mxu0 }
 0x169   : > { %v3854_v43 = vadd.f32 %v3853_v41, %v3852_v38  ;;  %v3855_v44 = vpop.f32.mrb[14].mxu1  ;;  %v3834_v45 = vpop.f32.mrb[15].mxu0 }
 0x16a   : > { %v2844_v46 = vadd.f32 %v3832_v40, %v2804_v36  ;;  %v3856_v47 = vpop.f32.mrb[15].mxu1  ;;  %v284_v36 = vld [vmem:[#allocation2] sm:$0x3] }
 0x16b   : > { %v3672_v40 = vld [vmem:[%s267_s11] ss:$0 sm:$0xff] }
 0x16c   : > { %v2884_v48 = vadd.f32 %v3854_v43, %v2844_v46 }
 0x186   : > { %v3874_v54 = vpop.f32.mrb[16].mxu0 }
 0x187   : > { %v3875_v55 = vpop.f32.mrb[17].mxu0  ;;  %v3896_v56 = vpop.f32.mrb[16].mxu1 }
 0x188   : > { %v3876_v57 = vadd.f32 %v3875_v55, %v3874_v54  ;;  %v3877_v58 = vpop.f32.mrb[18].mxu0  ;;  %v3897_v59 = vpop.f32.mrb[17].mxu1 }
 0x189   : > { %v3878_v60 = vpop.f32.mrb[19].mxu0  ;;  %v3898_v62 = vadd.f32 %v3897_v59, %v3896_v56  ;;  %v3899_v63 = vpop.f32.mrb[18].mxu1 }
 0x18a   : > { %v2924_v61 = vadd.f32 %v3876_v57, %v2884_v48  ;;  %v3900_v0 = vpop.f32.mrb[19].mxu1 }
 0x18c   : > { %v2964_v1 = vadd.f32 %v3898_v62, %v2924_v61 }
 0x1a6   : > { %v3918_v2 = vpop.f32.mrb[20].mxu0 }
 0x1a7   : > { %v3919_v3 = vpop.f32.mrb[21].mxu0  ;;  %v3940_v4 = vpop.f32.mrb[20].mxu1 }
 0x1a8   : > { %v3920_v5 = vadd.f32 %v3919_v3, %v3918_v2  ;;  %v3921_v7 = vpop.f32.mrb[22].mxu0  ;;  %v3941_v8 = vpop.f32.mrb[21].mxu1 }
 0x1a9   : > { %v3922_v9 = vpop.f32.mrb[23].mxu0  ;;  %v3942_v11 = vadd.f32 %v3941_v8, %v3940_v4  ;;  %v3943_v12 = vpop.f32.mrb[22].mxu1 }
 0x1aa   : > { %v3004_v10 = vadd.f32 %v3920_v5, %v2964_v1  ;;  %v3944_v13 = vpop.f32.mrb[23].mxu1 }
 0x1ac   : > { %v3044_v14 = vadd.f32 %v3942_v11, %v3004_v10 }
 0x1c6   : > { %v3962_v15 = vpop.f32.mrb[24].mxu0 }
 0x1c7   : > { %v3963_v16 = vpop.f32.mrb[25].mxu0  ;;  %v3984_v17 = vpop.f32.mrb[24].mxu1 }
 0x1c8   : > { %v3964_v18 = vadd.f32 %v3963_v16, %v3962_v15  ;;  %v3965_v19 = vpop.f32.mrb[26].mxu0  ;;  %v3985_v20 = vpop.f32.mrb[25].mxu1 }
 0x1c9   : > { %v3966_v21 = vpop.f32.mrb[27].mxu0  ;;  %v3986_v23 = vadd.f32 %v3985_v20, %v3984_v17  ;;  %v3987_v24 = vpop.f32.mrb[26].mxu1 }
 0x1ca   : > { %v3084_v22 = vadd.f32 %v3964_v18, %v3044_v14  ;;  %v3988_v6 = vpop.f32.mrb[27].mxu1 }
 0x1cc   : > { %v3124_v25 = vadd.f32 %v3986_v23, %v3084_v22 }
 0x1e6   : > { %v4006_v26 = vpop.f32.mrb[28].mxu0 }
 0x1e7   : > { %v4007_v27 = vpop.f32.mrb[29].mxu0  ;;  %v4028_v28 = vpop.f32.mrb[28].mxu1 }
 0x1e8   : > { %v4008_v29 = vadd.f32 %v4007_v27, %v4006_v26  ;;  %v4009_v30 = vpop.f32.mrb[30].mxu0  ;;  %v4029_v31 = vpop.f32.mrb[29].mxu1 }
 0x1e9   : > { %v4010_v32 = vpop.f32.mrb[31].mxu0  ;;  %v4030_v34 = vadd.f32 %v4029_v31, %v4028_v28  ;;  %v4031_v35 = vpop.f32.mrb[30].mxu1 }
 0x1ea   : > { %v3164_v33 = vadd.f32 %v4008_v29, %v3124_v25  ;;  %v4032_v37 = vpop.f32.mrb[31].mxu1 }
 0x1ec   : > { %v3204_v38 = vadd.f32 %v4030_v34, %v3164_v33 }
 0x1ee   : > { %v3209_v39 = vadd.f32 %v3204_v38, %v284_v36 }
 0x1f0   : > { %3211 = vst.msk [vmem:[#allocation2] sm:$0x3] %vm282_vm0, %v3209_v39 }
 0x1f7   : > { %v3215_v41 = vld [vmem:[#allocation2] sm:$0x3] }
 0x1f8   : > { %v3223_v42 = vadd.f32 %v3672_v40, %v3215_v41 }
 0x1fa   : > { %v3224_v43 = vmax.f32 %v3223_v42, 0.0 }
 0x1fc   : > { %v3225_v44 = vpack.c.bf16 %v3224_v43, %v3224_v43 }
 0x1fe   : > { %4048 = vmatmul.mubr.msk.bf16.vlgmr.msra.gmra.mrb[32].mxu0 %vm3258_vm2, %v3225_v44 }
 0x2d1   : > { %v3296_v45 = vpop.f32.mrb[32].mxu0 }
 0x2d2   : > { %3303 = vst.msk [vmem:[%s276_s19] sm:$0x3] %vm3302_vm3, %v3296_v45  ;;  %v4049_v46 = vpop.f32.mrb[33].mxu0 }
 0x2d3   : > { %v3299_v47 = vpop.f32.mrb[34].mxu0 }
 0x2d4   : > { %v4050_v48 = vpop.f32.mrb[35].mxu0 }
 0x2d5 PF: > { %s14_s17 = sadd.s32 1, %s4364_s17   ;;  %s4777_s15 = smov %s4360_s16 }
 0x2d6   : > { %p11_p5 = scmp.ge.s32.totalorder %s14_s17, 4   ;;  %s4778_s16 = smov %s4780_s18 }
 0x2d8   :  { %13 = sbr.rel (!%p11_p5) target bundleno = 2 (0x2), region = 83 }

</bundles_post_ra>
